<compile_context>
chip_gen: v6e
topology: v6e:2x2x1
jax: 0.10.0
libtpu: 0.0.40
codegen_flags: <defaults>
</compile_context>

<pallas_src>
import functools

import jax
import jax.numpy as jnp
from jax import lax
from jax.experimental import pallas as pl
from jax.experimental.pallas import tpu as pltpu

EXPANSION = 4
BN_EPS = 1e-5
LANE = 128


def _round_up(n, m=LANE):
    return ((n + m - 1) // m) * m


def _pad_last(a, target):
    pad = target - a.shape[-1]
    if pad == 0:
        return a
    return jnp.pad(a, [(0, 0)] * (a.ndim - 1) + [(0, pad)])


def _pick_row_block(H, W, max_rows=2048):
    """Largest divisor TH of H with TH * W <= max_rows (falls back to 1)."""
    for th in range(H, 0, -1):
        if H % th == 0 and th * W <= max_rows:
            return th
    return 1


def _default_vmem_limit():
    try:
        cap = pltpu.get_tpu_info().vmem_capacity_bytes        # per-TensorCore
    except Exception:
        cap = 64 * 1024 * 1024
    # ~96 MiB on 128 MiB parts (v5e/v6e), ~48 MiB on the 64 MiB part (v7x).
    return max(32 * 1024 * 1024, min(cap * 3 // 4, 96 * 1024 * 1024))


# -----------------------------------------------------------------------------
# Pallas kernel: TH output rows of one bottleneck block for one batch element.
#   x_ref    : (H+2, W, CinP)       bf16   (H zero-padded by 1 row top/bottom)
#   w1       : (CinP, widthP)       bf16   (BN1 scale folded in)
#   b1       : (1, widthP)          f32
#   w2       : (9, widthP, widthP)  bf16   (tap k = kh*3+kw, (in, out) layout)
#   b2       : (1, widthP)          f32
#   w3       : (widthP, CoutP)      bf16   (BN3 scale folded in)
#   b3       : (1, CoutP)           f32
#   out_ref  : (TH, W, CoutP)       bf16
#   h1pad_ref: (TH+2, Wscr, widthP) bf16 scratch (conv1 output with zero W-halo)
# -----------------------------------------------------------------------------
def _bottleneck_kernel(x_ref, w1_ref, b1_ref, w2_ref, b2_ref, w3_ref, b3_ref,
                       out_ref, h1pad_ref, *, H, W, TH):
    hb = pl.program_id(1)
    CinP = x_ref.shape[-1]
    widthP = w1_ref.shape[-1]
    CoutP = w3_ref.shape[-1]

    row0 = pl.multiple_of(hb * TH, TH)     # first padded-frame row of this block

    # ---- conv1 (1x1) + bn1 + relu on TH+2 rows (incl. conv2 halo rows) ------
    x_halo = x_ref[pl.ds(row0, TH + 2)]                         # (TH+2, W, CinP)
    h1 = jnp.dot(x_halo.reshape((TH + 2) * W, CinP), w1_ref[...],
                 preferred_element_type=jnp.float32)
    h1 = jnp.maximum(h1 + b1_ref[...], 0.0)                     # ((TH+2)*W, widthP)

    # conv2 zero-pads the conv1 OUTPUT, so halo rows outside the real image
    # must be 0, not conv1(0-row) = relu(b1).  Padded-frame row r is a real
    # image row iff 1 <= row0 + r <= H.
    r_idx = lax.broadcasted_iota(jnp.int32, (TH + 2, 1, 1), 0) + row0
    h1 = jnp.where((r_idx >= 1) & (r_idx <= H),
                   h1.reshape(TH + 2, W, widthP), 0.0)

    # ---- write conv1 output once into the zero-halo scratch -----------------
    zero_col = jnp.zeros((TH + 2, 1, widthP), jnp.bfloat16)
    h1pad_ref[:, 0:1, :] = zero_col                              # left W-halo
    h1pad_ref[:, W + 1:W + 2, :] = zero_col                      # right W-halo
    h1pad_ref[:, 1:W + 1, :] = h1.astype(jnp.bfloat16)

    # ---- conv2 (3x3, stride=1, pad=1): 9 accumulated matmuls ----------------
    def win(kh, kw):
        return h1pad_ref[kh:kh + TH, kw:kw + W, :].reshape(TH * W, widthP)

    h2 = jnp.dot(win(0, 0), w2_ref[0], preferred_element_type=jnp.float32)
    for k in range(1, 9):
        kh, kw = divmod(k, 3)
        h2 = h2 + jnp.dot(win(kh, kw), w2_ref[k],
                          preferred_element_type=jnp.float32)
    h2 = jnp.maximum(h2 + b2_ref[...], 0.0)                      # (TH*W, widthP)

    # ---- conv3 (1x1) + bn3 + identity + relu ---------------------------------
    h3 = jnp.dot(h2.astype(jnp.bfloat16), w3_ref[...],
                 preferred_element_type=jnp.float32) + b3_ref[...]
    # Re-read the residual from the resident input block only now, so its live
    # range does not overlap the conv2 VMEM peak (stride==1, CinP == CoutP).
    identity = x_ref[pl.ds(row0 + 1, TH)].reshape(TH * W, CoutP)
    out = jnp.maximum(h3 + identity.astype(jnp.float32), 0.0)
    out_ref[...] = out.astype(out_ref.dtype).reshape(TH, W, CoutP)


# -----------------------------------------------------------------------------
# NHWC entry point (preferred when chaining blocks: bf16 in / bf16 out).
# -----------------------------------------------------------------------------
def bottleneck_pallas_nhwc(x_nhwc, w1, b1, w2, b2, w3, b3, *, row_block=None):
    N, H, W, CinP = x_nhwc.shape
    widthP = w1.shape[1]
    CoutP = w3.shape[1]
    assert CinP == CoutP, "identity shortcut requires Cin == Cout (downsample=None)"

    TH = _pick_row_block(H, W) if row_block is None else row_block
    assert H % TH == 0, "row_block must divide H"
    HB = H // TH
    Wscr = _round_up(W + 2, 8)

    # One zero row above/below for conv2's spatial halo (conv1 is recomputed on
    # the halo rows in-kernel and masked at the true image boundary).
    xp = jnp.pad(x_nhwc, ((0, 0), (1, 1), (0, 0), (0, 0)))

    kernel = functools.partial(_bottleneck_kernel, H=H, W=W, TH=TH)
    return pl.pallas_call(
        kernel,
        out_shape=jax.ShapeDtypeStruct((N, H, W, CoutP), jnp.bfloat16),
        grid_spec=pltpu.PrefetchScalarGridSpec(
            num_scalar_prefetch=0,
            grid=(N, HB),
            in_specs=[
                # Full (H-padded) image per batch element; same block index for
                # every hb, so it is only DMA'd when n changes.
                pl.BlockSpec((None, H + 2, W, CinP), lambda n, hb: (n, 0, 0, 0)),
                # TODO(synk): constant-index weight blocks would ideally be
                # single-buffered (pipeline_mode=pl.Buffered(1)) to save VMEM on v7x.
                pl.BlockSpec((CinP, widthP), lambda n, hb: (0, 0)),          # w1
                pl.BlockSpec((1, widthP), lambda n, hb: (0, 0)),             # b1
                pl.BlockSpec((9, widthP, widthP), lambda n, hb: (0, 0, 0)),  # w2
                pl.BlockSpec((1, widthP), lambda n, hb: (0, 0)),             # b2
                pl.BlockSpec((widthP, CoutP), lambda n, hb: (0, 0)),         # w3
                pl.BlockSpec((1, CoutP), lambda n, hb: (0, 0)),              # b3
            ],
            out_specs=pl.BlockSpec((None, TH, W, CoutP),
                                   lambda n, hb: (n, hb, 0, 0)),
            scratch_shapes=[pltpu.VMEM((TH + 2, Wscr, widthP), jnp.bfloat16)],
        ),
        compiler_params=pltpu.CompilerParams(
            dimension_semantics=("parallel", "parallel"),
            vmem_limit_bytes=_default_vmem_limit(),
        ),
    )(xp, w1, b1, w2, b2, w3, b3)


# -----------------------------------------------------------------------------
# One-time (host-side) parameter preparation: fold BN into weights, lane-pad,
# cast to bf16, and lay conv2 out as 9 (in, out) matmul taps.
# -----------------------------------------------------------------------------
def fold_bn(gamma, beta, mean, var):
    scale = gamma / jnp.sqrt(var + BN_EPS)
    bias = beta - mean * scale
    return scale, bias


def prepare_params(w1, w2, w3, bn1, bn2, bn3):
    # w1: (width, Cin, 1, 1), w2: (width, width, 3, 3), w3: (Cout, width, 1, 1) [OIHW]
    width, Cin = w1.shape[0], w1.shape[1]
    Cout = w3.shape[0]
    CinP, widthP, CoutP = _round_up(Cin), _round_up(width), _round_up(Cout)

    s1, b1 = fold_bn(*bn1)
    s2, b2 = fold_bn(*bn2)
    s3, b3 = fold_bn(*bn3)

    # Fold BN scale into the conv output channels.
    w1m = jnp.transpose(w1[:, :, 0, 0]) * s1[None, :]                   # (Cin, width)
    w2m = jnp.transpose(w2, (2, 3, 1, 0)) * s2[None, None, None, :]     # (3,3,I,O)
    w3m = jnp.transpose(w3[:, :, 0, 0]) * s3[None, :]                   # (width, Cout)

    # Zero-pad channel axes to lane multiples; padded channels stay exactly 0
    # through the whole block and are sliced away in the NCHW wrapper.
    w1p = jnp.zeros((CinP, widthP), jnp.float32).at[:Cin, :width].set(w1m)
    w2p = jnp.zeros((3, 3, widthP, widthP), jnp.float32)
    w2p = w2p.at[:, :, :width, :width].set(w2m).reshape(9, widthP, widthP)
    w3p = jnp.zeros((widthP, CoutP), jnp.float32).at[:width, :Cout].set(w3m)

    b1p = jnp.zeros((1, widthP), jnp.float32).at[0, :width].set(b1)
    b2p = jnp.zeros((1, widthP), jnp.float32).at[0, :width].set(b2)
    b3p = jnp.zeros((1, CoutP), jnp.float32).at[0, :Cout].set(b3)

    return dict(
        w1=w1p.astype(jnp.bfloat16), b1=b1p,
        w2=w2p.astype(jnp.bfloat16), b2=b2p,
        w3=w3p.astype(jnp.bfloat16), b3=b3p,
        cin=Cin, cout=Cout, cin_pad=CinP,
    )


# -----------------------------------------------------------------------------
# NCHW wrapper (PyTorch-compatible I/O).  When chaining blocks stay in NHWC and
# call bottleneck_pallas_nhwc directly to avoid the transposes / f32 cast.
# -----------------------------------------------------------------------------
def bottleneck_pallas(x_nchw, params, *, stride=1, row_block=None):
    N, Cin, H, W = x_nchw.shape
    assert stride == 1 and Cin == params["cout"], \
        "only stride=1 / groups=1 / downsample=None (identity shortcut) is implemented"
    x = jnp.transpose(x_nchw, (0, 2, 3, 1))
    x = _pad_last(x, params["cin_pad"]).astype(jnp.bfloat16)
    out = bottleneck_pallas_nhwc(x, params["w1"], params["b1"],
                                 params["w2"], params["b2"],
                                 params["w3"], params["b3"],
                                 row_block=row_block)
    out = out[..., :params["cout"]].astype(jnp.float32)
    return jnp.transpose(out, (0, 3, 1, 2))


# -----------------------------------------------------------------------------
# Pure-JAX f32 reference (mirrors the PyTorch module, eval-mode BatchNorm)
# -----------------------------------------------------------------------------
def bottleneck_reference(x, p, *, stride=1):
    def bn(y, g, b, m, v):
        g, b, m, v = (t[None, :, None, None] for t in (g, b, m, v))
        return (y - m) / jnp.sqrt(v + BN_EPS) * g + b

    dn = ('NCHW', 'OIHW', 'NCHW')
    out = lax.conv_general_dilated(x, p['w1'], (1, 1), 'VALID', dimension_numbers=dn)
    out = jax.nn.relu(bn(out, p['g1'], p['be1'], p['m1'], p['v1']))
    out = lax.conv_general_dilated(out, p['w2'], (stride, stride),
                                   ((1, 1), (1, 1)), dimension_numbers=dn)
    out = jax.nn.relu(bn(out, p['g2'], p['be2'], p['m2'], p['v2']))
    out = lax.conv_general_dilated(out, p['w3'], (1, 1), 'VALID', dimension_numbers=dn)
    out = bn(out, p['g3'], p['be3'], p['m3'], p['v3'])
    return jax.nn.relu(out + x)


# -----------------------------------------------------------------------------
if __name__ == "__main__":
    # Small shapes consistent with the module: in_channel = out_channel * 4
    N, H, W = 2, 16, 16
    out_channel = 4
    groups, width_per_group = 1, 64
    width = int(out_channel * (width_per_group / 64.0)) * groups   # = 4
    Cin = out_channel * EXPANSION                                  # = 16
    Cout = out_channel * EXPANSION                                 # = 16
    stride = 1

    key = jax.random.PRNGKey(0)
    ks = jax.random.split(key, 16)

    x = jax.random.normal(ks[0], (N, Cin, H, W), jnp.float32)

    # PyTorch-shaped (OIHW) conv weights, deterministic init
    w1 = jax.random.normal(ks[1], (width, Cin, 1, 1), jnp.float32) * 0.2
    w2 = jax.random.normal(ks[2], (width, width, 3, 3), jnp.float32) * 0.2
    w3 = jax.random.normal(ks[3], (Cout, width, 1, 1), jnp.float32) * 0.2

    def bn_params(k, c):
        k1, k2, k3, k4 = jax.random.split(k, 4)
        gamma = 1.0 + 0.1 * jax.random.normal(k1, (c,), jnp.float32)
        beta = 0.1 * jax.random.normal(k2, (c,), jnp.float32)
        mean = 0.1 * jax.random.normal(k3, (c,), jnp.float32)
        var = 1.0 + 0.1 * jnp.abs(jax.random.normal(k4, (c,), jnp.float32))
        return gamma, beta, mean, var

    bn1 = bn_params(ks[4], width)
    bn2 = bn_params(ks[5], width)
    bn3 = bn_params(ks[6], Cout)

    params = prepare_params(w1, w2, w3, bn1, bn2, bn3)

    # row_block=8 -> grid (N, 2): exercises the spatial tiling / halo masking.
    out = bottleneck_pallas(x, params, stride=stride, row_block=8)
    out = jax.block_until_ready(out)

    g1, be1, m1, v1 = bn1
    g2, be2, m2, v2 = bn2
    g3, be3, m3, v3 = bn3
    ref_params = dict(w1=w1, w2=w2, w3=w3,
                      g1=g1, be1=be1, m1=m1, v1=v1,
                      g2=g2, be2=be2, m2=m2, v2=v2,
                      g3=g3, be3=be3, m3=m3, v3=v3)
    ref = jax.block_until_ready(bottleneck_reference(x, ref_params, stride=stride))

    assert out.shape == ref.shape == (N, Cout, H, W)
    max_err = float(jnp.max(jnp.abs(out - ref)))
    # bf16 operands / bf16 output with f32 accumulation vs. pure-f32 reference.
    assert jnp.allclose(out, ref, rtol=5e-2, atol=1e-1), f"max abs err = {max_err}"

    print("KERNEL_OK")
</pallas_src>

<mosaic_0001>
module attributes {stable_mosaic.version = 11 : i64} {
  func.func @_bottleneck_kernel(%arg0: i32, %arg1: i32, %arg2: memref<1x18x16x128xbf16, #tpu.memory_space<vmem>>, %arg3: memref<128x128xbf16, #tpu.memory_space<vmem>>, %arg4: memref<1x128xf32, #tpu.memory_space<vmem>>, %arg5: memref<9x128x128xbf16, #tpu.memory_space<vmem>>, %arg6: memref<1x128xf32, #tpu.memory_space<vmem>>, %arg7: memref<128x128xbf16, #tpu.memory_space<vmem>>, %arg8: memref<1x128xf32, #tpu.memory_space<vmem>>, %arg9: memref<1x8x16x128xbf16, #tpu.memory_space<vmem>>, %arg10: memref<10x24x128xbf16, #tpu.memory_space<vmem>>) attributes {dimension_semantics = [#tpu.dimension_semantics<parallel>, #tpu.dimension_semantics<parallel>], iteration_bounds = array<i64: 2, 2>, scalar_prefetch = 0 : i64, scratch_operands = 1 : i64, tpu.core_type = #tpu.core_type<tc>, window_params = [{transform_indices = @transform_0, window_bounds = array<i64: 1, 18, 16, 128>}, {pipeline_mode = #tpu.pipeline_mode<synchronous>, transform_indices = @transform_1, window_bounds = array<i64: 128, 128>}, {pipeline_mode = #tpu.pipeline_mode<synchronous>, transform_indices = @transform_2, window_bounds = array<i64: 1, 128>}, {pipeline_mode = #tpu.pipeline_mode<synchronous>, transform_indices = @transform_3, window_bounds = array<i64: 9, 128, 128>}, {pipeline_mode = #tpu.pipeline_mode<synchronous>, transform_indices = @transform_4, window_bounds = array<i64: 1, 128>}, {pipeline_mode = #tpu.pipeline_mode<synchronous>, transform_indices = @transform_5, window_bounds = array<i64: 128, 128>}, {pipeline_mode = #tpu.pipeline_mode<synchronous>, transform_indices = @transform_6, window_bounds = array<i64: 1, 128>}, {transform_indices = @transform_7, window_bounds = array<i64: 1, 8, 16, 128>}]} {
    %c8_i32 = arith.constant 8 : i32
    %0 = arith.muli %arg1, %c8_i32 : i32
    %1 = tpu.assume_multiple %0, 8 : i32
    %c0 = arith.constant 0 : index
    %2 = arith.index_cast %1 : i32 to index
    %c0_0 = arith.constant 0 : index
    %c0_1 = arith.constant 0 : index
    %3 = vector.load %arg2[%c0, %2, %c0_0, %c0_1] : memref<1x18x16x128xbf16, #tpu.memory_space<vmem>>, vector<1x10x16x128xbf16>
    %4 = vector.shape_cast %3 : vector<1x10x16x128xbf16> to vector<10x16x128xbf16>
    %5 = vector.shape_cast %4 : vector<10x16x128xbf16> to vector<160x128xbf16>
    %c0_2 = arith.constant 0 : index
    %c0_3 = arith.constant 0 : index
    %6 = vector.load %arg3[%c0_2, %c0_3] : memref<128x128xbf16, #tpu.memory_space<vmem>>, vector<128x128xbf16>
    %cst = arith.constant dense<0.000000e+00> : vector<160x128xf32>
    %7 = tpu.matmul %5, %6, %cst {dimension_numbers = #tpu.dot_dimension_numbers<[1], [0], [0], [1], [0, 0, 1, 1], [], []>} : vector<160x128xbf16>, vector<128x128xbf16>, vector<160x128xf32> -> vector<160x128xf32>
    %c0_4 = arith.constant 0 : index
    %c0_5 = arith.constant 0 : index
    %8 = vector.load %arg4[%c0_4, %c0_5] : memref<1x128xf32, #tpu.memory_space<vmem>>, vector<1x128xf32>
    %9 = vector.broadcast %8 : vector<1x128xf32> to vector<160x128xf32>
    %10 = arith.addf %7, %9 : vector<160x128xf32>
    %cst_6 = arith.constant 0.000000e+00 : f32
    %11 = vector.broadcast %cst_6 : f32 to vector<160x128xf32>
    %12 = arith.maximumf %10, %11 : vector<160x128xf32>
    %13 = tpu.iota {dimensions = array<i32: 0>} : vector<10x1x1xi32>
    %14 = vector.broadcast %1 : i32 to vector<10x1x1xi32>
    %15 = arith.addi %13, %14 : vector<10x1x1xi32>
    %c1_i32 = arith.constant 1 : i32
    %16 = vector.broadcast %c1_i32 : i32 to vector<10x1x1xi32>
    %17 = arith.cmpi sge, %15, %16 : vector<10x1x1xi32>
    %c16_i32 = arith.constant 16 : i32
    %18 = vector.broadcast %c16_i32 : i32 to vector<10x1x1xi32>
    %19 = arith.cmpi sle, %15, %18 : vector<10x1x1xi32>
    %20 = arith.andi %17, %19 : vector<10x1x1xi1>
    %21 = vector.shape_cast %12 : vector<160x128xf32> to vector<10x16x128xf32>
    %cst_7 = arith.constant 0.000000e+00 : f32
    %22 = vector.shape_cast %20 : vector<10x1x1xi1> to vector<10x1x1xi1>
    %23 = vector.broadcast %22 : vector<10x1x1xi1> to vector<10x16x128xi1>
    %24 = vector.broadcast %cst_7 : f32 to vector<10x16x128xf32>
    %25 = arith.select %23, %21, %24 : vector<10x16x128xi1>, vector<10x16x128xf32>
    %cst_8 = arith.constant 0.000000e+00 : bf16
    %26 = vector.broadcast %cst_8 : bf16 to vector<10x1x128xbf16>
    %c0_9 = arith.constant 0 : index
    %c0_10 = arith.constant 0 : index
    %c0_11 = arith.constant 0 : index
    %27 = vector.load %arg10[%c0_9, %c0_10, %c0_11] : memref<10x24x128xbf16, #tpu.memory_space<vmem>>, vector<10x1x128xbf16>
    tpu.vector_store %arg10[%c0_9, %c0_10, %c0_11], %26 {strides = array<i32>} : memref<10x24x128xbf16, #tpu.memory_space<vmem>>, vector<10x1x128xbf16>,
    %c0_12 = arith.constant 0 : index
    %c17 = arith.constant 17 : index
    %c0_13 = arith.constant 0 : index
    %28 = vector.load %arg10[%c0_12, %c17, %c0_13] : memref<10x24x128xbf16, #tpu.memory_space<vmem>>, vector<10x1x128xbf16>
    tpu.vector_store %arg10[%c0_12, %c17, %c0_13], %26 {strides = array<i32>} : memref<10x24x128xbf16, #tpu.memory_space<vmem>>, vector<10x1x128xbf16>,
    %29 = arith.truncf %25 : vector<10x16x128xf32> to vector<10x16x128xbf16>
    %c0_14 = arith.constant 0 : index
    %c1 = arith.constant 1 : index
    %c0_15 = arith.constant 0 : index
    %30 = vector.load %arg10[%c0_14, %c1, %c0_15] : memref<10x24x128xbf16, #tpu.memory_space<vmem>>, vector<10x16x128xbf16>
    tpu.vector_store %arg10[%c0_14, %c1, %c0_15], %29 {strides = array<i32>} : memref<10x24x128xbf16, #tpu.memory_space<vmem>>, vector<10x16x128xbf16>,
    %c0_16 = arith.constant 0 : index
    %c0_17 = arith.constant 0 : index
    %c0_18 = arith.constant 0 : index
    %31 = vector.load %arg10[%c0_16, %c0_17, %c0_18] : memref<10x24x128xbf16, #tpu.memory_space<vmem>>, vector<8x16x128xbf16>
    %32 = vector.shape_cast %31 : vector<8x16x128xbf16> to vector<128x128xbf16>
    %c0_19 = arith.constant 0 : index
    %c0_20 = arith.constant 0 : index
    %c0_21 = arith.constant 0 : index
    %33 = vector.load %arg5[%c0_19, %c0_20, %c0_21] : memref<9x128x128xbf16, #tpu.memory_space<vmem>>, vector<1x128x128xbf16>
    %34 = vector.shape_cast %33 : vector<1x128x128xbf16> to vector<128x128xbf16>
    %cst_22 = arith.constant dense<0.000000e+00> : vector<128x128xf32>
    %35 = tpu.matmul %32, %34, %cst_22 {dimension_numbers = #tpu.dot_dimension_numbers<[1], [0], [0], [1], [0, 0, 1, 1], [], []>} : vector<128x128xbf16>, vector<128x128xbf16>, vector<128x128xf32> -> vector<128x128xf32>
    %c0_23 = arith.constant 0 : index
    %c1_24 = arith.constant 1 : index
    %c0_25 = arith.constant 0 : index
    %36 = vector.load %arg10[%c0_23, %c1_24, %c0_25] : memref<10x24x128xbf16, #tpu.memory_space<vmem>>, vector<8x16x128xbf16>
    %37 = vector.shape_cast %36 : vector<8x16x128xbf16> to vector<128x128xbf16>
    %c1_26 = arith.constant 1 : index
    %c0_27 = arith.constant 0 : index
    %c0_28 = arith.constant 0 : index
    %38 = vector.load %arg5[%c1_26, %c0_27, %c0_28] : memref<9x128x128xbf16, #tpu.memory_space<vmem>>, vector<1x128x128xbf16>
    %39 = vector.shape_cast %38 : vector<1x128x128xbf16> to vector<128x128xbf16>
    %cst_29 = arith.constant dense<0.000000e+00> : vector<128x128xf32>
    %40 = tpu.matmul %37, %39, %cst_29 {dimension_numbers = #tpu.dot_dimension_numbers<[1], [0], [0], [1], [0, 0, 1, 1], [], []>} : vector<128x128xbf16>, vector<128x128xbf16>, vector<128x128xf32> -> vector<128x128xf32>
    %41 = arith.addf %35, %40 : vector<128x128xf32>
    %c0_30 = arith.constant 0 : index
    %c2 = arith.constant 2 : index
    %c0_31 = arith.constant 0 : index
    %42 = vector.load %arg10[%c0_30, %c2, %c0_31] : memref<10x24x128xbf16, #tpu.memory_space<vmem>>, vector<8x16x128xbf16>
    %43 = vector.shape_cast %42 : vector<8x16x128xbf16> to vector<128x128xbf16>
    %c2_32 = arith.constant 2 : index
    %c0_33 = arith.constant 0 : index
    %c0_34 = arith.constant 0 : index
    %44 = vector.load %arg5[%c2_32, %c0_33, %c0_34] : memref<9x128x128xbf16, #tpu.memory_space<vmem>>, vector<1x128x128xbf16>
    %45 = vector.shape_cast %44 : vector<1x128x128xbf16> to vector<128x128xbf16>
    %cst_35 = arith.constant dense<0.000000e+00> : vector<128x128xf32>
    %46 = tpu.matmul %43, %45, %cst_35 {dimension_numbers = #tpu.dot_dimension_numbers<[1], [0], [0], [1], [0, 0, 1, 1], [], []>} : vector<128x128xbf16>, vector<128x128xbf16>, vector<128x128xf32> -> vector<128x128xf32>
    %47 = arith.addf %41, %46 : vector<128x128xf32>
    %c1_36 = arith.constant 1 : index
    %c0_37 = arith.constant 0 : index
    %c0_38 = arith.constant 0 : index
    %48 = vector.load %arg10[%c1_36, %c0_37, %c0_38] : memref<10x24x128xbf16, #tpu.memory_space<vmem>>, vector<8x16x128xbf16>
    %49 = vector.shape_cast %48 : vector<8x16x128xbf16> to vector<128x128xbf16>
    %c3 = arith.constant 3 : index
    %c0_39 = arith.constant 0 : index
    %c0_40 = arith.constant 0 : index
    %50 = vector.load %arg5[%c3, %c0_39, %c0_40] : memref<9x128x128xbf16, #tpu.memory_space<vmem>>, vector<1x128x128xbf16>
    %51 = vector.shape_cast %50 : vector<1x128x128xbf16> to vector<128x128xbf16>
    %cst_41 = arith.constant dense<0.000000e+00> : vector<128x128xf32>
    %52 = tpu.matmul %49, %51, %cst_41 {dimension_numbers = #tpu.dot_dimension_numbers<[1], [0], [0], [1], [0, 0, 1, 1], [], []>} : vector<128x128xbf16>, vector<128x128xbf16>, vector<128x128xf32> -> vector<128x128xf32>
    %53 = arith.addf %47, %52 : vector<128x128xf32>
    %c1_42 = arith.constant 1 : index
    %c1_43 = arith.constant 1 : index
    %c0_44 = arith.constant 0 : index
    %54 = vector.load %arg10[%c1_42, %c1_43, %c0_44] : memref<10x24x128xbf16, #tpu.memory_space<vmem>>, vector<8x16x128xbf16>
    %55 = vector.shape_cast %54 : vector<8x16x128xbf16> to vector<128x128xbf16>
    %c4 = arith.constant 4 : index
    %c0_45 = arith.constant 0 : index
    %c0_46 = arith.constant 0 : index
    %56 = vector.load %arg5[%c4, %c0_45, %c0_46] : memref<9x128x128xbf16, #tpu.memory_space<vmem>>, vector<1x128x128xbf16>
    %57 = vector.shape_cast %56 : vector<1x128x128xbf16> to vector<128x128xbf16>
    %cst_47 = arith.constant dense<0.000000e+00> : vector<128x128xf32>
    %58 = tpu.matmul %55, %57, %cst_47 {dimension_numbers = #tpu.dot_dimension_numbers<[1], [0], [0], [1], [0, 0, 1, 1], [], []>} : vector<128x128xbf16>, vector<128x128xbf16>, vector<128x128xf32> -> vector<128x128xf32>
    %59 = arith.addf %53, %58 : vector<128x128xf32>
    %c1_48 = arith.constant 1 : index
    %c2_49 = arith.constant 2 : index
    %c0_50 = arith.constant 0 : index
    %60 = vector.load %arg10[%c1_48, %c2_49, %c0_50] : memref<10x24x128xbf16, #tpu.memory_space<vmem>>, vector<8x16x128xbf16>
    %61 = vector.shape_cast %60 : vector<8x16x128xbf16> to vector<128x128xbf16>
    %c5 = arith.constant 5 : index
    %c0_51 = arith.constant 0 : index
    %c0_52 = arith.constant 0 : index
    %62 = vector.load %arg5[%c5, %c0_51, %c0_52] : memref<9x128x128xbf16, #tpu.memory_space<vmem>>, vector<1x128x128xbf16>
    %63 = vector.shape_cast %62 : vector<1x128x128xbf16> to vector<128x128xbf16>
    %cst_53 = arith.constant dense<0.000000e+00> : vector<128x128xf32>
    %64 = tpu.matmul %61, %63, %cst_53 {dimension_numbers = #tpu.dot_dimension_numbers<[1], [0], [0], [1], [0, 0, 1, 1], [], []>} : vector<128x128xbf16>, vector<128x128xbf16>, vector<128x128xf32> -> vector<128x128xf32>
    %65 = arith.addf %59, %64 : vector<128x128xf32>
    %c2_54 = arith.constant 2 : index
    %c0_55 = arith.constant 0 : index
    %c0_56 = arith.constant 0 : index
    %66 = vector.load %arg10[%c2_54, %c0_55, %c0_56] : memref<10x24x128xbf16, #tpu.memory_space<vmem>>, vector<8x16x128xbf16>
    %67 = vector.shape_cast %66 : vector<8x16x128xbf16> to vector<128x128xbf16>
    %c6 = arith.constant 6 : index
    %c0_57 = arith.constant 0 : index
    %c0_58 = arith.constant 0 : index
    %68 = vector.load %arg5[%c6, %c0_57, %c0_58] : memref<9x128x128xbf16, #tpu.memory_space<vmem>>, vector<1x128x128xbf16>
    %69 = vector.shape_cast %68 : vector<1x128x128xbf16> to vector<128x128xbf16>
    %cst_59 = arith.constant dense<0.000000e+00> : vector<128x128xf32>
    %70 = tpu.matmul %67, %69, %cst_59 {dimension_numbers = #tpu.dot_dimension_numbers<[1], [0], [0], [1], [0, 0, 1, 1], [], []>} : vector<128x128xbf16>, vector<128x128xbf16>, vector<128x128xf32> -> vector<128x128xf32>
    %71 = arith.addf %65, %70 : vector<128x128xf32>
    %c2_60 = arith.constant 2 : index
    %c1_61 = arith.constant 1 : index
    %c0_62 = arith.constant 0 : index
    %72 = vector.load %arg10[%c2_60, %c1_61, %c0_62] : memref<10x24x128xbf16, #tpu.memory_space<vmem>>, vector<8x16x128xbf16>
    %73 = vector.shape_cast %72 : vector<8x16x128xbf16> to vector<128x128xbf16>
    %c7 = arith.constant 7 : index
    %c0_63 = arith.constant 0 : index
    %c0_64 = arith.constant 0 : index
    %74 = vector.load %arg5[%c7, %c0_63, %c0_64] : memref<9x128x128xbf16, #tpu.memory_space<vmem>>, vector<1x128x128xbf16>
    %75 = vector.shape_cast %74 : vector<1x128x128xbf16> to vector<128x128xbf16>
    %cst_65 = arith.constant dense<0.000000e+00> : vector<128x128xf32>
    %76 = tpu.matmul %73, %75, %cst_65 {dimension_numbers = #tpu.dot_dimension_numbers<[1], [0], [0], [1], [0, 0, 1, 1], [], []>} : vector<128x128xbf16>, vector<128x128xbf16>, vector<128x128xf32> -> vector<128x128xf32>
    %77 = arith.addf %71, %76 : vector<128x128xf32>
    %c2_66 = arith.constant 2 : index
    %c2_67 = arith.constant 2 : index
    %c0_68 = arith.constant 0 : index
    %78 = vector.load %arg10[%c2_66, %c2_67, %c0_68] : memref<10x24x128xbf16, #tpu.memory_space<vmem>>, vector<8x16x128xbf16>
    %79 = vector.shape_cast %78 : vector<8x16x128xbf16> to vector<128x128xbf16>
    %c8 = arith.constant 8 : index
    %c0_69 = arith.constant 0 : index
    %c0_70 = arith.constant 0 : index
    %80 = vector.load %arg5[%c8, %c0_69, %c0_70] : memref<9x128x128xbf16, #tpu.memory_space<vmem>>, vector<1x128x128xbf16>
    %81 = vector.shape_cast %80 : vector<1x128x128xbf16> to vector<128x128xbf16>
    %cst_71 = arith.constant dense<0.000000e+00> : vector<128x128xf32>
    %82 = tpu.matmul %79, %81, %cst_71 {dimension_numbers = #tpu.dot_dimension_numbers<[1], [0], [0], [1], [0, 0, 1, 1], [], []>} : vector<128x128xbf16>, vector<128x128xbf16>, vector<128x128xf32> -> vector<128x128xf32>
    %83 = arith.addf %77, %82 : vector<128x128xf32>
    %c0_72 = arith.constant 0 : index
    %c0_73 = arith.constant 0 : index
    %84 = vector.load %arg6[%c0_72, %c0_73] : memref<1x128xf32, #tpu.memory_space<vmem>>, vector<1x128xf32>
    %85 = vector.broadcast %84 : vector<1x128xf32> to vector<128x128xf32>
    %86 = arith.addf %83, %85 : vector<128x128xf32>
    %cst_74 = arith.constant 0.000000e+00 : f32
    %87 = vector.broadcast %cst_74 : f32 to vector<128x128xf32>
    %88 = arith.maximumf %86, %87 : vector<128x128xf32>
    %89 = arith.truncf %88 : vector<128x128xf32> to vector<128x128xbf16>
    %c0_75 = arith.constant 0 : index
    %c0_76 = arith.constant 0 : index
    %90 = vector.load %arg7[%c0_75, %c0_76] : memref<128x128xbf16, #tpu.memory_space<vmem>>, vector<128x128xbf16>
    %cst_77 = arith.constant dense<0.000000e+00> : vector<128x128xf32>
    %91 = tpu.matmul %89, %90, %cst_77 {dimension_numbers = #tpu.dot_dimension_numbers<[1], [0], [0], [1], [0, 0, 1, 1], [], []>} : vector<128x128xbf16>, vector<128x128xbf16>, vector<128x128xf32> -> vector<128x128xf32>
    %c0_78 = arith.constant 0 : index
    %c0_79 = arith.constant 0 : index
    %92 = vector.load %arg8[%c0_78, %c0_79] : memref<1x128xf32, #tpu.memory_space<vmem>>, vector<1x128xf32>
    %93 = vector.broadcast %92 : vector<1x128xf32> to vector<128x128xf32>
    %94 = arith.addf %91, %93 : vector<128x128xf32>
    %c1_i32_80 = arith.constant 1 : i32
    %95 = arith.addi %1, %c1_i32_80 : i32
    %c0_81 = arith.constant 0 : index
    %96 = arith.index_cast %95 : i32 to index
    %c0_82 = arith.constant 0 : index
    %c0_83 = arith.constant 0 : index
    %97 = vector.load %arg2[%c0_81, %96, %c0_82, %c0_83] : memref<1x18x16x128xbf16, #tpu.memory_space<vmem>>, vector<1x8x16x128xbf16>
    %98 = vector.shape_cast %97 : vector<1x8x16x128xbf16> to vector<8x16x128xbf16>
    %99 = vector.shape_cast %98 : vector<8x16x128xbf16> to vector<128x128xbf16>
    %100 = arith.extf %99 : vector<128x128xbf16> to vector<128x128xf32>
    %101 = arith.addf %94, %100 : vector<128x128xf32>
    %cst_84 = arith.constant 0.000000e+00 : f32
    %102 = vector.broadcast %cst_84 : f32 to vector<128x128xf32>
    %103 = arith.maximumf %101, %102 : vector<128x128xf32>
    %104 = arith.truncf %103 : vector<128x128xf32> to vector<128x128xbf16>
    %105 = vector.shape_cast %104 : vector<128x128xbf16> to vector<8x16x128xbf16>
    %c0_85 = arith.constant 0 : index
    %c0_86 = arith.constant 0 : index
    %c0_87 = arith.constant 0 : index
    %c0_88 = arith.constant 0 : index
    %106 = vector.load %arg9[%c0_85, %c0_86, %c0_87, %c0_88] : memref<1x8x16x128xbf16, #tpu.memory_space<vmem>>, vector<1x8x16x128xbf16>
    %107 = vector.shape_cast %106 : vector<1x8x16x128xbf16> to vector<8x16x128xbf16>
    %108 = vector.shape_cast %105 : vector<8x16x128xbf16> to vector<1x8x16x128xbf16>
    tpu.vector_store %arg9[%c0_85, %c0_86, %c0_87, %c0_88], %108 {strides = array<i32>} : memref<1x8x16x128xbf16, #tpu.memory_space<vmem>>, vector<1x8x16x128xbf16>,
    return
  }
  func.func @transform_0(%arg0: i32, %arg1: i32) -> (i32, i32, i32, i32) {
    %c0_i32 = arith.constant 0 : i32
    %c0_i32_0 = arith.constant 0 : i32
    %c0_i32_1 = arith.constant 0 : i32
    %c0_i32_2 = arith.constant 0 : i32
    return %arg0, %c0_i32, %c0_i32_0, %c0_i32_1 : i32, i32, i32, i32
  }
  func.func @transform_1(%arg0: i32, %arg1: i32) -> (i32, i32) {
    %c0_i32 = arith.constant 0 : i32
    %c0_i32_0 = arith.constant 0 : i32
    %c0_i32_1 = arith.constant 0 : i32
    return %c0_i32, %c0_i32_0 : i32, i32
  }
  func.func @transform_2(%arg0: i32, %arg1: i32) -> (i32, i32) {
    %c0_i32 = arith.constant 0 : i32
    %c0_i32_0 = arith.constant 0 : i32
    %c0_i32_1 = arith.constant 0 : i32
    return %c0_i32, %c0_i32_0 : i32, i32
  }
  func.func @transform_3(%arg0: i32, %arg1: i32) -> (i32, i32, i32) {
    %c0_i32 = arith.constant 0 : i32
    %c0_i32_0 = arith.constant 0 : i32
    %c0_i32_1 = arith.constant 0 : i32
    %c0_i32_2 = arith.constant 0 : i32
    return %c0_i32, %c0_i32_0, %c0_i32_1 : i32, i32, i32
  }
  func.func @transform_4(%arg0: i32, %arg1: i32) -> (i32, i32) {
    %c0_i32 = arith.constant 0 : i32
    %c0_i32_0 = arith.constant 0 : i32
    %c0_i32_1 = arith.constant 0 : i32
    return %c0_i32, %c0_i32_0 : i32, i32
  }
  func.func @transform_5(%arg0: i32, %arg1: i32) -> (i32, i32) {
    %c0_i32 = arith.constant 0 : i32
    %c0_i32_0 = arith.constant 0 : i32
    %c0_i32_1 = arith.constant 0 : i32
    return %c0_i32, %c0_i32_0 : i32, i32
  }
  func.func @transform_6(%arg0: i32, %arg1: i32) -> (i32, i32) {
    %c0_i32 = arith.constant 0 : i32
    %c0_i32_0 = arith.constant 0 : i32
    %c0_i32_1 = arith.constant 0 : i32
    return %c0_i32, %c0_i32_0 : i32, i32
  }
  func.func @transform_7(%arg0: i32, %arg1: i32) -> (i32, i32, i32, i32) {
    %c0_i32 = arith.constant 0 : i32
    %c0_i32_0 = arith.constant 0 : i32
    %c0_i32_1 = arith.constant 0 : i32
    return %arg0, %arg1, %c0_i32, %c0_i32_0 : i32, i32, i32, i32
  }
}

</mosaic_0001>

<bundles_post_ra>
// kernel: tpu_custom_call.1
= control target key start
LH: loop header
LB: loop body
LE: loop exit
PB: predicated region body
PF: predicated region fallthrough
CT: control target
= control target key end

     0   :  { %s7469_s0 = inlined_call_operand.hbm [shape: bf16[2,18,16,128], index: 0, kind: input, shape index: {}]   ;;  %s7470_s1 = inlined_call_operand.hbm [shape: bf16[128,128], index: 1, kind: input, shape index: {}]   ;;  %s7471_s2 = inlined_call_operand.vmem [shape: f32[1,128], index: 2, kind: input, shape index: {}]   ;;  %s7472_s3 = inlined_call_operand.hbm [shape: bf16[9,128,128], index: 3, kind: input, shape index: {}]   ;;  %s7473_s4 = inlined_call_operand.vmem [shape: f32[1,128], index: 4, kind: input, shape index: {}]   ;;  %s7474_s5 = inlined_call_operand.hbm [shape: bf16[128,128], index: 5, kind: input, shape index: {}]   ;;  %s7475_s6 = inlined_call_operand.vmem [shape: f32[1,128], index: 6, kind: input, shape index: {}]   ;;  %s7476_s7 = inlined_call_operand.hbm [shape: bf16[2,16,16,128], index: 7, kind: output, shape index: {}]  }
   0x1   :  { %7488 = sst [smem:[#allocation48_spill]] %s7470_s1 }
   0x2   :  { %7489 = sst [smem:[#allocation49_spill]] %s7472_s3 }
   0x3   :  { %7490 = sst [smem:[#allocation50_spill]] %s7474_s5 }
   0x4   :  { %7491 = sst [smem:[#allocation51_spill]] %s7476_s7 }
   0x5   :  { %12 = vsyncpa [#allocation4], 0 }
   0x6   :  { %14 = vsyncpa [#allocation4 + $0x1], 0 }
   0x7   :  { %15 = vsyncpa [#allocation7], 0 }
   0x8   :  { %16 = vsyncpa [#allocation10], 0 }
   0x9   :  { %17 = vsyncpa [#allocation5], 0 }
   0xa   :  { %19 = vsyncpa [#allocation5 + $0x1], 0  ;;  %s5974_s24 = smov 0   ;;  %s5976_s25 = smov 0  }
   0xb   :  { %s5978_s26 = smov 0   ;;  %s5980_s27 = smov 0  }
   0xc   :  { %s5982_s28 = smov 0   ;;  %s5984_s29 = smov 0  }
   0xd   :  { %s5986_s30 = smov 0   ;;  %s5988_s8 = smov 0  }
   0xe   :  { %s5990_s9 = smov 0   ;;  %s5992_s10 = smov 0  }
   0xf   :  { %s5994_s11 = smov 0  }
  0x10 LB: > { %7492 = sst [smem:[#allocation16_spill]] %s5883_s24  ;;  %s4475_s12 = sadd.s32 4294967295, %s5923_s11   ;;  %s5923_s11 = sphi %s5994_s11, %s25_s11   ;;  %s5919_s10 = sphi %s5992_s10, %s7612_s10   ;;  %s5915_s9 = sphi %s5990_s9, %s7603_s9   ;;  %s5911_s8 = sphi %s5988_s8, %s7611_s8   ;;  %s5907_s30 = sphi %s5986_s30, %s7602_s30   ;;  %s5903_s29 = sphi %s5984_s29, %s7610_s29   ;;  %s5899_s28 = sphi %s5982_s28, %s7609_s28   ;;  %s5895_s27 = sphi %s5980_s27, %s7608_s27   ;;  %s5891_s26 = sphi %s5978_s26, %s7607_s26   ;;  %s5887_s25 = sphi %s5976_s25, %s7606_s25   ;;  %s5883_s24 = sphi %s5974_s24, %s7605_s24  }
  0x11   : > { %7493 = sst [smem:[#allocation17_spill]] %s5911_s8  ;;  %s4476_s13 = sadd.s32 4294967294, %s5923_s11  }
  0x12   : > { %7494 = sst [smem:[#allocation18_spill]] %s5915_s9  ;;  %p57_p0 = scmp.ne.s32.totalorder %s5899_s28, %s5895_s27 }
  0x13   : > { %p6030_p1 = scmp.eq.s32.totalorder %s4475_s12, 0  ;;  %p208_p2 = scmp.ne.s32.totalorder %s5891_s26, %s5887_s25 }
  0x14   : > { %p209_p4 = scmp.eq.s32.totalorder %s4475_s12, 3  ;;  %p214_p5 = scmp.ne.s32.totalorder %s5887_s25, %s5883_s24 }
  0x15   : > { %p6039_p3 = por %p6030_p1, %p57_p0  ;;  %p215_p6 = scmp.eq.s32.totalorder %s4476_s13, 3 }
  0x16   : > { %p6045_p7 = por %p209_p4, %p208_p2  ;;  %p4477_p8 = scmp.ge.s32.totalorder %s5923_s11, 1 }
  0x17   : > { %p6050_p9 = por %p215_p6, %p214_p5  ;;  %p222_p10 = scmp.lt.s32.totalorder %s5923_s11, 5 }
  0x18   : > { %s7497_s17 = scalar_select %p6045_p7, 1, 0 }
  0x19   : > { %s7499_s18 = scalar_select %p6050_p9, 1, 0 }
  0x1a   : > { %7498 = sst [smem:[#allocation19_spill]] %s7497_s17  ;;  %p6055_p11 = pnand %p4477_p8, %p222_p10 }
  0x1b   : > { %7500 = sst [smem:[#allocation20_spill]] %s7499_s18  ;;  %s5925_s20 = smov [#allocation6]  }
  0x1c   : > { %s234_s21 = sshll.u32 %s5925_s20, 4  ;;  %p5445_p12 = pneg %p6055_p11  ;;  %s235_s21 = int_to_ptr.vmem [resolvable:$true] %s234_s21 }
  0x1d   : > { %s5926_s23 = smov [#allocation8]   ;;  %s5927_s12 = smov [#allocation9]  }
  0x1e   : > { %p6063_p13 = pnand %p5445_p12, %p6030_p1  ;;  %s250_s27 = sshll.u32 %s5926_s23, 4  ;;  %s251_s27 = int_to_ptr.vmem [resolvable:$true] %s250_s27 }
  0x1f   : > { %s266_s13 = sshll.u32 %s5927_s12, 4  ;;  %s5700_s15 = scalar_lea.vmem %s235_s21, 1024  ;;  %s267_s13 = int_to_ptr.vmem [resolvable:$true] %s266_s13 }
  0x20   : > { %p5691_p0 = pneg %p6063_p13  ;;  %p5701_p2 = scmp.ne.s32.totalorder %s235_s21, %s5700_s15 }
  0x21   : > { %p5708_p6 = scmp.lt.s32.totalorder %s235_s21, %s235_s21  ;;  %p5709_p8 = scmp.lt.s32.totalorder %s5700_s15, %s5700_s15 }
  0x22   : > { %p5703_p4 = pnand %p5701_p2, %p5691_p0 }
  0x23   : > { %p5710_p10 = por %p5709_p8, %p5708_p6 }
  0x24   : > { %p5704_p5 = pneg %p5703_p4 }
  0x26   : > { %p5711_p12 = pnand %p5710_p10, %p5704_p5 }
  0x28   : > { %5714 = shalt.err (!%p5711_p12)
}
  0x29   : > { %s7480_s20 = smov 64   ;;  %s7481_s23 = smov 4  }
  0x2a   : > { %s7503_s1 = sld [smem:[#allocation48_spill]]  ;;  %s5726_s24 = scalar_lea.vmem %s251_s27, 9216 }
  0x2b   : > { %p5727_p2 = scmp.ne.s32.totalorder %s251_s27, %s5726_s24  ;;  %p5734_p5 = scmp.lt.s32.totalorder %s251_s27, %s251_s27 }
  0x2c   : > { %p5735_p8 = scmp.lt.s32.totalorder %s5726_s24, %s5726_s24 }
  0x2d   : > { %p5729_p4 = pnand %p5727_p2, %p5691_p0 }
  0x2e   : > { %p5736_p10 = por %p5735_p8, %p5734_p5 }
  0x2f   : > { %p5730_p6 = pneg %p5729_p4 }
  0x30   : > { %5448 = dma.hbm_to_vmem [thread:$0]  (!%p6063_p13), %s7503_s1, 1024, %s235_s21, [#allocation7], %s7480_s20, %s7480_s20, %s7481_s23  }
  0x31   : > { %p5737_p12 = pnand %p5736_p10, %p5730_p6 }
  0x33   : > { %5740 = shalt.err (!%p5737_p12)
}
  0x34   : > { %s7504_s3 = sld [smem:[#allocation49_spill]]  ;;  %s5752_s18 = scalar_lea.vmem %s267_s13, 1024 }
  0x35   : > { %p5753_p9 = scmp.ne.s32.totalorder %s267_s13, %s5752_s18  ;;  %p5760_p5 = scmp.lt.s32.totalorder %s267_s13, %s267_s13 }
  0x36   : > { %p5761_p6 = scmp.lt.s32.totalorder %s5752_s18, %s5752_s18 }
  0x37   : > { %p5755_p2 = pnand %p5753_p9, %p5691_p0 }
  0x38   : > { %p5762_p8 = por %p5761_p6, %p5760_p5 }
  0x39   : > { %p5756_p4 = pneg %p5755_p2 }
  0x3a   : > { %5451 = dma.hbm_to_vmem [thread:$0]  (!%p6063_p13), %s7504_s3, 9216, %s251_s27, [#allocation7], %s7480_s20, %s7480_s20, %s7481_s23  }
  0x3b   : > { %p5763_p10 = pnand %p5762_p8, %p5756_p4 }
  0x3d   : > { %5766 = shalt.err (!%p5763_p10)
}
  0x3e   : > { %s7505_s5 = sld [smem:[#allocation50_spill]]  ;;  %s34_s21 = sadd.s32 1, %s5915_s9 }
  0x3f   : > { %p35_p9 = scmp.ge.s32.totalorder %s34_s21, 2  ;;  %s37_s22 = sadd.s32 1, %s5919_s10 }
  0x40   : > { %s44_s27 = sadd.s32 1, %s5903_s29  ;;  %p51_p0 = scmp.ne.s32.totalorder %s5903_s29, %s5899_s28 }
  0x41   : > { %s7614_s21 = smov (%p35_p9, %s34_s21), 0  ;;  %s7616_s22 = smov (!%p35_p9, %s37_s22), %s5919_s10 }
  0x42   : > { %7506 = sst [smem:[#allocation21_spill]] %s7614_s21  ;;  %p52_p12 = scmp.eq.s32.totalorder %s5923_s11, 0 }
  0x43   : > { %s194_s12 = ssub.s32 %s5915_s9, %s7614_s21  ;;  %p39_p2 = scmp.ge.s32.totalorder %s7616_s22, 2 }
  0x44   : > { %5454 = dma.hbm_to_vmem [thread:$0]  (!%p6063_p13), %s7505_s5, 1024, %s267_s13, [#allocation10], %s7480_s20, %s7480_s20, %s7481_s23  }
  0x45   : > { %p5466_p4 = scmp.lt.s32.totalorder %s5923_s11, 4  ;;  %p6114_p13 = por %p52_p12, %p51_p0 }
  0x46   : > { %s283_s15 = sand.u32 1, %s5903_s29   ;;  %s7618_s22 = smov (%p39_p2, %s7616_s22), 0 }
  0x47   : > { %7508 = sst [smem:[#allocation22_spill]] %s7618_s22  ;;  %s5426_s18 = smul.u32 144, %s283_s15 }
  0x48   : > { %s41_s7 = ssub.s32 %s5919_s10, %s7618_s22  ;;  %s5427_s24 = smul.u32 2304, %s5919_s10 }
  0x49   : > { %p42_p5 = scmp.eq.s32.totalorder %s41_s7, 0  ;;  %s195_s20 = sor.u32 %s194_s12, %s41_s7 }
  0x4a   : > { %p196_p6 = scmp.eq.s32.totalorder %s195_s20, 0  ;;  %s7509_s1 = sadd.s32 1, %s5891_s26 }
  0x4b   : > { %s6125_s23 = scalar_select %p42_p5, %s5903_s29, %s44_s27  }
  0x4c   : > { %s6130_s3 = scalar_select %p196_p6, %s5891_s26, %s7509_s1  }
  0x4d   : > { %s293_s9 = scalar_lea.hbm %s7469_s0, %s5427_s24  ;;  %s287_s17 = scalar_lea.vmem [#allocation3], %s5426_s18 }
  0x4e   : > { %s294_s8 = sshll.u32 %s287_s17, 4  ;;  %p6139_p8 = pnand %p5466_p4, %p6114_p13  ;;  %s295_s8 = int_to_ptr.vmem [resolvable:$true] %s294_s8 }
  0x4f   : > { %s284_s20 = scalar_lea.sflag [#allocation4], %s283_s15  ;;  %s5780_s27 = scalar_lea.vmem %s295_s8, 2304 }
  0x50   : > { %p5769_p10 = pneg %p6139_p8  ;;  %p5781_p9 = scmp.ne.s32.totalorder %s295_s8, %s5780_s27 }
  0x51   : > { %s5930_s1 = smov [#allocation3]  }
  0x52   : > { %p5783_p0 = pnand %p5781_p9, %p5769_p10  ;;  %s5785_s5 = sshll.u32 %s5930_s1, 4  ;;  %s5786_s5 = int_to_ptr.vmem [resolvable:$false] %s5785_s5 }
  0x53   : > { %s5787_s21 = scalar_lea.vmem %s5786_s5, 4608  ;;  %p5788_p2 = scmp.lt.s32.totalorder %s295_s8, %s5786_s5 }
  0x54   : > { %p5784_p12 = pneg %p5783_p0  ;;  %p5789_p5 = scmp.lt.s32.totalorder %s5787_s21, %s5780_s27 }
  0x56   : > { %p5790_p6 = por %p5789_p5, %p5788_p2 }
  0x58   : > { %p5791_p7 = pnand %p5790_p6, %p5784_p12 }
  0x5a   : > { %5794 = shalt.err (!%p5791_p7)
}
  0x5b   : > { %s7511_s17 = smov 4   ;;  %s7512_s12 = smov 64  }
  0x5c   : > { %5458 = dma.hbm_to_vmem [thread:$0]  (!%p6139_p8), %s293_s9, 2304, %s295_s8, %s284_s20, %s7512_s12, %s7512_s12, %s7511_s17  }
  0x5d   : > { %306 = sbr.rel (%p6055_p11) target bundleno = 1011 (0x3f3), region = 48 }
  0x62   : > { %s308_s13 = sand.u32 1, %s5899_s28  }
  0x63   : > { %s5428_s15 = smul.u32 144, %s308_s13  ;;  %s309_s18 = scalar_lea.sflag [#allocation4], %s308_s13 }
  0x65   : > { %s312_s7 = scalar_lea.vmem [#allocation3], %s5428_s15 }
  0x66   : > { %5866 = dma.done.wait (%p6039_p3), %s309_s18, 2304  }
  0x67   : > { %5868 = vsyncadd (%p6039_p3), %s309_s18, 4294964992 }
  0x68   : > { %5870 = dma.done.wait (%p6030_p1), [#allocation7], 10240  }
  0x69   : > { %5872 = vsyncadd (%p6030_p1), [#allocation7], 4294957056 }
  0x6a   : > { %5874 = dma.done.wait (%p6030_p1), [#allocation10], 1024  }
  0x6b   : > { %5876 = vsyncadd (%p6030_p1), [#allocation10], 4294966272  ;;  %v5566_v0 = vld [vmem:[#allocation6 + $0x38] sm:$0xff]   ;;  %v5567_v1 = vld [vmem:[#allocation6 + $0x30] sm:$0xff]   ;;  %s4750_s8 = sshll.u32 %s5907_s30, 6  ;;  %vm725_vm0 = vcmask 1040384  }
  0x6c   : > { %5054 = vmatprep.subr.bf16.mxu0 %v5566_v0  ;;  %v5568_v2 = vld [vmem:[#allocation6 + $0x28] sm:$0xff]   ;;  %s6166_s9 = scalar_lea.vmem %s312_s7, %s4750_s8 [#allocation3]  ;;  %v5569_v3 = vld [vmem:[#allocation6 + $0x20] sm:$0xff]   ;;  %v5570_v5 = vld [vmem:[#allocation6 + $0x18] sm:$0xff]   ;;  %vm726_vm1 = vsmask.f32 256  ;;  %s4488_s14 = sshll.u32 %s5907_s30, 3 }
  0x6d   : > { %5055 = vmatpush3.bf16.msra.mxu0 %v5566_v0  ;;  %v5574_v4 = vld [vmem:[%s6166_s9] sm:$0xff]   ;;  %v5571_v6 = vld [vmem:[#allocation6 + $0x10] sm:$0xff]   ;;  %v5573_v8 = vld [vmem:[#allocation6] sm:$0xff]   ;;  %vm758_vm3 = vsmask.f32 7938  ;;  %vm1052_vm10 = vcmask 1043456  }
  0x6e   : > { %5056 = vmatprep.subr.bf16.mxu0 %v5567_v1  ;;  %5070 = vmatprep.mubr.bf16.mxu0 %v5574_v4  ;;  %v5572_v7 = vld [vmem:[#allocation6 + $0x8] sm:$0xff]   ;;  %v5575_v9 = vld [vmem:[%s6166_s9 + $0x8] sm:$0xff]   ;;  %v5576_v10 = vld [vmem:[%s6166_s9 + $0x10] sm:$0xff]   ;;  %s352_s21 = sand.u32 1, %s5887_s25   ;;  %s7595_s13 = sld [smem:[#allocation17_spill]] }
  0x6f   : > { %v5577_v11 = vld [vmem:[%s6166_s9 + $0x18] sm:$0xff]   ;;  %v5578_v12 = vld [vmem:[%s6166_s9 + $0x20] sm:$0xff]   ;;  %v5579_v13 = vld [vmem:[%s6166_s9 + $0x28] sm:$0xff]   ;;  %s4487_s17 = sshll.u32 %s352_s21, 6  ;;  %s4788_s15 = sshll.u32 %s5907_s30, 4 }
  0x70   : > { %v5580_v14 = vld [vmem:[%s6166_s9 + $0x30] sm:$0xff]   ;;  %v5581_v15 = vld [vmem:[%s6166_s9 + $0x38] sm:$0xff]   ;;  %v5582_v16 = vld [vmem:[%s6166_s9 + $0x40] sm:$0xff]   ;;  %s7373_s12 = scalar_lea.vmem [#allocation11], %s4487_s17  ;;  %s7596_s30 = sld [smem:[#allocation19_spill]] }
  0x71   : > { %5057 = vmatpush3.bf16.msra.mxu0 %v5567_v1  ;;  %v5583_v17 = vld [vmem:[%s6166_s9 + $0x48] sm:$0xff]   ;;  %v5584_v19 = vld [vmem:[#allocation8 + $0xb8] sm:$0xff]   ;;  %vm6179_vm2 = vmand %vm725_vm0, %vm726_vm1  ;;  %s7597_s19 = sld [smem:[#allocation51_spill]]  ;;  %s7409_s24 = scalar_lea.sflag [#allocation5], %s352_s21 }
  0x72   : > { %5058 = vmatprep.subr.bf16.mxu0 %v5568_v2  ;;  %v731_v18 = vld [vmem:[#allocation2 + $0xc] sm:$0x1]  ;;  %vm6186_vm4 = vmand %vm725_vm0, %vm758_vm3  ;;  %v728_v23 = vld [vmem:[#allocation2] sm:$0x1]  ;;  %vm850_vm0 = vsmask.f32 4368 }
  0x73   : > { %v732_v21 = vsel %vm6179_vm2, 0, %v731_v18  ;;  %v729_v24 = vsel %vm6179_vm2, 0, %v728_v23  ;;  %v763_v25 = vld [vmem:[#allocation2 + $0x14] sm:$0x1]  ;;  %v5586_v27 = vld [vmem:[#allocation8 + $0xb0] sm:$0xff]   ;;  %v5588_v36 = vld [vmem:[#allocation8 + $0xa8] sm:$0xff]  }
  0x74   : > { %733 = vst [vmem:[#allocation2 + $0xc] sm:$0x1] %v732_v21  ;;  %730 = vst [vmem:[#allocation2] sm:$0x1] %v729_v24  ;;  %v5585_v26 = vld [vmem:[#allocation8 + $0x78] sm:$0xff]   ;;  %v764_v28 = vsel %vm6186_vm4, 0, %v763_v25 }
  0x75   : > { %5059 = vmatpush3.bf16.msra.mxu0 %v5568_v2  ;;  %765 = vst [vmem:[#allocation2 + $0x14] sm:$0x1] %v764_v28  ;;  %5090 = vmatprep.subr.bf16.mxu1 %v5585_v26  ;;  %v760_v29 = vld [vmem:[#allocation2 + $0x8] sm:$0x1]  ;;  %v737_v31 = vld [vmem:[#allocation2 + $0x24] sm:$0x1] }
  0x76   : > { %5060 = vmatprep.subr.bf16.mxu0 %v5569_v3  ;;  %5091 = vmatpush3.bf16.msra.mxu1 %v5585_v26  ;;  %v761_v30 = vsel %vm6186_vm4, 0, %v760_v29  ;;  %v738_v32 = vsel %vm6179_vm2, 0, %v737_v31  ;;  %v734_v33 = vld [vmem:[#allocation2 + $0x18] sm:$0x1]  ;;  %v5587_v35 = vld [vmem:[#allocation8 + $0x70] sm:$0xff]   ;;  %v5589_v37 = vld [vmem:[#allocation8 + $0x68] sm:$0xff]  }
  0x77   : > { %762 = vst [vmem:[#allocation2 + $0x8] sm:$0x1] %v761_v30  ;;  %739 = vst [vmem:[#allocation2 + $0x24] sm:$0x1] %v738_v32  ;;  %v735_v34 = vsel %vm6179_vm2, 0, %v734_v33  ;;  %5092 = vmatprep.subr.bf16.mxu1 %v5587_v35  ;;  %v5590_v38 = vld [vmem:[#allocation8 + $0xa0] sm:$0xff]  }
  0x78   : > { %736 = vst [vmem:[#allocation2 + $0x18] sm:$0x1] %v735_v34  ;;  %v769_v39 = vld [vmem:[#allocation2 + $0x2c] sm:$0x1]  ;;  %v766_v41 = vld [vmem:[#allocation2 + $0x20] sm:$0x1] }
  0x79   : > { %5061 = vmatpush3.bf16.msra.mxu0 %v5569_v3  ;;  %v770_v40 = vsel %vm6186_vm4, 0, %v769_v39  ;;  %v767_v42 = vsel %vm6186_vm4, 0, %v766_v41  ;;  %v743_v43 = vld [vmem:[#allocation2 + $0x3c] sm:$0x1]  ;;  %v5592_v46 = vld [vmem:[#allocation8 + $0x98] sm:$0xff]   ;;  %v5594_v54 = vld [vmem:[#allocation8 + $0x90] sm:$0xff]  }
  0x7a   : > { %5062 = vmatprep.subr.bf16.mxu0 %v5570_v5  ;;  %5093 = vmatpush3.bf16.msra.mxu1 %v5587_v35  ;;  %771 = vst [vmem:[#allocation2 + $0x2c] sm:$0x1] %v770_v40  ;;  %768 = vst [vmem:[#allocation2 + $0x20] sm:$0x1] %v767_v42  ;;  %v5591_v44 = vld [vmem:[#allocation8 + $0x60] sm:$0xff]   ;;  %v744_v45 = vsel %vm6179_vm2, 0, %v743_v43 }
  0x7b   : > { %5094 = vmatprep.subr.bf16.mxu1 %v5589_v37  ;;  %745 = vst [vmem:[#allocation2 + $0x3c] sm:$0x1] %v744_v45  ;;  %v740_v47 = vld [vmem:[#allocation2 + $0x30] sm:$0x1]  ;;  %v775_v49 = vld [vmem:[#allocation2 + $0x44] sm:$0x1] }
  0x7c   : > { %v741_v48 = vsel %vm6179_vm2, 0, %v740_v47  ;;  %v776_v50 = vsel %vm6186_vm4, 0, %v775_v49  ;;  %v772_v51 = vld [vmem:[#allocation2 + $0x38] sm:$0x1]  ;;  %v5593_v53 = vld [vmem:[#allocation8 + $0x58] sm:$0xff]   ;;  %v5595_v55 = vld [vmem:[#allocation8 + $0x50] sm:$0xff]  }
  0x7d   : > { %5063 = vmatpush3.bf16.msra.mxu0 %v5570_v5  ;;  %742 = vst [vmem:[#allocation2 + $0x30] sm:$0x1] %v741_v48  ;;  %777 = vst [vmem:[#allocation2 + $0x44] sm:$0x1] %v776_v50  ;;  %v773_v52 = vsel %vm6186_vm4, 0, %v772_v51  ;;  %v5596_v56 = vld [vmem:[#allocation8 + $0x88] sm:$0xff]  }
  0x7e   : > { %5064 = vmatprep.subr.bf16.mxu0 %v5571_v6  ;;  %5095 = vmatpush3.bf16.msra.mxu1 %v5589_v37  ;;  %774 = vst [vmem:[#allocation2 + $0x38] sm:$0x1] %v773_v52  ;;  %v749_v57 = vld [vmem:[#allocation2 + $0x54] sm:$0x1]  ;;  %v746_v59 = vld [vmem:[#allocation2 + $0x48] sm:$0x1] }
  0x7f   : > { %5096 = vmatprep.subr.bf16.mxu1 %v5591_v44  ;;  %v750_v58 = vsel %vm6179_vm2, 0, %v749_v57  ;;  %v747_v60 = vsel %vm6179_vm2, 0, %v746_v59  ;;  %v5597_v61 = vld [vmem:[#allocation8 + $0x48] sm:$0xff]   ;;  %v5598_v62 = vld [vmem:[#allocation8 + $0x80] sm:$0xff]   ;;  %v778_v1 = vld [vmem:[#allocation2 + $0x50] sm:$0x1] }
  0x80   : > { %751 = vst [vmem:[#allocation2 + $0x54] sm:$0x1] %v750_v58  ;;  %748 = vst [vmem:[#allocation2 + $0x48] sm:$0x1] %v747_v60  ;;  %v781_v63 = vld [vmem:[#allocation2 + $0x5c] sm:$0x1] }
  0x81   : > { %5065 = vmatpush3.bf16.msra.mxu0 %v5571_v6  ;;  %v782_v0 = vsel %vm6186_vm4, 0, %v781_v63  ;;  %v779_v2 = vsel %vm6186_vm4, 0, %v778_v1  ;;  %v5599_v3 = vld [vmem:[#allocation8 + $0x40] sm:$0xff]   ;;  %v6220_v4 = vld [vmem:[#allocation8 + $0x138] sm:$0xff]   ;;  %v755_v6 = vld [vmem:[#allocation2 + $0x6c] sm:$0x1] }
  0x82   : > { %5066 = vmatprep.subr.bf16.mxu0 %v5572_v7  ;;  %5097 = vmatpush3.bf16.msra.mxu1 %v5591_v44  ;;  %783 = vst [vmem:[#allocation2 + $0x5c] sm:$0x1] %v782_v0  ;;  %780 = vst [vmem:[#allocation2 + $0x50] sm:$0x1] %v779_v2  ;;  %v6223_v5 = vld [vmem:[#allocation8 + $0x38] sm:$0xff]   ;;  %s4745_s18 = sshll.u32 %s7595_s13, 5 }
  0x83   : > { %5098 = vmatprep.subr.bf16.mxu1 %v5593_v53  ;;  %v1054_v2 = vld [vmem:[#allocation2] sm:$0xf]  ;;  %s4350_s7 = sadd.s32 %s4788_s15, %s4745_s18  ;;  %p7598_p3 = scmp.ne.s32.totalorder %s7596_s30, 0 }
  0x84   : > { %s4746_s8 = sshll.u32 %s4350_s7, 6  ;;  %s5931_s27 = smov [#allocation11]  }
  0x85   : > { %5067 = vmatpush3.bf16.msra.mxu0 %v5572_v7  ;;  %v756_v7 = vsel %vm6179_vm2, 0, %v755_v6  ;;  %s7401_s22 = scalar_lea.hbm %s7597_s19, %s4746_s8  ;;  %s5799_s1 = sshll.u32 %s5931_s27, 4  ;;  %s5800_s1 = int_to_ptr.vmem [resolvable:$false] %s5799_s1 }
  0x86   : > { %5068 = vmatprep.subr.bf16.mxu0 %v5573_v8  ;;  %5099 = vmatpush3.bf16.msra.mxu1 %v5593_v53  ;;  %757 = vst [vmem:[#allocation2 + $0x6c] sm:$0x1] %v756_v7  ;;  %s5801_s5 = scalar_lea.vmem %s5800_s1, 2048 }
  0x87   : > { %5100 = vmatprep.subr.bf16.mxu1 %v5595_v55 }
  0x89   : > { %5069 = vmatpush3.bf16.msra.mxu0 %v5573_v8  ;;  %v752_v8 = vld [vmem:[#allocation2 + $0x60] sm:$0x1] }
  0x8a   : > { %5154 = vmatprep.subr.bf16.mxu0 %v5584_v19  ;;  %5101 = vmatpush3.bf16.msra.mxu1 %v5595_v55  ;;  %v1061_v55 = vld [vmem:[#allocation2 + $0xc] sm:$0xf] }
  0x8b   : > { %5102 = vmatprep.subr.bf16.mxu1 %v5597_v61 }
  0x8c   : > { %5071 = vmatmul.mubr.bf16.vlgmr.msra.gmra.mxu0 %v5575_v9  ;;  %v753_v9 = vsel %vm6179_vm2, 0, %v752_v8 }
  0x8d   : > { %5074 = vmatprep.mubr.bf16.mxu0 %v5576_v10  ;;  %5155 = vmatpush3.bf16.msra.mxu0 %v5584_v19  ;;  %754 = vst [vmem:[#allocation2 + $0x60] sm:$0x1] %v753_v9  ;;  %v787_v10 = vld [vmem:[#allocation2 + $0x74] sm:$0x1] }
  0x8e   : > { %5156 = vmatprep.subr.bf16.mxu0 %v5586_v27  ;;  %5103 = vmatpush3.bf16.msra.mxu1 %v5597_v61 }
  0x8f   : > { %5104 = vmatprep.subr.bf16.mxu1 %v5599_v3 }
  0x91   : > { %5157 = vmatpush3.bf16.msra.mxu0 %v5586_v27 }
  0x92   : > { %5158 = vmatprep.subr.bf16.mxu0 %v5588_v36  ;;  %5105 = vmatpush3.bf16.msra.mxu1 %v5599_v3 }
  0x93   : > { %5122 = vmatprep.subr.bf16.mxu1 %v6223_v5 }
  0x94   : > { %5075 = vmatmul.mubr.bf16.gmra.mxu0 %v5577_v11  ;;  %v788_v11 = vsel %vm6186_vm4, 0, %v787_v10 }
  0x95   : > { %5078 = vmatprep.mubr.bf16.mxu0 %v5578_v12  ;;  %5159 = vmatpush3.bf16.msra.mxu0 %v5588_v36  ;;  %789 = vst [vmem:[#allocation2 + $0x74] sm:$0x1] %v788_v11  ;;  %v784_v12 = vld [vmem:[#allocation2 + $0x68] sm:$0x1] }
  0x96   : > { %5160 = vmatprep.subr.bf16.mxu0 %v5590_v38 }
  0x99   : > { %5161 = vmatpush3.bf16.msra.mxu0 %v5590_v38 }
  0x9a   : > { %5162 = vmatprep.subr.bf16.mxu0 %v5592_v46 }
  0x9c   : > { %5079 = vmatmul.mubr.bf16.gmra.mxu0 %v5579_v13  ;;  %v785_v13 = vsel %vm6186_vm4, 0, %v784_v12 }
  0x9d   : > { %5082 = vmatprep.mubr.bf16.mxu0 %v5580_v14  ;;  %5163 = vmatpush3.bf16.msra.mxu0 %v5592_v46  ;;  %786 = vst [vmem:[#allocation2 + $0x68] sm:$0x1] %v785_v13  ;;  %v645_v14 = vstv %s4488_s14 }
  0x9e   : > { %5164 = vmatprep.subr.bf16.mxu0 %v5594_v54  ;;  %v648_v18 = vadd.s32 3, %v645_v14  ;;  %v647_v19 = vadd.s32 2, %v645_v14  ;;  %vm655_vm7 = vcmp.ge.s32.totalorder %v645_v14, 1  ;;  %vm665_vm8 = vcmp.le.s32.totalorder %v645_v14, 16 }
  0x9f   : > { %vm6246_vm11 = vmand %vm655_vm7, %vm665_vm8  ;;  %v6253_v33 = vadd.s32 5, %v645_v14  ;;  %v6255_v34 = vadd.s32 4, %v645_v14  ;;  %v6260_v38 = vadd.s32 7, %v645_v14  ;;  %v6262_v42 = vadd.s32 6, %v645_v14 }
  0xa0   : > { %vm658_vm12 = vcmp.ge.s32.totalorder %v648_v18, 1  ;;  %vm668_vm13 = vcmp.le.s32.totalorder %v648_v18, 16  ;;  %vm657_vm14 = vcmp.ge.s32.totalorder %v647_v19, 1  ;;  %vm667_vm15 = vcmp.le.s32.totalorder %v647_v19, 16 }
  0xa1   : > { %5165 = vmatpush3.bf16.msra.mxu0 %v5594_v54  ;;  %v6264_v43 = vadd.s32 9, %v645_v14  ;;  %v6269_v47 = vadd.s32 8, %v645_v14  ;;  %vm6273_vm4 = vmand %vm658_vm12, %vm668_vm13  ;;  %vm670_vm7 = vcmp.le.s32.totalorder %v6253_v33, 16  ;;  %vm659_vm8 = vcmp.ge.s32.totalorder %v6255_v34, 1 }
  0xa2   : > { %5166 = vmatprep.subr.bf16.mxu0 %v5596_v56  ;;  %vm662_vm12 = vcmp.ge.s32.totalorder %v6260_v38, 1  ;;  %vm672_vm13 = vcmp.le.s32.totalorder %v6260_v38, 16 }
  0xa4   : > { %5083 = vmatmul.mubr.bf16.gmra.mxu0 %v5581_v15  ;;  %v646_v15 = vadd.s32 1, %v645_v14 }
  0xa5   : > { %5086 = vmatprep.mubr.bf16.mxu0 %v5582_v16  ;;  %5167 = vmatpush3.bf16.msra.mxu0 %v5596_v56  ;;  %v6238_v16 = vld [vmem:[%s7471_s2] ss:$0 sm:$0xff] }
  0xa6   : > { %5168 = vmatprep.subr.bf16.mxu0 %v5598_v62  ;;  %vm656_vm5 = vcmp.ge.s32.totalorder %v646_v15, 1  ;;  %vm666_vm6 = vcmp.le.s32.totalorder %v646_v15, 16  ;;  %v1065_v15 = vld [vmem:[#allocation2 + $0x14] sm:$0x1] }
  0xa7   : > { %vm6241_vm9 = vmand %vm656_vm5, %vm666_vm6  ;;  %vm660_vm6 = vcmp.ge.s32.totalorder %v6253_v33, 1 }
  0xa8   : > { %vm6279_vm5 = vmand %vm1052_vm10, %vm758_vm3 }
  0xa9   : > { %5169 = vmatpush3.bf16.msra.mxu0 %v5598_v62  ;;  %vm6290_vm3 = vmand %vm657_vm14, %vm667_vm15  ;;  %vm661_vm14 = vcmp.ge.s32.totalorder %v6262_v42, 1  ;;  %vm671_vm15 = vcmp.le.s32.totalorder %v6262_v42, 16 }
  0xaa   : > { %5218 = vmatprep.subr.bf16.mxu0 %v6220_v4  ;;  %vm6302_vm10 = vmor %vm726_vm1, %vm850_vm0  ;;  %vm1770_vm0 = vcmask 1042432  }
  0xab   : > { %vm6336_vm1 = vmand %vm660_vm6, %vm670_vm7 }
  0xac   : > { %5087 = vmatmul.mubr.bf16.gmra.mxu0 %v5583_v17  ;;  %vm6388_vm6 = vmand %vm662_vm12, %vm672_vm13  ;;  %vm674_vm12 = vcmp.le.s32.totalorder %v6264_v43, 16  ;;  %vm663_vm13 = vcmp.ge.s32.totalorder %v6269_v47, 1 }
  0xad   : > { %vm6399_vm7 = vmand %vm661_vm14, %vm671_vm15  ;;  %vm673_vm14 = vcmp.le.s32.totalorder %v6269_v47, 16 }
 0x14c   : > { %v5072_v17 = vpop.f32.mrf.mxu0 }
 0x14d   : > { %v555_v21 = vadd.f32 %v5072_v17, %v6238_v16 }
 0x14e   : > { %v546_v23 = vpop.f32.mrf.mxu0 }
 0x14f   : > { %v627_v24 = vmax.f32 %v555_v21, 0.0  ;;  %v547_v25 = vadd.f32 %v6238_v16, %v546_v23 }
 0x150   : > { %v5073_v27 = vpop.f32.mrf.mxu0 }
 0x151   : > { %v707_v28 = vsel %vm6241_vm9, %v627_v24, 0.0  ;;  %v625_v29 = vmax.f32 %v547_v25, 0.0  ;;  %v558_v30 = vadd.f32 %v5073_v27, %v6238_v16 }
 0x152   : > { %v4753_v31 = vpack.c.bf16 %v707_v28, %v707_v28  ;;  %v549_v32 = vpop.f32.mrf.mxu0 }
 0x153   : > { %v705_v35 = vsel %vm6246_vm11, %v625_v29, 0.0  ;;  %v628_v36 = vmax.f32 %v558_v30, 0.0  ;;  %v550_v37 = vadd.f32 %v6238_v16, %v549_v32 }
 0x154   : > { %v870_v39 = vshrl.u32 %v4753_v31, 16  ;;  %v4751_v40 = vpack.c.bf16 %v705_v35, %v705_v35  ;;  %v5076_v41 = vpop.f32.mrf.mxu0  ;;  %v873_v49 = vshll.u32 %v4753_v31, 16  ;;  %v1058_v35 = vld [vmem:[#allocation2 + $0x8] sm:$0x1] }
 0x155   : > { %v708_v44 = vsel %vm6241_vm9, %v628_v36, 0.0  ;;  %v626_v45 = vmax.f32 %v550_v37, 0.0  ;;  %v571_v46 = vadd.f32 %v5076_v41, %v6238_v16  ;;  %vm669_vm9 = vcmp.le.s32.totalorder %v6255_v34, 16 }
 0x156   : > { %v872_v48 = vrot.slane %v870_v39, 7  ;;  %v853_v50 = vshrl.u32 %v4751_v40, 16  ;;  %v4754_v51 = vpack.c.bf16 %v708_v44, %v708_v44  ;;  %v562_v53 = vpop.f32.mrf.mxu0  ;;  %v856_v56 = vshll.u32 %v4751_v40, 16 }
 0x157   : > { %v706_v57 = vsel %vm6246_vm11, %v626_v45, 0.0  ;;  %v631_v58 = vmax.f32 %v571_v46, 0.0  ;;  %v563_v59 = vadd.f32 %v6238_v16, %v562_v53  ;;  %v1075_v46 = vld [vmem:[#allocation2 + $0x24] sm:$0xf]  ;;  %vm6346_vm11 = vmand %vm659_vm8, %vm669_vm9  ;;  %vm1164_vm8 = vsmask.f32 3328 }
 0x158   : > { %v875_v60 = vor.u32 %v873_v49, %v872_v48  ;;  %v876_v61 = vrot.slane %v872_v48, 4  ;;  %v855_v62 = vrot.slane %v853_v50, 7  ;;  %v878_v63 = vshrl.u32 %v4754_v51, 16  ;;  %v5077_v1 = vpop.f32.mrf.mxu0 }
 0x159   : > { %v881_v3 = vshll.u32 %v4754_v51, 16  ;;  %v4752_v6 = vpack.c.bf16 %v706_v57, %v706_v57  ;;  %v711_v7 = vsel %vm6273_vm4, %v631_v58, 0.0  ;;  %v629_v8 = vmax.f32 %v563_v59, 0.0  ;;  %v1068_v59 = vld [vmem:[#allocation2 + $0x18] sm:$0xf] }
 0x15a   : > { %v1062_v9 = vsel %vm6279_vm5, %v875_v60, %v1061_v55  ;;  %v858_v10 = vor.u32 %v856_v56, %v855_v62  ;;  %v859_v11 = vrot.slane %v855_v62, 4  ;;  %v880_v12 = vrot.slane %v878_v63, 7  ;;  %v565_v13 = vpop.f32.mrf.mxu0 }
 0x15b   : > { %1063 = vst [vmem:[#allocation2 + $0xc] sm:$0xf] %v1062_v9  ;;  %v861_v17 = vshrl.u32 %v4752_v6, 16  ;;  %v864_v18 = vshll.u32 %v4752_v6, 16  ;;  %v4757_v19 = vpack.c.bf16 %v711_v7, %v711_v7  ;;  %v709_v21 = vsel %vm6290_vm3, %v629_v8, 0.0 }
 0x15c   : > { %v1055_v22 = vsel %vm6279_vm5, %v858_v10, %v1054_v2  ;;  %v883_v23 = vor.u32 %v881_v3, %v880_v12  ;;  %v885_v24 = vrot.slane %v880_v12, 4  ;;  %v4755_v25 = vpack.c.bf16 %v709_v21, %v709_v21  ;;  %v5080_v26 = vpop.f32.mrf.mxu0 }
 0x15d   : > { %1056 = vst [vmem:[#allocation2] sm:$0xf] %v1055_v22  ;;  %v863_v27 = vrot.slane %v861_v17, 7  ;;  %v904_v28 = vshrl.u32 %v4757_v19, 16  ;;  %v907_v29 = vshll.u32 %v4757_v19, 16  ;;  %v574_v30 = vadd.f32 %v5077_v1, %v6238_v16 }
 0x15e   : > { %v884_v31 = vsel %vm6302_vm10, %v876_v61, %v883_v23  ;;  %v1066_v32 = vsel %vm6179_vm2, %v885_v24, %v1065_v15  ;;  %v887_v36 = vshrl.u32 %v4755_v25, 16  ;;  %v890_v37 = vshll.u32 %v4755_v25, 16  ;;  %v578_v39 = vpop.f32.mrf.mxu0 }
 0x15f   : > { %1064 = vst [vmem:[#allocation2 + $0x10] sm:$0xf] %v884_v31  ;;  %1067 = vst [vmem:[#allocation2 + $0x14] sm:$0x1] %v1066_v32  ;;  %v866_v40 = vor.u32 %v864_v18, %v863_v27  ;;  %v868_v41 = vrot.slane %v863_v27, 4  ;;  %v6315_v44 = vrot.slane %v904_v28, 7  ;;  %v566_v49 = vadd.f32 %v6238_v16, %v565_v13 }
 0x160   : > { %v632_v45 = vmax.f32 %v574_v30, 0.0  ;;  %v6317_v48 = vrot.slane %v887_v36, 7  ;;  %v587_v50 = vadd.f32 %v5080_v26, %v6238_v16  ;;  %v579_v51 = vadd.f32 %v6238_v16, %v578_v39  ;;  %v5081_v53 = vpop.f32.mrf.mxu0  ;;  %v1079_v27 = vld [vmem:[#allocation2 + $0x2c] sm:$0x1]  ;;  %v1072_v39 = vld [vmem:[#allocation2 + $0x20] sm:$0x1] }
 0x161   : > { %v867_v55 = vsel %vm6302_vm10, %v859_v11, %v866_v40  ;;  %v1059_v56 = vsel %vm6179_vm2, %v868_v41, %v1058_v35  ;;  %v909_v57 = vor.u32 %v907_v29, %v6315_v44  ;;  %v910_v58 = vrot.slane %v6315_v44, 4 }
 0x162   : > { %1057 = vst [vmem:[#allocation2 + $0x4] sm:$0xf] %v867_v55  ;;  %1060 = vst [vmem:[#allocation2 + $0x8] sm:$0x1] %v1059_v56  ;;  %v892_v60 = vor.u32 %v890_v37, %v6317_v48  ;;  %v893_v61 = vrot.slane %v6317_v48, 4  ;;  %v712_v62 = vsel %vm6273_vm4, %v632_v45, 0.0  ;;  %v581_v2 = vpop.f32.mrf.mxu0  ;;  %v590_v10 = vadd.f32 %v5081_v53, %v6238_v16 }
 0x163   : > { %v630_v63 = vmax.f32 %v566_v49, 0.0  ;;  %v1076_v3 = vsel %vm6279_vm5, %v909_v57, %v1075_v46  ;;  %v4758_v6 = vpack.c.bf16 %v712_v62, %v712_v62  ;;  %v635_v7 = vmax.f32 %v587_v50, 0.0  ;;  %v1089_v53 = vld [vmem:[#allocation2 + $0x3c] sm:$0xf] }
 0x164   : > { %v633_v8 = vmax.f32 %v579_v51, 0.0  ;;  %1077 = vst [vmem:[#allocation2 + $0x24] sm:$0xf] %v1076_v3  ;;  %v1069_v33 = vsel %vm6279_vm5, %v892_v60, %v1068_v59  ;;  %v582_v11 = vadd.f32 %v6238_v16, %v581_v2  ;;  %v6356_v12 = vpop.f32.mrf.mxu0  ;;  %v636_v19 = vmax.f32 %v590_v10, 0.0  ;;  %v1093_v2 = vld [vmem:[#allocation2 + $0x44] sm:$0x1] }
 0x165   : > { %v710_v9 = vsel %vm6290_vm3, %v630_v63, 0.0  ;;  %1070 = vst [vmem:[#allocation2 + $0x18] sm:$0xf] %v1069_v33  ;;  %v912_v34 = vshrl.u32 %v4758_v6, 16  ;;  %v915_v13 = vshll.u32 %v4758_v6, 16  ;;  %v715_v17 = vsel %vm6336_vm1, %v635_v7, 0.0 }
 0x166   : > { %v4756_v15 = vpack.c.bf16 %v710_v9, %v710_v9  ;;  %v4761_v0 = vpack.c.bf16 %v715_v17, %v715_v17  ;;  %v713_v18 = vsel %vm6346_vm11, %v633_v8, 0.0  ;;  %v634_v21 = vmax.f32 %v582_v11, 0.0  ;;  %v594_v26 = vpop.f32.mrf.mxu0  ;;  %v1082_v63 = vld [vmem:[#allocation2 + $0x30] sm:$0xf]  ;;  %v1086_v33 = vld [vmem:[#allocation2 + $0x38] sm:$0x1] }
 0x167   : > { %v914_v22 = vrot.slane %v912_v34, 7  ;;  %v4759_v25 = vpack.c.bf16 %v713_v18, %v713_v18  ;;  %v716_v30 = vsel %vm6336_vm1, %v636_v19, 0.0  ;;  %vm1771_vm4 = vcmask 1046532  }
 0x168   : > { %v895_v23 = vshrl.u32 %v4756_v15, 16  ;;  %v898_v24 = vshll.u32 %v4756_v15, 16  ;;  %v938_v28 = vshrl.u32 %v4761_v0, 16  ;;  %v941_v29 = vshll.u32 %v4761_v0, 16  ;;  %v5085_v55 = vpop.f32.mrf.mxu0  ;;  %vm6429_vm3 = vmor %vm1770_vm0, %vm1771_vm4 }
 0x169   : > { %v714_v31 = vsel %vm6346_vm11, %v634_v21, 0.0  ;;  %v917_v32 = vor.u32 %v915_v13, %v914_v22  ;;  %v919_v35 = vrot.slane %v914_v22, 4  ;;  %v921_v37 = vshrl.u32 %v4759_v25, 16  ;;  %v1746_v22 = vld [vmem:[#allocation2] sm:$0xe]  ;;  %vm6575_vm0 = vmand %vm663_vm13, %vm673_vm14 }
 0x16a   : > { %v897_v36 = vrot.slane %v895_v23, 7  ;;  %v940_v40 = vrot.slane %v938_v28, 7  ;;  %v924_v41 = vshll.u32 %v4759_v25, 16  ;;  %v4762_v44 = vpack.c.bf16 %v716_v30, %v716_v30  ;;  %v597_v34 = vpop.f32.mrf.mxu0 }
 0x16b   : > { %v4760_v45 = vpack.c.bf16 %v714_v31, %v714_v31  ;;  %v918_v46 = vsel %vm6302_vm10, %v910_v58, %v917_v32  ;;  %v1080_v49 = vsel %vm6179_vm2, %v919_v35, %v1079_v27  ;;  %v923_v59 = vrot.slane %v921_v37, 7  ;;  %v6411_v27 = vld [vmem:[#allocation2 + $0x8] sm:$0x1] }
 0x16c   : > { %v900_v50 = vor.u32 %v898_v24, %v897_v36  ;;  %v902_v51 = vrot.slane %v897_v36, 4  ;;  %1078 = vst [vmem:[#allocation2 + $0x28] sm:$0xf] %v918_v46  ;;  %1081 = vst [vmem:[#allocation2 + $0x2c] sm:$0x1] %v1080_v49  ;;  %v943_v56 = vor.u32 %v941_v29, %v940_v40  ;;  %v944_v57 = vrot.slane %v940_v40, 4 }
 0x16d   : > { %v946_v60 = vshrl.u32 %v4762_v44, 16  ;;  %v949_v1 = vshll.u32 %v4762_v44, 16  ;;  %v929_v3 = vshrl.u32 %v4760_v45, 16  ;;  %v926_v7 = vor.u32 %v924_v41, %v923_v59  ;;  %v6425_v46 = vld [vmem:[#allocation2 + $0x10] sm:$0xf] }
 0x16e   : > { %v901_v58 = vsel %vm6302_vm10, %v893_v61, %v900_v50  ;;  %v1073_v62 = vsel %vm6179_vm2, %v902_v51, %v1072_v39  ;;  %v1090_v6 = vsel %vm6279_vm5, %v943_v56, %v1089_v53  ;;  %v927_v8 = vrot.slane %v923_v59, 4  ;;  %v1747_v39 = vld [vmem:[#allocation2 + $0xc] sm:$0xe]  ;;  %v6433_v56 = vld [vmem:[#allocation2 + $0x14] sm:$0x1] }
 0x16f   : > { %1071 = vst [vmem:[#allocation2 + $0x1c] sm:$0xf] %v901_v58  ;;  %1074 = vst [vmem:[#allocation2 + $0x20] sm:$0x1] %v1073_v62  ;;  %v948_v52 = vrot.slane %v946_v60, 7  ;;  %v931_v48 = vrot.slane %v929_v3, 7  ;;  %v603_v61 = vadd.f32 %v6356_v12, %v6238_v16  ;;  %v595_v11 = vadd.f32 %v6238_v16, %v594_v26 }
 0x170   : > { %1091 = vst [vmem:[#allocation2 + $0x3c] sm:$0xf] %v1090_v6  ;;  %v932_v9 = vshll.u32 %v4760_v45, 16  ;;  %v1083_v13 = vsel %vm6279_vm5, %v926_v7, %v1082_v63  ;;  %v606_v38 = vadd.f32 %v5085_v55, %v6238_v16  ;;  %v598_v42 = vadd.f32 %v6238_v16, %v597_v34  ;;  %v6409_v26 = vld [vmem:[#allocation2 + $0x4] sm:$0xf] }
 0x171   : > { %v951_v15 = vor.u32 %v949_v1, %v948_v52  ;;  %v953_v17 = vrot.slane %v948_v52, 4  ;;  %1084 = vst [vmem:[#allocation2 + $0x30] sm:$0xf] %v1083_v13  ;;  %v936_v18 = vrot.slane %v931_v48, 4  ;;  %v639_v19 = vmax.f32 %v603_v61, 0.0 }
 0x172   : > { %v934_v0 = vor.u32 %v932_v9, %v931_v48  ;;  %v637_v21 = vmax.f32 %v595_v11, 0.0  ;;  %v640_v25 = vmax.f32 %v606_v38, 0.0  ;;  %v638_v37 = vmax.f32 %v598_v42, 0.0  ;;  %v1103_v63 = vld [vmem:[#allocation2 + $0x54] sm:$0xf] }
 0x173   : > { %v952_v23 = vsel %vm6302_vm10, %v944_v57, %v951_v15  ;;  %v1094_v24 = vsel %vm6179_vm2, %v953_v17, %v1093_v2  ;;  %v1087_v29 = vsel %vm6179_vm2, %v936_v18, %v1086_v33  ;;  %v719_v30 = vsel %vm6388_vm6, %v639_v19, 0.0  ;;  %v1096_v6 = vld [vmem:[#allocation2 + $0x48] sm:$0xf]  ;;  %v1107_v11 = vld [vmem:[#allocation2 + $0x5c] sm:$0x1] }
 0x174   : > { %1092 = vst [vmem:[#allocation2 + $0x40] sm:$0xf] %v952_v23  ;;  %1095 = vst [vmem:[#allocation2 + $0x44] sm:$0x1] %v1094_v24  ;;  %v935_v28 = vsel %vm6302_vm10, %v927_v8, %v934_v0  ;;  %v717_v31 = vsel %vm6399_vm7, %v637_v21, 0.0  ;;  %v4765_v32 = vpack.c.bf16 %v719_v30, %v719_v30  ;;  %v720_v36 = vsel %vm6388_vm6, %v640_v25, 0.0 }
 0x175   : > { %1085 = vst [vmem:[#allocation2 + $0x34] sm:$0xf] %v935_v28  ;;  %1088 = vst [vmem:[#allocation2 + $0x38] sm:$0x1] %v1087_v29  ;;  %v4763_v35 = vpack.c.bf16 %v717_v31, %v717_v31  ;;  %v4766_v40 = vpack.c.bf16 %v720_v36, %v720_v36  ;;  %v4562_v41 = vrot.slane %v1746_v22, 9  ;;  %v1775_v44 = vrot.slane %v6409_v26, 5 }
 0x176   : > { %v1778_v45 = vrot.slane %v6411_v27, 5  ;;  %v972_v49 = vshrl.u32 %v4765_v32, 16  ;;  %v975_v50 = vshll.u32 %v4765_v32, 16  ;;  %v718_v60 = vsel %vm6399_vm7, %v638_v37, 0.0  ;;  %v6441_v12 = vld [vmem:[#allocation2] sm:$0xf] }
 0x177   : > { %v955_v51 = vshrl.u32 %v4763_v35, 16  ;;  %v958_v53 = vshll.u32 %v4763_v35, 16  ;;  %v980_v57 = vshrl.u32 %v4766_v40, 16  ;;  %v983_v59 = vshll.u32 %v4766_v40, 16  ;;  %v1100_v25 = vld [vmem:[#allocation2 + $0x50] sm:$0x1] }
 0x178   : > { %v1776_v58 = vsel %vm6429_vm3, %v4562_v41, %v1775_v44  ;;  %v974_v62 = vrot.slane %v972_v49, 7  ;;  %v4764_v2 = vpack.c.bf16 %v718_v60, %v718_v60  ;;  %v1777_v3 = vrot.slane %v1775_v44, 4  ;;  %v6460_v37 = vld [vmem:[#allocation2 + $0xc] sm:$0xf] }
 0x179   : > { %v957_v1 = vrot.slane %v955_v51, 7  ;;  %v982_v7 = vrot.slane %v980_v57, 7  ;;  %v4563_v8 = vrot.slane %v1747_v39, 9  ;;  %v1782_v52 = vrot.slane %v6425_v46, 5  ;;  %v5602_v57 = vld [vmem:[#allocation8 + $0x130] sm:$0xff]  }
 0x17a   : > { %v1785_v33 = vrot.slane %v6433_v56, 5  ;;  %v977_v48 = vor.u32 %v975_v50, %v974_v62  ;;  %v978_v9 = vrot.slane %v974_v62, 4  ;;  %vm1165_vm9 = vsmask.f32 7440 }
 0x17b   : > { %v960_v61 = vor.u32 %v958_v53, %v957_v1  ;;  %v961_v10 = vrot.slane %v957_v1, 4  ;;  %v985_v34 = vor.u32 %v983_v59, %v982_v7  ;;  %v987_v13 = vrot.slane %v982_v7, 4  ;;  %v6468_v59 = vld [vmem:[#allocation2 + $0x1c] sm:$0xf]  ;;  %v1749_v1 = vld [vmem:[#allocation2 + $0x24] sm:$0xe]  ;;  %vm6482_vm1 = vmor %vm1164_vm8, %vm1165_vm9 }
 0x17c   : > { %v963_v15 = vshrl.u32 %v4764_v2, 16  ;;  %v966_v17 = vshll.u32 %v4764_v2, 16  ;;  %v1104_v38 = vsel %vm6279_vm5, %v977_v48, %v1103_v63  ;;  %v1779_v18 = vsel %vm6429_vm3, %v1777_v3, %v1778_v45  ;;  %v1748_v45 = vld [vmem:[#allocation2 + $0x18] sm:$0xe] }
 0x17d   : > { %v1097_v0 = vsel %vm6279_vm5, %v960_v61, %v1096_v6  ;;  %v1783_v19 = vsel %vm6429_vm3, %v4563_v8, %v1782_v52  ;;  %1105 = vst [vmem:[#allocation2 + $0x54] sm:$0xf] %v1104_v38  ;;  %v986_v21 = vsel %vm6302_vm10, %v978_v9, %v985_v34  ;;  %v1108_v22 = vsel %vm6179_vm2, %v987_v13, %v1107_v11  ;;  %v6478_v9 = vld [vmem:[#allocation2 + $0x28] sm:$0xf] }
 0x17e   : > { %1098 = vst [vmem:[#allocation2 + $0x48] sm:$0xf] %v1097_v0  ;;  %v965_v23 = vrot.slane %v963_v15, 7  ;;  %v4570_v24 = vcombine.low %v1776_v58, %v1779_v18  ;;  %1106 = vst [vmem:[#allocation2 + $0x58] sm:$0xf] %v986_v21  ;;  %v1784_v42 = vrot.slane %v1782_v52, 4 }
 0x17f   : > { %1109 = vst [vmem:[#allocation2 + $0x5c] sm:$0x1] %v1108_v22  ;;  %v1168_v28 = vshrl.u32 %v6441_v12, 16  ;;  %v1171_v29 = vshll.u32 %v6441_v12, 16  ;;  %v1177_v30 = vshll.u32 %v6409_v26, 16  ;;  %v1181_v35 = vshrl.u32 %v6409_v26, 16 }
 0x180   : > { %v968_v31 = vor.u32 %v966_v17, %v965_v23  ;;  %v970_v32 = vrot.slane %v965_v23, 4  ;;  %5170 = vmatprep.mubr.bf16.mxu0 %v4570_v24  ;;  %v1187_v36 = vshll.u32 %v6411_v27, 16  ;;  %v1786_v39 = vsel %vm6429_vm3, %v1784_v42, %v1785_v33  ;;  %v6470_v27 = vld [vmem:[#allocation2 + $0x20] sm:$0x1]  ;;  %v6490_v0 = vld [vmem:[#allocation2 + $0x2c] sm:$0x1] }
 0x181   : > { %v1170_v40 = vrot.slane %v1168_v28, 4  ;;  %v1173_v41 = vrot.slane %v1171_v29, 5  ;;  %v1179_v44 = vrot.slane %v1177_v30, 5  ;;  %v4571_v51 = vcombine.low %v1783_v19, %v1786_v39  ;;  %v6495_v23 = vld [vmem:[#allocation2 + $0x18] sm:$0xf] }
 0x182   : > { %v969_v49 = vsel %vm6302_vm10, %v961_v10, %v968_v31  ;;  %v1101_v50 = vsel %vm6179_vm2, %v970_v32, %v1100_v25  ;;  %v1183_v53 = vrot.slane %v1181_v35, 4  ;;  %v1189_v58 = vrot.slane %v1187_v36, 5  ;;  %v5606_v35 = vld [vmem:[#allocation8 + $0x120] sm:$0xff]  }
 0x183   : > { %1099 = vst [vmem:[#allocation2 + $0x4c] sm:$0xf] %v969_v49  ;;  %1102 = vst [vmem:[#allocation2 + $0x50] sm:$0x1] %v1101_v50  ;;  %v1174_v60 = vor.u32 %v1173_v41, %v1170_v40  ;;  %v1192_v62 = vshrl.u32 %v6460_v37, 16  ;;  %v1195_v63 = vshll.u32 %v6460_v37, 16  ;;  %5171 = vmatmul.mubr.bf16.vlgmr.msra.gmra.mxu0 %v4571_v51 }
 0x184   : > { %v1184_v2 = vor.u32 %v1183_v53, %v1179_v44  ;;  %v1201_v3 = vshll.u32 %v6425_v46, 16  ;;  %v1205_v6 = vshrl.u32 %v6425_v46, 16  ;;  %v1211_v7 = vshll.u32 %v6433_v56, 16  ;;  %5219 = vmatpush3.bf16.msra.mxu0 %v6220_v4  ;;  %v5604_v56 = vld [vmem:[#allocation8 + $0x128] sm:$0xff]   ;;  %v5603_v49 = vld [vmem:[#allocation8 + $0x30] sm:$0xff]  }
 0x185   : > { %v1175_v8 = vrot.slane %v1174_v60, 4  ;;  %v1194_v52 = vrot.slane %v1192_v62, 4  ;;  %v1197_v33 = vrot.slane %v1195_v63, 5  ;;  %v4564_v48 = vrot.slane %v1748_v45, 9  ;;  %5220 = vmatprep.subr.bf16.mxu0 %v5602_v57 }
 0x186   : > { %v1185_v10 = vrot.slane %v1184_v2, 4  ;;  %v1203_v11 = vrot.slane %v1201_v3, 5  ;;  %v1207_v34 = vrot.slane %v1205_v6, 4  ;;  %v1213_v13 = vrot.slane %v1211_v7, 5  ;;  %v1750_v2 = vld [vmem:[#allocation2 + $0x30] sm:$0xe] }
 0x187   : > { %v1180_v4 = vsel %vm6482_vm1, %v1175_v8, %v1179_v44  ;;  %v1198_v15 = vor.u32 %v1197_v33, %v1194_v52  ;;  %v1789_v17 = vrot.slane %v6468_v59, 5  ;;  %v1792_v38 = vrot.slane %v6470_v27, 5  ;;  %v6510_v44 = vld [vmem:[#allocation2 + $0x24] sm:$0xf]  ;;  %v6522_v52 = vld [vmem:[#allocation2 + $0x38] sm:$0x1] }
 0x188   : > { %v1190_v18 = vsel %vm6482_vm1, %v1185_v10, %v1189_v58  ;;  %v1208_v19 = vor.u32 %v1207_v34, %v1203_v11  ;;  %v4565_v21 = vrot.slane %v1749_v1, 9  ;;  %v1796_v22 = vrot.slane %v6478_v9, 5  ;;  %5221 = vmatpush3.bf16.msra.mxu0 %v5602_v57  ;;  %v5608_v57 = vld [vmem:[#allocation8 + $0x118] sm:$0xff]  }
 0x189   : > { %v4530_v24 = vcombine.low %v1180_v4, %v1190_v18  ;;  %v1199_v25 = vrot.slane %v1198_v15, 4  ;;  %v1790_v42 = vsel %vm6429_vm3, %v4564_v48, %v1789_v17  ;;  %v1791_v28 = vrot.slane %v1789_v17, 4  ;;  %5222 = vmatprep.subr.bf16.mxu0 %v5604_v56  ;;  %v6517_v1 = vld [vmem:[#allocation2 + $0x34] sm:$0xf]  ;;  %v5605_v48 = vld [vmem:[#allocation8 + $0x28] sm:$0xff]  }
 0x18a   : > { %v1209_v29 = vrot.slane %v1208_v19, 4  ;;  %v1797_v30 = vsel %vm6429_vm3, %v4565_v21, %v1796_v22  ;;  %v1798_v31 = vrot.slane %v1796_v22, 4  ;;  %v1799_v32 = vrot.slane %v6490_v0, 5  ;;  %v6531_v15 = vld [vmem:[#allocation2 + $0x40] sm:$0xf] }
 0x18b   : > { %vm664_vm11 = vcmp.ge.s32.totalorder %v6264_v43, 1  ;;  %5106 = vmatprep.mubr.bf16.mxu1 %v4530_v24  ;;  %v1204_v36 = vsel %vm6482_vm1, %v1199_v25, %v1203_v11  ;;  %v1793_v39 = vsel %vm6429_vm3, %v1791_v28, %v1792_v38  ;;  %v1216_v40 = vshrl.u32 %v6495_v23, 16  ;;  %v1751_v17 = vld [vmem:[#allocation2 + $0x3c] sm:$0xe]  ;;  %v6533_v22 = vld [vmem:[#allocation2 + $0x44] sm:$0x1] }
 0x18c   : > { %v1219_v41 = vshll.u32 %v6495_v23, 16  ;;  %v1214_v45 = vsel %vm6482_vm1, %v1209_v29, %v1213_v13  ;;  %v4572_v50 = vcombine.low %v1790_v42, %v1793_v39  ;;  %v1800_v51 = vsel %vm6429_vm3, %v1798_v31, %v1799_v32  ;;  %5223 = vmatpush3.bf16.msra.mxu0 %v5604_v56  ;;  %v5610_v28 = vld [vmem:[#allocation8 + $0x110] sm:$0xff]   ;;  %v5607_v31 = vld [vmem:[#allocation8 + $0x20] sm:$0xff]   ;;  %vm6548_vm15 = vmand %vm664_vm11, %vm674_vm12 }
 0x18d   : > { %v1225_v53 = vshll.u32 %v6468_v59, 16  ;;  %v4531_v60 = vcombine.low %v1204_v36, %v1214_v45  ;;  %v4573_v58 = vcombine.low %v1797_v30, %v1800_v51  ;;  %v1218_v62 = vrot.slane %v1216_v40, 4  ;;  %5224 = vmatprep.subr.bf16.mxu0 %v5606_v35  ;;  %v5088_v36 = vpop.f32.mrf.mxu0  ;;  %v6542_v45 = vld [vmem:[#allocation2 + $0x30] sm:$0xf] }
 0x18e   : > { %v1221_v63 = vrot.slane %v1219_v41, 5  ;;  %5174 = vmatprep.mubr.bf16.mxu0 %v4572_v50  ;;  %v1229_v6 = vshrl.u32 %v6468_v59, 16  ;;  %v1235_v7 = vshll.u32 %v6470_v27, 16  ;;  %v1240_v8 = vshrl.u32 %v6510_v44, 16 }
 0x18f   : > { %v1227_v3 = vrot.slane %v1225_v53, 5  ;;  %5107 = vmatmul.mubr.bf16.vlgmr.msra.gmra.mxu1 %v4531_v60  ;;  %5175 = vmatmul.mubr.bf16.gmra.mxu0 %v4573_v58  ;;  %v1243_v10 = vshll.u32 %v6510_v44, 16  ;;  %v1249_v11 = vshll.u32 %v6478_v9, 16  ;;  %v1253_v34 = vshrl.u32 %v6478_v9, 16 }
 0x190   : > { %v1222_v33 = vor.u32 %v1221_v63, %v1218_v62  ;;  %5123 = vmatpush3.bf16.msra.mxu1 %v6223_v5  ;;  %v1231_v27 = vrot.slane %v1229_v6, 4  ;;  %v1237_v13 = vrot.slane %v1235_v7, 5  ;;  %v1242_v56 = vrot.slane %v1240_v8, 4  ;;  %5225 = vmatpush3.bf16.msra.mxu0 %v5606_v35 }
 0x191   : > { %v1259_v4 = vshll.u32 %v6490_v0, 16  ;;  %5124 = vmatprep.subr.bf16.mxu1 %v5603_v49  ;;  %v1245_v18 = vrot.slane %v1243_v10, 5  ;;  %v1251_v19 = vrot.slane %v1249_v11, 5  ;;  %v1255_v21 = vrot.slane %v1253_v34, 4  ;;  %5226 = vmatprep.subr.bf16.mxu0 %v5608_v57  ;;  %v610_v11 = vpop.f32.mrf.mxu0  ;;  %v5612_v34 = vld [vmem:[#allocation8 + $0x108] sm:$0xff]  }
 0x192   : > { %v1223_v38 = vrot.slane %v1222_v33, 4  ;;  %v1232_v24 = vor.u32 %v1231_v27, %v1227_v3  ;;  %v4566_v42 = vrot.slane %v1750_v2, 9  ;;  %v1803_v5 = vrot.slane %v6517_v1, 5 }
 0x193   : > { %v1261_v25 = vrot.slane %v1259_v4, 5  ;;  %v1246_v29 = vor.u32 %v1245_v18, %v1242_v56  ;;  %v1256_v30 = vor.u32 %v1255_v21, %v1251_v19  ;;  %v1806_v32 = vrot.slane %v6522_v52, 5 }
 0x194   : > { %v1228_v0 = vsel %vm6482_vm1, %v1223_v38, %v1227_v3  ;;  %5125 = vmatpush3.bf16.msra.mxu1 %v5603_v49  ;;  %v1233_v35 = vrot.slane %v1232_v24, 4  ;;  %v1804_v39 = vsel %vm6429_vm3, %v4566_v42, %v1803_v5  ;;  %v1805_v40 = vrot.slane %v1803_v5, 4  ;;  %5227 = vmatpush3.bf16.msra.mxu0 %v5608_v57 }
 0x195   : > { %v619_v41 = vadd.f32 %v5088_v36, %v6238_v16  ;;  %5126 = vmatprep.subr.bf16.mxu1 %v5605_v48  ;;  %v1247_v50 = vrot.slane %v1246_v29, 4  ;;  %v1257_v51 = vrot.slane %v1256_v30, 4  ;;  %v4567_v49 = vrot.slane %v1751_v17, 9  ;;  %5228 = vmatprep.subr.bf16.mxu0 %v5610_v28  ;;  %v5609_v17 = vld [vmem:[#allocation8 + $0x18] sm:$0xff]   ;;  %v5089_v36 = vpop.f32.mrf.mxu0 }
 0x196   : > { %v1810_v60 = vrot.slane %v6531_v15, 5  ;;  %v1238_v58 = vsel %vm6482_vm1, %v1233_v35, %v1237_v13  ;;  %v1807_v62 = vsel %vm6429_vm3, %v1805_v40, %v1806_v32  ;;  %v1813_v2 = vrot.slane %v6533_v22, 5  ;;  %v5614_v35 = vld [vmem:[#allocation8 + $0x100] sm:$0xff]  }
 0x197   : > { %v643_v63 = vmax.f32 %v619_v41, 0.0  ;;  %v4532_v3 = vcombine.low %v1228_v0, %v1238_v58  ;;  %v1252_v43 = vsel %vm6482_vm1, %v1247_v50, %v1251_v19  ;;  %v1262_v6 = vsel %vm6482_vm1, %v1257_v51, %v1261_v25  ;;  %v6582_v0 = vld [vmem:[#allocation2 + $0x3c] sm:$0xf]  ;;  %v5611_v50 = vld [vmem:[#allocation8 + $0x10] sm:$0xff]  }
 0x198   : > { %v4574_v7 = vcombine.low %v1804_v39, %v1807_v62  ;;  %v4533_v8 = vcombine.low %v1252_v43, %v1262_v6  ;;  %5127 = vmatpush3.bf16.msra.mxu1 %v5605_v48  ;;  %v1811_v33 = vsel %vm6429_vm3, %v4567_v49, %v1810_v60  ;;  %v1812_v10 = vrot.slane %v1810_v60, 4  ;;  %5229 = vmatpush3.bf16.msra.mxu0 %v5610_v28  ;;  %v1117_v28 = vld [vmem:[#allocation2 + $0x6c] sm:$0xf] }
 0x199   : > { %v723_v57 = vsel %vm6548_vm15, %v643_v63, 0.0  ;;  %5110 = vmatprep.mubr.bf16.mxu1 %v4532_v3  ;;  %5128 = vmatprep.subr.bf16.mxu1 %v5607_v31  ;;  %v611_v13 = vadd.f32 %v6238_v16, %v610_v11  ;;  %v1264_v56 = vshrl.u32 %v6542_v45, 16  ;;  %v1267_v4 = vshll.u32 %v6542_v45, 16  ;;  %v5613_v11 = vld [vmem:[#allocation8 + $0x8] sm:$0xff]  }
 0x19a   : > { %v4769_v27 = vpack.c.bf16 %v723_v57, %v723_v57  ;;  %5111 = vmatmul.mubr.bf16.gmra.mxu1 %v4533_v8  ;;  %5178 = vmatprep.mubr.bf16.mxu0 %v4574_v7  ;;  %v1814_v48 = vsel %vm6429_vm3, %v1812_v10, %v1813_v2  ;;  %v1273_v18 = vshll.u32 %v6517_v1, 16  ;;  %v1277_v19 = vshrl.u32 %v6517_v1, 16 }
 0x19b   : > { %v1283_v21 = vshll.u32 %v6522_v52, 16  ;;  %v4575_v42 = vcombine.low %v1811_v33, %v1814_v48  ;;  %v641_v5 = vmax.f32 %v611_v13, 0.0  ;;  %v1266_v29 = vrot.slane %v1264_v56, 4  ;;  %5230 = vmatprep.subr.bf16.mxu0 %v5612_v34 }
 0x19c   : > { %v1006_v24 = vshrl.u32 %v4769_v27, 16  ;;  %v1009_v25 = vshll.u32 %v4769_v27, 16  ;;  %5129 = vmatpush3.bf16.msra.mxu1 %v5607_v31  ;;  %v1269_v47 = vrot.slane %v1267_v4, 5  ;;  %v1275_v30 = vrot.slane %v1273_v18, 5  ;;  %5231 = vmatpush3.bf16.msra.mxu0 %v5612_v34  ;;  %v1110_v4 = vld [vmem:[#allocation2 + $0x60] sm:$0xf] }
 0x19d   : > { %v1279_v32 = vrot.slane %v1277_v19, 4  ;;  %5179 = vmatmul.mubr.bf16.gmra.mxu0 %v4575_v42  ;;  %v721_v52 = vsel %vm6575_vm0, %v641_v5, 0.0  ;;  %v1285_v40 = vrot.slane %v1283_v21, 5  ;;  %5130 = vmatprep.subr.bf16.mxu1 %v5609_v17  ;;  %v622_v41 = vadd.f32 %v5089_v36, %v6238_v16  ;;  %v6593_v16 = vld [vmem:[#allocation8 + $0x1b8] sm:$0xff]   ;;  %v613_v19 = vpop.f32.mrf.mxu0  ;;  %v1752_v21 = vld [vmem:[#allocation2 + $0x48] sm:$0xe] }
 0x19e   : > { %v6584_v39 = vrot.slane %v1006_v24, 7  ;;  %v4767_v31 = vpack.c.bf16 %v721_v52, %v721_v52  ;;  %v1270_v51 = vor.u32 %v1269_v47, %v1266_v29  ;;  %v1288_v60 = vshrl.u32 %v6582_v0, 16  ;;  %5232 = vmatprep.subr.bf16.mxu0 %v5614_v35  ;;  %v6609_v29 = vld [vmem:[#allocation2 + $0x4c] sm:$0xf]  ;;  %v5616_v47 = vld [vmem:[#allocation8] sm:$0xff]  }
 0x19f   : > { %v1280_v49 = vor.u32 %v1279_v32, %v1275_v30  ;;  %v644_v63 = vmax.f32 %v622_v41, 0.0  ;;  %v1291_v2 = vshll.u32 %v6582_v0, 16  ;;  %v1297_v53 = vshll.u32 %v6531_v15, 16 }
 0x1a0   : > { %v1011_v58 = vor.u32 %v1009_v25, %v6584_v39  ;;  %v1012_v62 = vrot.slane %v6584_v39, 4  ;;  %v989_v3 = vshrl.u32 %v4767_v31, 16  ;;  %v992_v43 = vshll.u32 %v4767_v31, 16  ;;  %5131 = vmatpush3.bf16.msra.mxu1 %v5609_v17  ;;  %5233 = vmatpush3.bf16.msra.mxu0 %v5614_v35 }
 0x1a1   : > { %v1271_v6 = vrot.slane %v1270_v51, 4  ;;  %v1281_v7 = vrot.slane %v1280_v49, 4  ;;  %v724_v57 = vsel %vm6548_vm15, %v644_v63, 0.0  ;;  %v1290_v33 = vrot.slane %v1288_v60, 4  ;;  %5132 = vmatprep.subr.bf16.mxu1 %v5611_v50  ;;  %5282 = vmatprep.subr.bf16.mxu0 %v6593_v16  ;;  %v1753_v51 = vld [vmem:[#allocation2 + $0x54] sm:$0xe] }
 0x1a2   : > { %v1118_v8 = vsel %vm6279_vm5, %v1011_v58, %v1117_v28  ;;  %v1293_v10 = vrot.slane %v1291_v2, 5  ;;  %v6599_v34 = vrot.slane %v989_v3, 7  ;;  %v4770_v56 = vpack.c.bf16 %v724_v57, %v724_v57  ;;  %v1121_v49 = vld [vmem:[#allocation2 + $0x74] sm:$0x1]  ;;  %v6623_v2 = vld [vmem:[#allocation2 + $0x58] sm:$0xf] }
 0x1a3   : > { %1119 = vst [vmem:[#allocation2 + $0x6c] sm:$0xf] %v1118_v8  ;;  %v1276_v27 = vsel %vm6482_vm1, %v1271_v6, %v1275_v30  ;;  %v1286_v13 = vsel %vm6482_vm1, %v1281_v7, %v1285_v40  ;;  %v1301_v18 = vshrl.u32 %v6531_v15, 16  ;;  %v1299_v32 = vrot.slane %v1297_v53, 5  ;;  %v6613_v40 = vld [vmem:[#allocation2 + $0x50] sm:$0x1] }
 0x1a4   : > { %v4534_v17 = vcombine.low %v1276_v27, %v1286_v13  ;;  %v1294_v48 = vor.u32 %v1293_v10, %v1290_v33  ;;  %v994_v24 = vor.u32 %v992_v43, %v6599_v34  ;;  %v995_v25 = vrot.slane %v6599_v34, 4  ;;  %5133 = vmatpush3.bf16.msra.mxu1 %v5611_v50  ;;  %v5688_v50 = vld [vmem:[%s7471_s2] ss:$0 sm:$0xff]  ;;  %v6626_v7 = vld [vmem:[#allocation2 + $0x5c] sm:$0x1]  ;;  %v6630_v27 = vld [vmem:[#allocation8 + $0xf8] sm:$0xff]  }
 0x1a5   : > { %v1014_v42 = vshrl.u32 %v4770_v56, 16  ;;  %v1017_v5 = vshll.u32 %v4770_v56, 16  ;;  %v1303_v36 = vrot.slane %v1301_v18, 4  ;;  %v1307_v52 = vshll.u32 %v6533_v22, 16  ;;  %5134 = vmatprep.subr.bf16.mxu1 %v5613_v11  ;;  %v6646_v18 = vld [vmem:[#allocation2 + $0x10] sm:$0xf] }
 0x1a6   : > { %5114 = vmatprep.mubr.bf16.mxu1 %v4534_v17  ;;  %v1295_v30 = vrot.slane %v1294_v48, 4  ;;  %v1111_v35 = vsel %vm6279_vm5, %v994_v24, %v1110_v4  ;;  %v614_v28 = vadd.f32 %v5688_v50, %v613_v19  ;;  %v4568_v31 = vrot.slane %v1752_v21, 9  ;;  %v2282_v17 = vld [vmem:[#allocation2 + $0xc] sm:$0xf]  ;;  %v6648_v19 = vld [vmem:[#allocation2 + $0x14] sm:$0x1] }
 0x1a7   : > { %v1016_v41 = vrot.slane %v1014_v42, 7  ;;  %1112 = vst [vmem:[#allocation2 + $0x60] sm:$0xf] %v1111_v35  ;;  %v1304_v22 = vor.u32 %v1303_v36, %v1299_v32  ;;  %v1309_v58 = vrot.slane %v1307_v52, 5  ;;  %v1817_v63 = vrot.slane %v6609_v29, 5 }
 0x1a8   : > { %v1300_v60 = vsel %vm6482_vm1, %v1295_v30, %v1299_v32  ;;  %v642_v43 = vmax.f32 %v614_v28, 0.0  ;;  %v1820_v6 = vrot.slane %v6613_v40, 5  ;;  %5135 = vmatpush3.bf16.msra.mxu1 %v5613_v11  ;;  %v4569_v10 = vrot.slane %v1753_v51, 9  ;;  %v6652_v52 = vld [vmem:[#allocation2 + $0x48] sm:$0xf] }
 0x1a9   : > { %v1019_v54 = vor.u32 %v1017_v5, %v1016_v41  ;;  %v1021_v3 = vrot.slane %v1016_v41, 4  ;;  %v1305_v8 = vrot.slane %v1304_v22, 4  ;;  %v1818_v57 = vsel %vm6429_vm3, %v4568_v31, %v1817_v63  ;;  %5136 = vmatprep.subr.bf16.mxu1 %v5616_v47  ;;  %v1114_v35 = vld [vmem:[#allocation2 + $0x68] sm:$0x1] }
 0x1aa   : > { %v1819_v33 = vrot.slane %v1817_v63, 4  ;;  %v722_v11 = vsel %vm6575_vm0, %v642_v43, 0.0  ;;  %v1824_v4 = vrot.slane %v6623_v2, 5  ;;  %v2307_v32 = vshrl.u32 %v2282_v17, 16 }
 0x1ab   : > { %v1020_v13 = vsel %vm6302_vm10, %v1012_v62, %v1019_v54  ;;  %v1122_v56 = vsel %vm6179_vm2, %v1021_v3, %v1121_v49  ;;  %v1310_v48 = vsel %vm6482_vm1, %v1305_v8, %v1309_v58  ;;  %v4768_v53 = vpack.c.bf16 %v722_v11, %v722_v11 }
 0x1ac   : > { %1120 = vst [vmem:[#allocation2 + $0x70] sm:$0xf] %v1020_v13  ;;  %1123 = vst [vmem:[#allocation2 + $0x74] sm:$0x1] %v1122_v56  ;;  %v1821_v39 = vsel %vm6429_vm3, %v1819_v33, %v1820_v6  ;;  %v1827_v62 = vrot.slane %v6626_v7, 5  ;;  %v4535_v38 = vcombine.low %v1300_v60, %v1310_v48  ;;  %v1825_v24 = vsel %vm6429_vm3, %v4569_v10, %v1824_v4 }
 0x1ad   : > { %v4576_v21 = vcombine.low %v1818_v57, %v1821_v39  ;;  %v1826_v42 = vrot.slane %v1824_v4, 4  ;;  %5137 = vmatpush3.bf16.msra.mxu1 %v5616_v47  ;;  %v997_v5 = vshrl.u32 %v4768_v53, 16  ;;  %v1000_v30 = vshll.u32 %v4768_v53, 16  ;;  %v6662_v57 = vld [vmem:[#allocation2 + $0x54] sm:$0xf] }
 0x1ae   : > { %v2310_v36 = vshll.u32 %v2282_v17, 16  ;;  %5186 = vmatprep.subr.bf16.mxu1 %v6630_v27  ;;  %5115 = vmatmul.mubr.bf16.gmra.mxu1 %v4535_v38  ;;  %v2316_v50 = vshll.u32 %v6646_v18, 16  ;;  %v2320_v28 = vshrl.u32 %v6646_v18, 16  ;;  %v2326_v47 = vshll.u32 %v6648_v19, 16 }
 0x1af   : > { %5182 = vmatprep.mubr.bf16.mxu0 %v4576_v21  ;;  %v1828_v41 = vsel %vm6429_vm3, %v1826_v42, %v1827_v62  ;;  %v999_v31 = vrot.slane %v997_v5, 7  ;;  %v2309_v49 = vrot.slane %v2307_v32, 4  ;;  %v1312_v54 = vshrl.u32 %v6652_v52, 16 }
 0x1b0   : > { %v4577_v51 = vcombine.low %v1825_v24, %v1828_v41  ;;  %v2312_v60 = vrot.slane %v2310_v36, 5  ;;  %v2318_v22 = vrot.slane %v2316_v50, 5  ;;  %v2322_v58 = vrot.slane %v2320_v28, 4 }
 0x1b1   : > { %v2328_v63 = vrot.slane %v2326_v47, 5  ;;  %v1002_v3 = vor.u32 %v1000_v30, %v999_v31  ;;  %v1004_v43 = vrot.slane %v999_v31, 4  ;;  %v1315_v8 = vshll.u32 %v6652_v52, 16  ;;  %v2285_v30 = vld [vmem:[#allocation2 + $0x18] sm:$0xf] }
 0x1b2   : > { %5183 = vmatmul.mubr.bf16.gmra.mxu0 %v4577_v51  ;;  %v2313_v6 = vor.u32 %v2312_v60, %v2309_v49  ;;  %v2323_v33 = vor.u32 %v2322_v58, %v2318_v22  ;;  %v1314_v10 = vrot.slane %v1312_v54, 4  ;;  %v1321_v13 = vshll.u32 %v6609_v29, 16  ;;  %v6682_v31 = vld [vmem:[#allocation2 + $0x1c] sm:$0xf]  ;;  %v6690_v54 = vld [vmem:[#allocation2 + $0x20] sm:$0x1] }
 0x1b3   : > { %v1325_v56 = vshrl.u32 %v6609_v29, 16  ;;  %v1003_v11 = vsel %vm6302_vm10, %v995_v25, %v1002_v3  ;;  %v1115_v4 = vsel %vm6179_vm2, %v1004_v43, %v1114_v35  ;;  %v1317_v48 = vrot.slane %v1315_v8, 5  ;;  %v2288_v43 = vld [vmem:[#allocation2 + $0x24] sm:$0xf] }
 0x1b4   : > { %v2314_v17 = vrot.slane %v2313_v6, 4  ;;  %1113 = vst [vmem:[#allocation2 + $0x64] sm:$0xf] %v1003_v11  ;;  %1116 = vst [vmem:[#allocation2 + $0x68] sm:$0x1] %v1115_v4  ;;  %v2324_v53 = vrot.slane %v2323_v33, 4 }
 0x1b5   : > { %v1323_v39 = vrot.slane %v1321_v13, 5  ;;  %v1327_v62 = vrot.slane %v1325_v56, 4  ;;  %v1331_v38 = vshll.u32 %v6613_v40, 16  ;;  %v1318_v24 = vor.u32 %v1317_v48, %v1314_v10  ;;  %v6693_v10 = vld [vmem:[#allocation2 + $0x28] sm:$0xf] }
 0x1b6   : > { %v2319_v21 = vsel %vm6482_vm1, %v2314_v17, %v2318_v22  ;;  %v1336_v34 = vshrl.u32 %v6662_v57, 16  ;;  %v1339_v14 = vshll.u32 %v6662_v57, 16  ;;  %v2329_v20 = vsel %vm6482_vm1, %v2324_v53, %v2328_v63  ;;  %v6696_v17 = vld [vmem:[#allocation2 + $0x2c] sm:$0x1] }
 0x1b7   : > { %v1328_v25 = vor.u32 %v1327_v62, %v1323_v39  ;;  %v1333_v42 = vrot.slane %v1331_v38, 5  ;;  %v1345_v5 = vshll.u32 %v6623_v2, 16  ;;  %v4602_v32 = vcombine.low %v2319_v21, %v2329_v20 }
 0x1b8   : > { %v1319_v36 = vrot.slane %v1318_v24, 4  ;;  %v1338_v35 = vrot.slane %v1336_v34, 4  ;;  %v1341_v40 = vrot.slane %v1339_v14, 5  ;;  %v1349_v28 = vshrl.u32 %v6623_v2, 16 }
 0x1b9   : > { %v1329_v41 = vrot.slane %v1328_v25, 4  ;;  %v1347_v50 = vrot.slane %v1345_v5, 5  ;;  %v1355_v47 = vshll.u32 %v6626_v7, 16  ;;  %5234 = vmatprep.mubr.bf16.mxu0 %v4602_v32  ;;  %v2331_v60 = vshrl.u32 %v2285_v30, 16  ;;  %v2291_v32 = vld [vmem:[#allocation2 + $0x30] sm:$0xf] }
 0x1ba   : > { %v1324_v51 = vsel %vm6482_vm1, %v1319_v36, %v1323_v39  ;;  %v1342_v49 = vor.u32 %v1341_v40, %v1338_v35  ;;  %v1351_v58 = vrot.slane %v1349_v28, 4  ;;  %v4546_v63 = vcombine.low %v6441_v12, %v6409_v26 }
 0x1bb   : > { %v1334_v22 = vsel %vm6482_vm1, %v1329_v41, %v1333_v42  ;;  %v2334_v3 = vshll.u32 %v2285_v30, 16  ;;  %v2333_v8 = vrot.slane %v2331_v60, 4  ;;  %v2340_v33 = vshll.u32 %v6682_v31, 16 }
 0x1bc   : > { %v4536_v7 = vcombine.low %v1324_v51, %v1334_v22  ;;  %v1343_v6 = vrot.slane %v1342_v49, 4  ;;  %v1352_v13 = vor.u32 %v1351_v58, %v1347_v50  ;;  %v1357_v56 = vrot.slane %v1355_v47, 5 }
 0x1bd   : > { %v2336_v11 = vrot.slane %v2334_v3, 5  ;;  %v2344_v4 = vshrl.u32 %v6682_v31, 16  ;;  %v2342_v26 = vrot.slane %v2340_v33, 5  ;;  %v2350_v12 = vshll.u32 %v6690_v54, 16  ;;  %v6712_v3 = vld [vmem:[#allocation2 + $0x38] sm:$0x1] }
 0x1be   : > { %5118 = vmatprep.mubr.bf16.mxu1 %v4536_v7  ;;  %v2355_v48 = vshrl.u32 %v2288_v43, 16  ;;  %v2358_v53 = vshll.u32 %v2288_v43, 16  ;;  %v1348_v39 = vsel %vm6482_vm1, %v1343_v6, %v1347_v50  ;;  %v1353_v62 = vrot.slane %v1352_v13, 4  ;;  %v6706_v50 = vld [vmem:[#allocation2 + $0x34] sm:$0xf] }
 0x1bf   : > { %v2337_v38 = vor.u32 %v2336_v11, %v2333_v8  ;;  %v2346_v21 = vrot.slane %v2344_v4, 4  ;;  %v2364_v14 = vshll.u32 %v6693_v10, 16  ;;  %v2368_v20 = vshrl.u32 %v6693_v10, 16  ;;  %v2294_v7 = vld [vmem:[#allocation2 + $0x3c] sm:$0xf] }
 0x1c0   : > { %v2357_v24 = vrot.slane %v2355_v48, 4  ;;  %v2360_v34 = vrot.slane %v2358_v53, 5  ;;  %v1358_v25 = vsel %vm6482_vm1, %v1353_v62, %v1357_v56  ;;  %v2374_v30 = vshll.u32 %v6696_v17, 16  ;;  %v6718_v56 = vld [vmem:[#allocation2 + $0x40] sm:$0xf] }
 0x1c1   : > { %v2338_v42 = vrot.slane %v2337_v38, 4  ;;  %v2347_v5 = vor.u32 %v2346_v21, %v2342_v26  ;;  %v4537_v36 = vcombine.low %v1348_v39, %v1358_v25  ;;  %v2366_v40 = vrot.slane %v2364_v14, 5  ;;  %v6725_v62 = vld [vmem:[#allocation2 + $0x44] sm:$0x1] }
 0x1c2   : > { %v2361_v35 = vor.u32 %v2360_v34, %v2357_v24  ;;  %v2370_v41 = vrot.slane %v2368_v20, 4  ;;  %v2352_v51 = vrot.slane %v2350_v12, 5  ;;  %v2376_v49 = vrot.slane %v2374_v30, 5 }
 0x1c3   : > { %v2343_v28 = vsel %vm6482_vm1, %v2338_v42, %v2342_v26  ;;  %v2348_v47 = vrot.slane %v2347_v5, 4  ;;  %5119 = vmatmul.mubr.bf16.gmra.mxu1 %v4537_v36  ;;  %v4547_v58 = vcombine.low %v6460_v37, %v6425_v46  ;;  %v2379_v43 = vshrl.u32 %v2291_v32, 16  ;;  %v5620_v37 = vld [vmem:[#allocation8 + $0x1b0] sm:$0xff]  }
 0x1c4   : > { %v2362_v60 = vrot.slane %v2361_v35, 4  ;;  %v2371_v22 = vor.u32 %v2370_v41, %v2366_v40  ;;  %5138 = vmatprep.mubr.bf16.mxu1 %v4546_v63  ;;  %v2382_v8 = vshll.u32 %v2291_v32, 16  ;;  %v2388_v33 = vshll.u32 %v6706_v50, 16  ;;  %v2297_v42 = vld [vmem:[#allocation2 + $0x48] sm:$0xf] }
 0x1c5   : > { %v2353_v6 = vsel %vm6482_vm1, %v2348_v47, %v2352_v51  ;;  %v2392_v13 = vshrl.u32 %v6706_v50, 16  ;;  %v2381_v26 = vrot.slane %v2379_v43, 4  ;;  %v2398_v53 = vshll.u32 %v6712_v3, 16  ;;  %v5622_v5 = vld [vmem:[#allocation8 + $0xf0] sm:$0xff]   ;;  %v5623_v47 = vld [vmem:[#allocation8 + $0x1a8] sm:$0xff]  }
 0x1c6   : > { %v4603_v11 = vcombine.low %v2343_v28, %v2353_v6  ;;  %v2367_v4 = vsel %vm6482_vm1, %v2362_v60, %v2366_v40  ;;  %v2372_v46 = vrot.slane %v2371_v22, 4  ;;  %v2384_v12 = vrot.slane %v2382_v8, 5  ;;  %v2300_v6 = vld [vmem:[#allocation2 + $0x54] sm:$0xf] }
 0x1c7   : > { %v2390_v48 = vrot.slane %v2388_v33, 5  ;;  %v2394_v63 = vrot.slane %v2392_v13, 4  ;;  %v2403_v38 = vshrl.u32 %v2294_v7, 16  ;;  %v2406_v21 = vshll.u32 %v2294_v7, 16  ;;  %v6742_v7 = vld [vmem:[#allocation2 + $0x50] sm:$0x1] }
 0x1c8   : > { %5235 = vmatmul.mubr.bf16.vlgmr.msra.gmra.mxu0 %v4603_v11  ;;  %v2377_v39 = vsel %vm6482_vm1, %v2372_v46, %v2376_v49  ;;  %v2412_v24 = vshll.u32 %v6718_v56, 16  ;;  %v4548_v14 = vcombine.low %v6495_v23, %v6468_v59  ;;  %v2385_v20 = vor.u32 %v2384_v12, %v2381_v26  ;;  %v6733_v23 = vld [vmem:[#allocation2 + $0x4c] sm:$0xf]  ;;  %v5626_v11 = vld [vmem:[#allocation8 + $0x1a0] sm:$0xff]  }
 0x1c9   : > { %v4604_v34 = vcombine.low %v2367_v4, %v2377_v39  ;;  %5283 = vmatpush3.bf16.msra.mxu0 %v6593_v16  ;;  %v2395_v25 = vor.u32 %v2394_v63, %v2390_v48  ;;  %v2405_v30 = vrot.slane %v2403_v38, 4  ;;  %v2408_v32 = vrot.slane %v2406_v21, 5 }
 0x1ca   : > { %5284 = vmatprep.subr.bf16.mxu0 %v5620_v37  ;;  %v2414_v36 = vrot.slane %v2412_v24, 5  ;;  %v2416_v35 = vshrl.u32 %v6718_v56, 16  ;;  %v2386_v40 = vrot.slane %v2385_v20, 4  ;;  %v2400_v28 = vrot.slane %v2398_v53, 5 }
 0x1cb   : > { %5238 = vmatprep.mubr.bf16.mxu0 %v4604_v34  ;;  %v2396_v41 = vrot.slane %v2395_v25, 4  ;;  %v2422_v16 = vshll.u32 %v6725_v62, 16  ;;  %5139 = vmatmul.mubr.bf16.vlgmr.msra.gmra.mxu1 %v4547_v58  ;;  %v2409_v51 = vor.u32 %v2408_v32, %v2405_v30  ;;  %v2427_v49 = vshrl.u32 %v2297_v42, 16  ;;  %v6751_v34 = vld [vmem:[#allocation2 + $0x5c] sm:$0x1] }
 0x1cc   : > { %v2418_v59 = vrot.slane %v2416_v35, 4  ;;  %5187 = vmatpush3.bf16.msra.mxu1 %v6630_v27  ;;  %5142 = vmatprep.mubr.bf16.mxu1 %v4548_v14  ;;  %v2391_v60 = vsel %vm6482_vm1, %v2386_v40, %v2390_v48  ;;  %v4549_v43 = vcombine.low %v6510_v44, %v6478_v9  ;;  %v2430_v58 = vshll.u32 %v2297_v42, 16  ;;  %v5624_v27 = vld [vmem:[#allocation8 + $0xe8] sm:$0xff]   ;;  %v6746_v9 = vld [vmem:[#allocation2 + $0x58] sm:$0xf] }
 0x1cd   : > { %v2401_v22 = vsel %vm6482_vm1, %v2396_v41, %v2400_v28  ;;  %5285 = vmatpush3.bf16.msra.mxu0 %v5620_v37  ;;  %5188 = vmatprep.subr.bf16.mxu1 %v5622_v5  ;;  %v2410_v33 = vrot.slane %v2409_v51, 4  ;;  %v2429_v4 = vrot.slane %v2427_v49, 4  ;;  %v2424_v46 = vrot.slane %v2422_v16, 5  ;;  %v2303_v41 = vld [vmem:[#allocation2 + $0x60] sm:$0xf] }
 0x1ce   : > { %v4605_v8 = vcombine.low %v2391_v60, %v2401_v22  ;;  %v2419_v13 = vor.u32 %v2418_v59, %v2414_v36  ;;  %5286 = vmatprep.subr.bf16.mxu0 %v5623_v47  ;;  %v2432_v26 = vrot.slane %v2430_v58, 5  ;;  %v2436_v12 = vshll.u32 %v6733_v23, 16  ;;  %v6760_v59 = vld [vmem:[#allocation2 + $0x64] sm:$0xf] }
 0x1cf   : > { %v2440_v48 = vshrl.u32 %v6733_v23, 16  ;;  %v2446_v37 = vshll.u32 %v6742_v7, 16  ;;  %v2451_v63 = vshrl.u32 %v2300_v6, 16  ;;  %v2454_v53 = vshll.u32 %v2300_v6, 16  ;;  %v5630_v6 = vld [vmem:[#allocation8 + $0xd8] sm:$0xff]  }
 0x1d0   : > { %5239 = vmatmul.mubr.bf16.gmra.mxu0 %v4605_v8  ;;  %v2420_v44 = vrot.slane %v2419_v13, 4  ;;  %5189 = vmatpush3.bf16.msra.mxu1 %v5622_v5  ;;  %v2415_v39 = vsel %vm6482_vm1, %v2410_v33, %v2414_v36  ;;  %v2433_v38 = vor.u32 %v2432_v26, %v2429_v4  ;;  %v2438_v21 = vrot.slane %v2436_v12, 5  ;;  %v5628_v5 = vld [vmem:[#allocation8 + $0xe0] sm:$0xff]   ;;  %v5629_v36 = vld [vmem:[#allocation8 + $0x198] sm:$0xff]   ;;  %v6764_v8 = vld [vmem:[#allocation2 + $0x68] sm:$0x1] }
 0x1d1   : > { %v2442_v24 = vrot.slane %v2440_v48, 4  ;;  %5287 = vmatpush3.bf16.msra.mxu0 %v5623_v47  ;;  %5190 = vmatprep.subr.bf16.mxu1 %v5624_v27  ;;  %v2453_v20 = vrot.slane %v2451_v63, 4  ;;  %v2456_v25 = vrot.slane %v2454_v53, 5  ;;  %v2460_v42 = vshll.u32 %v6746_v9, 16  ;;  %v5632_v26 = vld [vmem:[#allocation8 + $0x190] sm:$0xff]  }
 0x1d2   : > { %v2425_v14 = vsel %vm6482_vm1, %v2420_v44, %v2424_v46  ;;  %5288 = vmatprep.subr.bf16.mxu0 %v5626_v11  ;;  %v2434_v32 = vrot.slane %v2433_v38, 4  ;;  %v2464_v40 = vshrl.u32 %v6746_v9, 16  ;;  %v4550_v28 = vcombine.low %v6542_v45, %v6517_v1 }
 0x1d3   : > { %v4606_v30 = vcombine.low %v2415_v39, %v2425_v14  ;;  %v2443_v35 = vor.u32 %v2442_v24, %v2438_v21  ;;  %5143 = vmatmul.mubr.bf16.gmra.mxu1 %v4549_v43  ;;  %v2457_v16 = vor.u32 %v2456_v25, %v2453_v20  ;;  %v2462_v47 = vrot.slane %v2460_v42, 5 }
 0x1d4   : > { %v2470_v51 = vshll.u32 %v6751_v34, 16  ;;  %5191 = vmatpush3.bf16.msra.mxu1 %v5624_v27  ;;  %v2448_v60 = vrot.slane %v2446_v37, 5  ;;  %v2466_v22 = vrot.slane %v2464_v40, 4  ;;  %5146 = vmatprep.mubr.bf16.mxu1 %v4550_v28  ;;  %v2439_v58 = vsel %vm6482_vm1, %v2434_v32, %v2438_v21  ;;  %v5634_v21 = vld [vmem:[#allocation8 + $0xd0] sm:$0xff]   ;;  %v5635_v32 = vld [vmem:[#allocation8 + $0x188] sm:$0xff]  }
 0x1d5   : > { %5242 = vmatprep.mubr.bf16.mxu0 %v4606_v30  ;;  %v2444_v49 = vrot.slane %v2443_v35, 4  ;;  %5289 = vmatpush3.bf16.msra.mxu0 %v5626_v11  ;;  %v2458_v43 = vrot.slane %v2457_v16, 4  ;;  %v2475_v1 = vshrl.u32 %v2303_v41, 16  ;;  %v2478_v45 = vshll.u32 %v2303_v41, 16  ;;  %v5637_v35 = vld [vmem:[#allocation8 + $0xc8] sm:$0xff]  }
 0x1d6   : > { %5192 = vmatprep.subr.bf16.mxu1 %v5628_v5  ;;  %5290 = vmatprep.subr.bf16.mxu0 %v5629_v36  ;;  %v2467_v13 = vor.u32 %v2466_v22, %v2462_v47  ;;  %v2484_v27 = vshll.u32 %v6760_v59, 16  ;;  %v2488_v4 = vshrl.u32 %v6760_v59, 16  ;;  %v2472_v46 = vrot.slane %v2470_v51, 5  ;;  %v2709_v51 = vld [vmem:[#allocation2 + $0x18] sm:$0xe] }
 0x1d7   : > { %v2449_v33 = vsel %vm6482_vm1, %v2444_v49, %v2448_v60  ;;  %v2477_v12 = vrot.slane %v2475_v1, 4  ;;  %v2480_v48 = vrot.slane %v2478_v45, 5  ;;  %v2494_v53 = vshll.u32 %v6764_v8, 16  ;;  %v2710_v45 = vld [vmem:[#allocation2 + $0x24] sm:$0xe] }
 0x1d8   : > { %v4607_v11 = vcombine.low %v2439_v58, %v2449_v33  ;;  %5193 = vmatpush3.bf16.msra.mxu1 %v5628_v5  ;;  %v2468_v44 = vrot.slane %v2467_v13, 4  ;;  %v2486_v37 = vrot.slane %v2484_v27, 5  ;;  %v2490_v63 = vrot.slane %v2488_v4, 4  ;;  %v5643_v33 = vld [vmem:[#allocation8 + $0x238] sm:$0xff]  }
 0x1d9   : > { %5194 = vmatprep.subr.bf16.mxu1 %v5630_v6  ;;  %v4551_v39 = vcombine.low %v6582_v0, %v6531_v15  ;;  %v4552_v38 = vcombine.low %v6652_v52, %v6609_v29  ;;  %v2481_v24 = vor.u32 %v2480_v48, %v2477_v12  ;;  %v2463_v14 = vsel %vm6482_vm1, %v2458_v43, %v2462_v47  ;;  %v2708_v15 = vld [vmem:[#allocation2 + $0xc] sm:$0xe]  ;;  %v5639_v47 = vld [vmem:[#allocation8 + $0x180] sm:$0xff]   ;;  %v5642_v12 = vld [vmem:[#allocation2 + $0x24] sm:$0xff]  }
 0x1da   : > { %5243 = vmatmul.mubr.bf16.gmra.mxu0 %v4607_v11  ;;  %v2473_v20 = vsel %vm6482_vm1, %v2468_v44, %v2472_v46  ;;  %v2491_v25 = vor.u32 %v2490_v63, %v2486_v37  ;;  %v2496_v42 = vrot.slane %v2494_v53, 5  ;;  %v2742_v29 = vrot.slane %v6646_v18, 5  ;;  %v5636_v18 = vld [vmem:[#allocation2 + $0x18] sm:$0xff]   ;;  %v5647_v48 = vld [vmem:[#allocation8 + $0x230] sm:$0xff]   ;;  %v5644_v63 = vld [vmem:[#allocation2 + $0x30] sm:$0xff]  }
 0x1db   : > { %5291 = vmatpush3.bf16.msra.mxu0 %v5629_v36  ;;  %v4608_v30 = vcombine.low %v2463_v14, %v2473_v20  ;;  %5147 = vmatmul.mubr.bf16.gmra.mxu1 %v4551_v39  ;;  %v2482_v5 = vrot.slane %v2481_v24, 4  ;;  %v4618_v40 = vrot.slane %v2708_v15, 9  ;;  %v2745_v28 = vrot.slane %v6648_v19, 5  ;;  %v5641_v19 = vld [vmem:[#allocation8 + $0xc0] sm:$0xff]   ;;  %v5648_v14 = vld [vmem:[#allocation2 + $0x24] sm:$0xff]  }
 0x1dc   : > { %5292 = vmatprep.subr.bf16.mxu0 %v5632_v26  ;;  %5195 = vmatpush3.bf16.msra.mxu1 %v5630_v6  ;;  %v2492_v0 = vrot.slane %v2491_v25, 4  ;;  %v2744_v41 = vrot.slane %v2742_v29, 4  ;;  %v4553_v22 = vcombine.low %v6662_v57, %v6623_v2  ;;  %v2749_v43 = vrot.slane %v6682_v31, 5  ;;  %v5640_v6 = vld [vmem:[#allocation2 + $0xc] sm:$0xff]   ;;  %v5646_v39 = vld [vmem:[#allocation2 + $0x18] sm:$0xff]  }
 0x1dd   : > { %5150 = vmatprep.mubr.bf16.mxu1 %v4552_v38  ;;  %5246 = vmatprep.mubr.bf16.mxu0 %v4608_v30  ;;  %v2487_v52 = vsel %vm6482_vm1, %v2482_v5, %v2486_v37  ;;  %v6787_v49 = vsel %vm6429_vm3, %v4618_v40, %v2742_v29  ;;  %v4619_v1 = vrot.slane %v2709_v51, 9  ;;  %v2752_v27 = vrot.slane %v6690_v54, 5  ;;  %v5645_v57 = vld [vmem:[#allocation8 + $0x178] sm:$0xff]   ;;  %v5649_v38 = vld [vmem:[#allocation8 + $0x170] sm:$0xff]   ;;  %v2712_v24 = vld [vmem:[#allocation2 + $0x3c] sm:$0xe] }
 0x1de   : > { %5196 = vmatprep.subr.bf16.mxu1 %v5634_v21  ;;  %v2497_v36 = vsel %vm6482_vm1, %v2492_v0, %v2496_v42  ;;  %v6791_v60 = vsel %vm6429_vm3, %v2744_v41, %v2745_v28  ;;  %v2751_v13 = vrot.slane %v2749_v43, 4  ;;  %v2756_v4 = vrot.slane %v6693_v10, 5  ;;  %v2711_v10 = vld [vmem:[#allocation2 + $0x30] sm:$0xe]  ;;  %v5651_v30 = vld [vmem:[#allocation8 + $0x228] sm:$0xff]   ;;  %v5655_v40 = vld [vmem:[#allocation8 + $0x220] sm:$0xff]  }
 0x1df   : > { %5293 = vmatpush3.bf16.msra.mxu0 %v5632_v26  ;;  %v4609_v16 = vcombine.low %v2487_v52, %v2497_v36  ;;  %v4626_v58 = vcombine.low %v6787_v49, %v6791_v60  ;;  %v6802_v2 = vsel %vm6429_vm3, %v4619_v1, %v2749_v43  ;;  %v4620_v11 = vrot.slane %v2710_v45, 9  ;;  %v5650_v36 = vld [vmem:[#allocation2 + $0x3c] sm:$0xff]   ;;  %v2714_v28 = vld [vmem:[#allocation2 + $0x54] sm:$0xe] }
 0x1e0   : > { %5294 = vmatprep.subr.bf16.mxu0 %v5635_v32  ;;  %5197 = vmatpush3.bf16.msra.mxu1 %v5634_v21  ;;  %v6806_v31 = vsel %vm6429_vm3, %v2751_v13, %v2752_v27  ;;  %v2758_v46 = vrot.slane %v2756_v4, 4  ;;  %v2759_v26 = vrot.slane %v6696_v17, 5  ;;  %v2763_v53 = vrot.slane %v6706_v50, 5  ;;  %v5657_v51 = vld [vmem:[#allocation8 + $0x160] sm:$0xff]  }
 0x1e1   : > { %5198 = vmatprep.subr.bf16.mxu1 %v5637_v35  ;;  %v4627_v54 = vcombine.low %v6802_v2, %v6806_v31  ;;  %v6813_v44 = vsel %vm6429_vm3, %v4620_v11, %v2756_v4  ;;  %v4621_v21 = vrot.slane %v2711_v10, 9  ;;  %v2766_v25 = vrot.slane %v6712_v3, 5  ;;  %v5653_v3 = vld [vmem:[#allocation8 + $0x168] sm:$0xff]  }
 0x1e2   : > { %5247 = vmatmul.mubr.bf16.gmra.mxu0 %v4609_v16  ;;  %v6817_v37 = vsel %vm6429_vm3, %v2758_v46, %v2759_v26  ;;  %v2765_v20 = vrot.slane %v2763_v53, 4  ;;  %v2770_v42 = vrot.slane %v6718_v56, 5  ;;  %v2773_v0 = vrot.slane %v6725_v62, 5  ;;  %v5652_v16 = vld [vmem:[#allocation2 + $0x48] sm:$0xff]   ;;  %v5656_v1 = vld [vmem:[#allocation2 + $0x3c] sm:$0xff]   ;;  %v5661_v46 = vld [vmem:[#allocation8 + $0x158] sm:$0xff]  }
 0x1e3   : > { %5295 = vmatpush3.bf16.msra.mxu0 %v5635_v32  ;;  %5298 = vmatprep.mubr.bf16.mxu0 %v5636_v18  ;;  %v4628_v17 = vcombine.low %v6813_v44, %v6817_v37  ;;  %v6826_v50 = vsel %vm6429_vm3, %v4621_v21, %v2763_v53  ;;  %v4622_v32 = vrot.slane %v2712_v24, 9  ;;  %v2777_v41 = vrot.slane %v6733_v23, 5  ;;  %v6846_v18 = vld [vmem:[#allocation2 + $0x1c] sm:$0xf]  ;;  %v2715_v23 = vld [vmem:[#allocation2 + $0x60] sm:$0xe] }
 0x1e4   : > { %5151 = vmatmul.mubr.bf16.gmra.mxu1 %v4553_v22  ;;  %5296 = vmatprep.subr.bf16.mxu0 %v5639_v47  ;;  %v6830_v5 = vsel %vm6429_vm3, %v2765_v20, %v2766_v25  ;;  %v2772_v15 = vrot.slane %v2770_v42, 4  ;;  %v2780_v43 = vrot.slane %v6742_v7, 5  ;;  %v4624_v45 = vrot.slane %v2714_v28, 9  ;;  %v5663_v53 = vld [vmem:[#allocation8 + $0x210] sm:$0xff]   ;;  %v5660_v21 = vld [vmem:[#allocation2 + $0x60] sm:$0xff]  }
 0x1e5   : > { %5199 = vmatpush3.bf16.msra.mxu1 %v5637_v35  ;;  %5202 = vmatprep.mubr.bf16.mxu1 %v5640_v6  ;;  %v4629_v56 = vcombine.low %v6826_v50, %v6830_v5  ;;  %v6837_v29 = vsel %vm6429_vm3, %v4622_v32, %v2770_v42  ;;  %v2713_v35 = vld [vmem:[#allocation2 + $0x48] sm:$0xe]  ;;  %v2784_v6 = vrot.slane %v6746_v9, 5  ;;  %v2787_v7 = vrot.slane %v6751_v34, 5  ;;  %v6878_v24 = vld [vmem:[#allocation2 + $0x20] sm:$0x1] }
 0x1e6   : > { %5200 = vmatprep.subr.bf16.mxu1 %v5641_v19  ;;  %v6841_v52 = vsel %vm6429_vm3, %v2772_v15, %v2773_v0  ;;  %v4623_v22 = vrot.slane %v2713_v35, 9  ;;  %v3709_v9 = vrot.slane %v6846_v18, 5  ;;  %v4625_v10 = vrot.slane %v2715_v23, 9  ;;  %v6880_v20 = vld [vmem:[#allocation2 + $0x28] sm:$0xf]  ;;  %v5664_v42 = vld [vmem:[#allocation2 + $0x54] sm:$0xff]  }
 0x1e7   : > { %5297 = vmatpush3.bf16.msra.mxu0 %v5639_v47  ;;  %v4630_v62 = vcombine.low %v6837_v29, %v6841_v52  ;;  %v5654_v47 = vld [vmem:[#allocation2 + $0x30] sm:$0xff]   ;;  %v2786_v4 = vrot.slane %v2784_v6, 4  ;;  %v6864_v11 = vsel %vm6429_vm3, %v4624_v45, %v2784_v6  ;;  %v2791_v34 = vrot.slane %v6760_v59, 5  ;;  %v5662_v59 = vld [vmem:[#allocation2 + $0x48] sm:$0xff]   ;;  %v5667_v0 = vld [vmem:[#allocation8 + $0x208] sm:$0xff]  }
 0x1e8   : > { %5346 = vmatprep.subr.bf16.mxu0 %v5643_v33  ;;  %v6852_v13 = vsel %vm6429_vm3, %v4623_v22, %v2777_v41  ;;  %v6886_v32 = vld [vmem:[#allocation2 + $0x34] sm:$0xf]  ;;  %v3716_v35 = vrot.slane %v6880_v20, 5  ;;  %v6897_v22 = vld [vmem:[#allocation2 + $0x2c] sm:$0x1]  ;;  %v5669_v23 = vld [vmem:[#allocation2 + $0x60] sm:$0xff]  }
 0x1e9   : > { %5201 = vmatpush3.bf16.msra.mxu1 %v5641_v19  ;;  %v2779_v19 = vrot.slane %v2777_v41, 4  ;;  %v6868_v26 = vsel %vm6429_vm3, %v2786_v4, %v2787_v7  ;;  %v5668_v41 = vld [vmem:[#allocation8 + $0x148] sm:$0xff]   ;;  %v3723_v28 = vrot.slane %v6886_v32, 5  ;;  %v6903_v45 = vld [vmem:[#allocation2 + $0x4c] sm:$0xf]  ;;  %v5676_v5 = vld [vmem:[#allocation8 + $0x1d8] sm:$0xff]  }
 0x1ea   : > { %5299 = vmatmul.mubr.bf16.vlgmr.msra.gmra.mxu0 %v5642_v12  ;;  %5250 = vmatprep.subr.bf16.mxu1 %v5645_v57  ;;  %v2794_v12 = vrot.slane %v6764_v8, 5  ;;  %v5665_v8 = vld [vmem:[#allocation8 + $0x150] sm:$0xff]   ;;  %v3718_v6 = vrot.slane %v3716_v35, 4  ;;  %v3676_v4 = vld [vmem:[#allocation2 + $0x24] sm:$0xe]  ;;  %v3331_v29 = vshll.u32 %v6886_v32, 16 }
 0x1eb   : > { %5302 = vmatprep.mubr.bf16.mxu0 %v5644_v63  ;;  %5347 = vmatpush3.bf16.msra.mxu0 %v5643_v33  ;;  %v5659_v33 = vld [vmem:[#allocation8 + $0x218] sm:$0xff]   ;;  %v6856_v27 = vsel %vm6429_vm3, %v2779_v19, %v2780_v43  ;;  %v6899_v19 = vld [vmem:[#allocation2 + $0x38] sm:$0x1]  ;;  %v3725_v7 = vrot.slane %v3723_v28, 4  ;;  %v3681_v2 = vld [vmem:[#allocation2 + $0x60] sm:$0xe] }
 0x1ec   : > { %5203 = vmatmul.mubr.bf16.vlgmr.msra.gmra.mxu1 %v5646_v39  ;;  %5348 = vmatprep.subr.bf16.mxu0 %v5647_v48  ;;  %v5658_v63 = vld [vmem:[#allocation2 + $0x54] sm:$0xff]   ;;  %v6876_v39 = vsel %vm6429_vm3, %v4625_v10, %v2791_v34  ;;  %v3726_v10 = vrot.slane %v6899_v19, 5  ;;  %v3335_v52 = vshrl.u32 %v6886_v32, 16 }
 0x1ed   : > { %5251 = vmatpush3.bf16.msra.mxu1 %v5645_v57  ;;  %5206 = vmatprep.mubr.bf16.mxu1 %v5648_v14  ;;  %v4631_v57 = vcombine.low %v6852_v13, %v6856_v27  ;;  %v3711_v14 = vrot.slane %v3709_v9, 4  ;;  %v3379_v13 = vshll.u32 %v6903_v45, 16  ;;  %v3383_v27 = vshrl.u32 %v6903_v45, 16 }
 0x1ee   : > { %5252 = vmatprep.subr.bf16.mxu1 %v5649_v38 }
 0x1ef   : > { %5349 = vmatpush3.bf16.msra.mxu0 %v5647_v48  ;;  %v4632_v48 = vcombine.low %v6864_v11, %v6868_v26 }
 0x1f0   : > { %5350 = vmatprep.subr.bf16.mxu0 %v5651_v30 }
 0x1f1   : > { %5253 = vmatpush3.bf16.msra.mxu1 %v5649_v38  ;;  %v2793_v38 = vrot.slane %v2791_v34, 4 }
 0x1f2   : > { %5303 = vmatmul.mubr.bf16.gmra.mxu0 %v5650_v36  ;;  %5254 = vmatprep.subr.bf16.mxu1 %v5653_v3 }
 0x1f3   : > { %5306 = vmatprep.mubr.bf16.mxu0 %v5652_v16  ;;  %5351 = vmatpush3.bf16.msra.mxu0 %v5651_v30  ;;  %v6884_v25 = vsel %vm6429_vm3, %v2793_v38, %v2794_v12  ;;  %v3675_v30 = vld [vmem:[#allocation2 + $0x18] sm:$0xe]  ;;  %v3737_v12 = vrot.slane %v6903_v45, 5 }
 0x1f4   : > { %5207 = vmatmul.mubr.bf16.gmra.mxu1 %v5654_v47  ;;  %5352 = vmatprep.subr.bf16.mxu0 %v5655_v40  ;;  %v4633_v15 = vcombine.low %v6876_v39, %v6884_v25  ;;  %v4674_v36 = vrot.slane %v3675_v30, 9  ;;  %v5670_v16 = vld [vmem:[#allocation8 + $0x200] sm:$0xff]   ;;  %v5666_v47 = vld [vmem:[#allocation2 + $0x6c] sm:$0xff]   ;;  %v3264_v39 = vld [vmem:[#allocation2 + $0x54] sm:$0xf] }
 0x1f5   : > { %5255 = vmatpush3.bf16.msra.mxu1 %v5653_v3  ;;  %5210 = vmatprep.mubr.bf16.mxu1 %v5656_v1  ;;  %v3712_v3 = vrot.slane %v6878_v24, 5  ;;  %v6901_v1 = vld [vmem:[#allocation2 + $0x40] sm:$0xf]  ;;  %v3739_v30 = vrot.slane %v3737_v12, 4 }
 0x1f6   : > { %5256 = vmatprep.subr.bf16.mxu1 %v5657_v51  ;;  %v3730_v34 = vrot.slane %v6901_v1, 5 }
 0x1f7   : > { %5353 = vmatpush3.bf16.msra.mxu0 %v5655_v40  ;;  %v3713_v40 = vsel %vm6429_vm3, %v3711_v14, %v3712_v3  ;;  %v6918_v14 = vld [vmem:[#allocation2 + $0x44] sm:$0x1] }
 0x1f8   : > { %5354 = vmatprep.subr.bf16.mxu0 %v5659_v33 }
 0x1f9   : > { %5257 = vmatpush3.bf16.msra.mxu1 %v5657_v51  ;;  %v3710_v51 = vsel %vm6429_vm3, %v4674_v36, %v3709_v9  ;;  %v3719_v9 = vrot.slane %v6897_v22, 5  ;;  %v3678_v36 = vld [vmem:[#allocation2 + $0x3c] sm:$0xe] }
 0x1fa   : > { %5307 = vmatmul.mubr.bf16.gmra.mxu0 %v5658_v63  ;;  %5258 = vmatprep.subr.bf16.mxu1 %v5661_v46  ;;  %v4682_v43 = vcombine.low %v3710_v51, %v3713_v40  ;;  %v4675_v63 = vrot.slane %v3676_v4, 9  ;;  %v3679_v40 = vld [vmem:[#allocation2 + $0x48] sm:$0xe]  ;;  %v3249_v51 = vld [vmem:[#allocation2 + $0x18] sm:$0xf] }
 0x1fb   : > { %5310 = vmatprep.mubr.bf16.mxu0 %v5660_v21  ;;  %5355 = vmatpush3.bf16.msra.mxu0 %v5659_v33  ;;  %v5671_v33 = vld [vmem:[#allocation8 + $0x140] sm:$0xff]   ;;  %v3727_v21 = vsel %vm6429_vm3, %v3725_v7, %v3726_v10  ;;  %v6936_v4 = vld [vmem:[#allocation2 + $0x64] sm:$0xf]  ;;  %v6948_v10 = vld [vmem:[#allocation2 + $0x68] sm:$0x1] }
 0x1fc   : > { %5211 = vmatmul.mubr.bf16.gmra.mxu1 %v5662_v59  ;;  %5356 = vmatprep.subr.bf16.mxu0 %v5663_v53  ;;  %v5672_v59 = vld [vmem:[#allocation8 + $0x1f8] sm:$0xff]   ;;  %v6941_v7 = vld [vmem:[#allocation2 + $0x5c] sm:$0x1]  ;;  %v3751_v31 = vrot.slane %v6936_v4, 5 }
 0x1fd   : > { %5259 = vmatpush3.bf16.msra.mxu1 %v5661_v46  ;;  %5214 = vmatprep.mubr.bf16.mxu1 %v5664_v42  ;;  %v3677_v46 = vld [vmem:[#allocation2 + $0x30] sm:$0xe]  ;;  %v6920_v42 = vld [vmem:[#allocation2 + $0x50] sm:$0x1] }
 0x1fe   : > { %5260 = vmatprep.subr.bf16.mxu1 %v5665_v8  ;;  %v4676_v38 = vrot.slane %v3677_v46, 9  ;;  %v5674_v46 = vld [vmem:[#allocation8 + $0x1e8] sm:$0xff]  }
 0x1ff   : > { %5357 = vmatpush3.bf16.msra.mxu0 %v5663_v53  ;;  %v3720_v53 = vsel %vm6429_vm3, %v3718_v6, %v3719_v9  ;;  %v4678_v6 = vrot.slane %v3679_v40, 9 }
 0x200   : > { %5358 = vmatprep.subr.bf16.mxu0 %v5667_v0  ;;  %v3724_v60 = vsel %vm6429_vm3, %v4676_v38, %v3723_v28  ;;  %v4677_v28 = vrot.slane %v3678_v36, 9  ;;  %v5675_v36 = vld [vmem:[#allocation8 + $0x1e0] sm:$0xff]  }
 0x201   : > { %5261 = vmatpush3.bf16.msra.mxu1 %v5665_v8  ;;  %v3717_v8 = vsel %vm6429_vm3, %v4675_v63, %v3716_v35  ;;  %v4684_v3 = vcombine.low %v3724_v60, %v3727_v21  ;;  %v3733_v35 = vrot.slane %v6918_v14, 5  ;;  %v3738_v9 = vsel %vm6429_vm3, %v4678_v6, %v3737_v12 }
 0x202   : > { %5311 = vmatmul.mubr.bf16.gmra.mxu0 %v5666_v47  ;;  %5262 = vmatprep.subr.bf16.mxu1 %v5668_v41  ;;  %v4683_v49 = vcombine.low %v3717_v8, %v3720_v53  ;;  %v3274_v63 = vshrl.u32 %v3249_v51, 16  ;;  %v3277_v53 = vshll.u32 %v3249_v51, 16  ;;  %v3747_v21 = vrot.slane %v6941_v7, 5  ;;  %v6963_v51 = vld [vmem:[#allocation2 + $0x74] sm:$0x1] }
 0x203   : > { %5359 = vmatpush3.bf16.msra.mxu0 %v5667_v0  ;;  %5362 = vmatprep.mubr.bf16.mxu0 %v4682_v43  ;;  %v6924_v0 = vld [vmem:[#allocation2 + $0x58] sm:$0xf]  ;;  %v3283_v8 = vshll.u32 %v6846_v18, 16  ;;  %v3753_v60 = vrot.slane %v3751_v31, 4  ;;  %v3754_v12 = vrot.slane %v6948_v10, 5 }
 0x204   : > { %5215 = vmatmul.mubr.bf16.gmra.mxu1 %v5669_v23  ;;  %5360 = vmatprep.subr.bf16.mxu0 %v5670_v16  ;;  %v3744_v47 = vrot.slane %v6924_v0, 5  ;;  %v3403_v25 = vshll.u32 %v6924_v0, 16 }
 0x205   : > { %5263 = vmatpush3.bf16.msra.mxu1 %v5668_v41  ;;  %5266 = vmatprep.mubr.bf16.mxu1 %v4626_v58  ;;  %v3732_v58 = vrot.slane %v3730_v34, 4  ;;  %v5673_v41 = vld [vmem:[#allocation8 + $0x1f0] sm:$0xff]  }
 0x206   : > { %5264 = vmatprep.subr.bf16.mxu1 %v5671_v33 }
 0x207   : > { %5361 = vmatpush3.bf16.msra.mxu0 %v5670_v16  ;;  %v3740_v16 = vrot.slane %v6920_v42, 5  ;;  %v3734_v43 = vsel %vm6429_vm3, %v3732_v58, %v3733_v35  ;;  %v6954_v58 = vld [vmem:[#allocation2 + $0x70] sm:$0xf]  ;;  %v3276_v35 = vrot.slane %v3274_v63, 4  ;;  %v3761_v63 = vrot.slane %v6963_v51, 5 }
 0x208   : > { %v3758_v40 = vrot.slane %v6954_v58, 5 }
 0x209   : > { %5265 = vmatpush3.bf16.msra.mxu1 %v5671_v33  ;;  %v3741_v23 = vsel %vm6429_vm3, %v3739_v30, %v3740_v16  ;;  %v3680_v33 = vld [vmem:[#allocation2 + $0x54] sm:$0xe]  ;;  %v3307_v30 = vshll.u32 %v6880_v20, 16  ;;  %v3279_v16 = vrot.slane %v3277_v53, 5 }
 0x20a   : > { %5363 = vmatmul.mubr.bf16.vlgmr.msra.gmra.mxu0 %v4683_v49  ;;  %5314 = vmatprep.subr.bf16.mxu1 %v5672_v59  ;;  %v4686_v44 = vcombine.low %v3738_v9, %v3741_v23  ;;  %v4679_v37 = vrot.slane %v3680_v33, 9  ;;  %v3287_v49 = vshrl.u32 %v6846_v18, 16  ;;  %v3255_v33 = vld [vmem:[#allocation2 + $0x30] sm:$0xf]  ;;  %v3760_v9 = vrot.slane %v3758_v40, 4 }
 0x20b   : > { %5366 = vmatprep.mubr.bf16.mxu0 %v4684_v3  ;;  %v3311_v3 = vshrl.u32 %v6880_v20, 16  ;;  %v6968_v20 = vrot.slane %v3283_v8, 5  ;;  %v3322_v53 = vshrl.u32 %v3255_v33, 16  ;;  %v5677_v8 = vld [vmem:[#allocation8 + $0x1d0] sm:$0xff]  }
 0x20c   : > { %5267 = vmatmul.mubr.bf16.vlgmr.msra.gmra.mxu1 %v4627_v54  ;;  %v3731_v54 = vsel %vm6429_vm3, %v4677_v28, %v3730_v34  ;;  %v3252_v34 = vld [vmem:[#allocation2 + $0x24] sm:$0xf]  ;;  %v3745_v18 = vsel %vm6429_vm3, %v4679_v37, %v3744_v47  ;;  %v3682_v28 = vld [vmem:[#allocation2 + $0x6c] sm:$0xe]  ;;  %v3762_v32 = vsel %vm6429_vm3, %v3760_v9, %v3761_v63  ;;  %v7013_v9 = vrot.slane %v3379_v13, 5 }
 0x20d   : > { %5315 = vmatpush3.bf16.msra.mxu1 %v5672_v59  ;;  %5270 = vmatprep.mubr.bf16.mxu1 %v4628_v17  ;;  %v4685_v38 = vcombine.low %v3731_v54, %v3734_v43  ;;  %v3746_v17 = vrot.slane %v3744_v47, 4  ;;  %v4680_v59 = vrot.slane %v3681_v2, 9  ;;  %v3289_v43 = vrot.slane %v3287_v49, 4  ;;  %v3270_v13 = vld [vmem:[#allocation2 + $0x6c] sm:$0xf] }
 0x20e   : > { %5316 = vmatprep.subr.bf16.mxu1 %v5673_v41  ;;  %v3298_v6 = vshrl.u32 %v3252_v34, 16  ;;  %v3301_v23 = vshll.u32 %v3252_v34, 16  ;;  %v3755_v2 = vsel %vm6429_vm3, %v3753_v60, %v3754_v12  ;;  %v6977_v54 = vrot.slane %v3307_v30, 5 }
 0x20f   : > { %v3752_v47 = vsel %vm6429_vm3, %v4680_v59, %v3751_v31  ;;  %v3313_v50 = vrot.slane %v3311_v3, 4  ;;  %v3290_v31 = vor.u32 %v3289_v43, %v6968_v20  ;;  %v3317_v60 = vshll.u32 %v6897_v22, 16  ;;  %v3261_v43 = vld [vmem:[#allocation2 + $0x48] sm:$0xf] }
 0x210   : > { %v3303_v37 = vrot.slane %v3301_v23, 5  ;;  %v3324_v12 = vrot.slane %v3322_v53, 4  ;;  %v6990_v3 = vrot.slane %v3331_v29, 5  ;;  %v3385_v63 = vrot.slane %v3383_v27, 4 }
 0x211   : > { %5317 = vmatpush3.bf16.msra.mxu1 %v5673_v41  ;;  %v3748_v41 = vsel %vm6429_vm3, %v3746_v17, %v3747_v21  ;;  %v4688_v17 = vcombine.low %v3752_v47, %v3755_v2  ;;  %v3293_v21 = vshll.u32 %v6878_v24, 16  ;;  %v3314_v59 = vor.u32 %v3313_v50, %v6977_v54 }
 0x212   : > { %5367 = vmatmul.mubr.bf16.gmra.mxu0 %v4685_v38  ;;  %5318 = vmatprep.subr.bf16.mxu1 %v5674_v46  ;;  %v3325_v38 = vshll.u32 %v3255_v33, 16  ;;  %v3337_v24 = vrot.slane %v3335_v52, 4  ;;  %v3319_v11 = vrot.slane %v3317_v60, 5  ;;  %v3341_v33 = vshll.u32 %v6899_v19, 16 }
 0x213   : > { %5370 = vmatprep.mubr.bf16.mxu0 %v4686_v44  ;;  %v3300_v44 = vrot.slane %v3298_v6, 4  ;;  %v3295_v22 = vrot.slane %v3293_v21, 5  ;;  %v3370_v2 = vshrl.u32 %v3261_v43, 16  ;;  %v3373_v50 = vshll.u32 %v3261_v43, 16 }
 0x214   : > { %5271 = vmatmul.mubr.bf16.gmra.mxu1 %v4629_v56  ;;  %v4681_v56 = vrot.slane %v3682_v28, 9  ;;  %v3327_v30 = vrot.slane %v3325_v38, 5  ;;  %v3359_v28 = vshrl.u32 %v6901_v1, 16  ;;  %v3343_v29 = vrot.slane %v3341_v33, 5 }
 0x215   : > { %5319 = vmatpush3.bf16.msra.mxu1 %v5674_v46  ;;  %5274 = vmatprep.mubr.bf16.mxu1 %v4630_v62  ;;  %v3280_v46 = vor.u32 %v3279_v16, %v3276_v35  ;;  %v4687_v62 = vcombine.low %v3745_v18, %v3748_v41  ;;  %v3304_v35 = vor.u32 %v3303_v37, %v3300_v44  ;;  %v3315_v16 = vrot.slane %v3314_v59, 4  ;;  %v3258_v18 = vld [vmem:[#allocation2 + $0x3c] sm:$0xf] }
 0x216   : > { %5320 = vmatprep.subr.bf16.mxu1 %v5675_v36  ;;  %v3759_v49 = vsel %vm6429_vm3, %v4681_v56, %v3758_v40  ;;  %v5678_v40 = vld [vmem:[#allocation8 + $0x1c8] sm:$0xff]   ;;  %v3355_v41 = vshll.u32 %v6901_v1, 16  ;;  %v3328_v26 = vor.u32 %v3327_v30, %v3324_v12  ;;  %v3346_v1 = vshrl.u32 %v3258_v18, 16 }
 0x217   : > { %v3281_v34 = vrot.slane %v3280_v46, 4  ;;  %v4689_v55 = vcombine.low %v3759_v49, %v3762_v32  ;;  %v3305_v23 = vrot.slane %v3304_v35, 4  ;;  %v3320_v47 = vsel %vm6482_vm1, %v3315_v16, %v3319_v11 }
 0x218   : > { %v3349_v45 = vshll.u32 %v3258_v18, 16  ;;  %v3361_v56 = vrot.slane %v3359_v28, 4  ;;  %v3329_v53 = vrot.slane %v3328_v26, 4  ;;  %v3348_v52 = vrot.slane %v3346_v1, 4 }
 0x219   : > { %5321 = vmatpush3.bf16.msra.mxu1 %v5675_v36  ;;  %v3291_v36 = vrot.slane %v3290_v31, 4  ;;  %v3310_v38 = vsel %vm6482_vm1, %v3305_v23, %v6977_v54  ;;  %v3372_v44 = vrot.slane %v3370_v2, 4  ;;  %v3375_v37 = vrot.slane %v3373_v50, 5 }
 0x21a   : > { %5371 = vmatmul.mubr.bf16.gmra.mxu0 %v4687_v62  ;;  %5322 = vmatprep.subr.bf16.mxu1 %v5676_v5  ;;  %v4659_v62 = vcombine.low %v3310_v38, %v3320_v47  ;;  %v3351_v31 = vrot.slane %v3349_v45, 5  ;;  %v3386_v59 = vor.u32 %v3385_v63, %v7013_v9  ;;  %v3334_v54 = vsel %vm6482_vm1, %v3329_v53, %v6990_v3 }
 0x21b   : > { %5374 = vmatprep.mubr.bf16.mxu0 %v4688_v17  ;;  %v3296_v6 = vsel %vm6482_vm1, %v3291_v36, %v3295_v22  ;;  %v3267_v17 = vld [vmem:[#allocation2 + $0x60] sm:$0xf]  ;;  %v3365_v49 = vshll.u32 %v6918_v14, 16  ;;  %v3389_v32 = vshll.u32 %v6920_v42, 16  ;;  %v3427_v12 = vshll.u32 %v6936_v4, 16 }
 0x21c   : > { %5275 = vmatmul.mubr.bf16.gmra.mxu1 %v4631_v57  ;;  %v3286_v57 = vsel %vm6482_vm1, %v3281_v34, %v6968_v20  ;;  %v5679_v20 = vld [vmem:[#allocation8 + $0x1c0] sm:$0xff]   ;;  %v3418_v34 = vshrl.u32 %v3267_v17, 16  ;;  %v3421_v60 = vshll.u32 %v3267_v17, 16  ;;  %v3431_v30 = vshrl.u32 %v6936_v4, 16 }
 0x21d   : > { %5323 = vmatpush3.bf16.msra.mxu1 %v5676_v5  ;;  %5278 = vmatprep.mubr.bf16.mxu1 %v4632_v48  ;;  %v3338_v48 = vor.u32 %v3337_v24, %v6990_v3  ;;  %v7011_v5 = vrot.slane %v3355_v41, 5  ;;  %v4658_v46 = vcombine.low %v3286_v57, %v3296_v6  ;;  %v3352_v24 = vor.u32 %v3351_v31, %v3348_v52 }
 0x21e   : > { %5324 = vmatprep.subr.bf16.mxu1 %v5677_v8  ;;  %v3394_v36 = vshrl.u32 %v3264_v39, 16  ;;  %v3397_v35 = vshll.u32 %v3264_v39, 16  ;;  %v3387_v3 = vrot.slane %v3386_v59, 4  ;;  %v3367_v18 = vrot.slane %v3365_v49, 5 }
 0x21f   : > { %v3339_v19 = vrot.slane %v3338_v48, 4  ;;  %v3362_v21 = vor.u32 %v3361_v56, %v7011_v5  ;;  %v3391_v14 = vrot.slane %v3389_v32, 5  ;;  %v3420_v42 = vrot.slane %v3418_v34, 4 }
 0x220   : > { %v3423_v41 = vrot.slane %v3421_v60, 5  ;;  %v3429_v28 = vrot.slane %v3427_v12, 5  ;;  %v3433_v43 = vrot.slane %v3431_v30, 4  ;;  %v3353_v4 = vrot.slane %v3352_v24, 4 }
 0x221   : > { %5325 = vmatpush3.bf16.msra.mxu1 %v5677_v8  ;;  %v3344_v8 = vsel %vm6482_vm1, %v3339_v19, %v3343_v29  ;;  %v3396_v57 = vrot.slane %v3394_v36, 4  ;;  %v3399_v11 = vrot.slane %v3397_v35, 5  ;;  %v3392_v48 = vsel %vm6482_vm1, %v3387_v3, %v3391_v14 }
 0x222   : > { %5375 = vmatmul.mubr.bf16.gmra.mxu0 %v4689_v55  ;;  %5326 = vmatprep.subr.bf16.mxu1 %v5678_v40  ;;  %v3363_v55 = vrot.slane %v3362_v21, 4  ;;  %v4660_v16 = vcombine.low %v3334_v54, %v3344_v8  ;;  %v3442_v23 = vshrl.u32 %v3270_v13, 16  ;;  %v3445_v33 = vshll.u32 %v3270_v13, 16  ;;  %v5683_v13 = vld [vmem:[#allocation9 + $0x20] sm:$0xff]  }
 0x223   : > { %v3451_v1 = vshll.u32 %v6954_v58, 16  ;;  %v3455_v47 = vshrl.u32 %v6954_v58, 16  ;;  %v3424_v45 = vor.u32 %v3423_v41, %v3420_v42  ;;  %v3434_v2 = vor.u32 %v3433_v43, %v3429_v28  ;;  %v5681_v42 = vld [vmem:[#allocation9 + $0x30] sm:$0xff]   ;;  %v5682_v43 = vld [vmem:[#allocation9 + $0x28] sm:$0xff]  }
 0x224   : > { %5279 = vmatmul.mubr.bf16.gmra.mxu1 %v4633_v15  ;;  %v3407_v15 = vshrl.u32 %v6924_v0, 16  ;;  %v3376_v0 = vor.u32 %v3375_v37, %v3372_v44  ;;  %v3368_v26 = vsel %vm6482_vm1, %v3363_v55, %v3367_v18  ;;  %v3437_v50 = vshll.u32 %v6948_v10, 16 }
 0x225   : > { %5327 = vmatpush3.bf16.msra.mxu1 %v5678_v40  ;;  %5330 = vmatprep.mubr.bf16.mxu1 %v4658_v46  ;;  %v3405_v40 = vrot.slane %v3403_v25, 5  ;;  %v3400_v63 = vor.u32 %v3399_v11, %v3396_v57  ;;  %v3413_v46 = vshll.u32 %v6941_v7, 16  ;;  %v3444_v29 = vrot.slane %v3442_v23, 4 }
 0x226   : > { %5328 = vmatprep.subr.bf16.mxu1 %v5679_v20  ;;  %v3409_v22 = vrot.slane %v3407_v15, 4  ;;  %v3377_v27 = vrot.slane %v3376_v0, 4  ;;  %v3447_v58 = vrot.slane %v3445_v33, 5  ;;  %v3453_v52 = vrot.slane %v3451_v1, 5  ;;  %v5685_v1 = vld [vmem:[#allocation9 + $0x10] sm:$0xff]  }
 0x227   : > { %v3425_v10 = vrot.slane %v3424_v45, 4  ;;  %v3435_v31 = vrot.slane %v3434_v2, 4  ;;  %v3439_v44 = vrot.slane %v3437_v50, 5  ;;  %v3415_v37 = vrot.slane %v3413_v46, 5  ;;  %v5686_v2 = vld [vmem:[#allocation9 + $0x8] sm:$0xff]  }
 0x228   : > { %v3410_v6 = vor.u32 %v3409_v22, %v3405_v40  ;;  %v3382_v56 = vsel %vm6482_vm1, %v3377_v27, %v7013_v9  ;;  %v3448_v17 = vor.u32 %v3447_v58, %v3444_v29  ;;  %v3461_v7 = vshll.u32 %v6963_v51, 16 }
 0x229   : > { %5329 = vmatpush3.bf16.msra.mxu1 %v5679_v20  ;;  %v3358_v20 = vsel %vm6482_vm1, %v3353_v4, %v7011_v5  ;;  %v4662_v19 = vcombine.low %v3382_v56, %v3392_v48  ;;  %v3401_v5 = vrot.slane %v3400_v63, 4  ;;  %v3430_v59 = vsel %vm6482_vm1, %v3425_v10, %v3429_v28  ;;  %v5687_v56 = vld [vmem:[#allocation9] sm:$0xff]  }
 0x22a   : > { %v4661_v53 = vcombine.low %v3358_v20, %v3368_v26  ;;  %v3411_v38 = vrot.slane %v3410_v6, 4  ;;  %v3440_v39 = vsel %vm6482_vm1, %v3435_v31, %v3439_v44  ;;  %v3449_v8 = vrot.slane %v3448_v17, 4  ;;  %v5684_v6 = vld [vmem:[#allocation9 + $0x18] sm:$0xff]  }
 0x22b   : > { %v3406_v25 = vsel %vm6482_vm1, %v3401_v5, %v3405_v40  ;;  %v4664_v54 = vcombine.low %v3430_v59, %v3440_v39  ;;  %v3463_v32 = vrot.slane %v3461_v7, 5 }
 0x22c   : > { %5331 = vmatmul.mubr.bf16.vlgmr.msra.gmra.mxu1 %v4659_v62  ;;  %v3457_v62 = vrot.slane %v3455_v47, 4  ;;  %v3416_v9 = vsel %vm6482_vm1, %v3411_v38, %v3415_v37  ;;  %v3454_v34 = vsel %vm6482_vm1, %v3449_v8, %v3453_v52 }
 0x22d   : > { %5334 = vmatprep.mubr.bf16.mxu1 %v4660_v16  ;;  %v4663_v15 = vcombine.low %v3406_v25, %v3416_v9  ;;  %v5680_v16 = vld [vmem:[#allocation9 + $0x38] sm:$0xff]  }
 0x22e   : > { %v3458_v21 = vor.u32 %v3457_v62, %v3453_v52  ;;  %5378 = vmatprep.subr.bf16.mxu0 %v5680_v16  ;;  %5410 = vmatprep.subr.bf16.mxu1 %v5680_v16 }
 0x22f   : > { %5379 = vmatpush3.bf16.msra.mxu0 %v5680_v16  ;;  %5418 = vmatpush3.bf16.msra.mxu1 %v5680_v16 }
 0x230   : > { %v3459_v49 = vrot.slane %v3458_v21, 4  ;;  %5380 = vmatprep.subr.bf16.mxu0 %v5681_v42  ;;  %5411 = vmatprep.subr.bf16.mxu1 %v5681_v42 }
 0x232   : > { %v3464_v51 = vsel %vm6482_vm1, %v3459_v49, %v3463_v32 }
 0x233   : > { %v4665_v60 = vcombine.low %v3454_v34, %v3464_v51  ;;  %5381 = vmatpush3.bf16.msra.mxu0 %v5681_v42  ;;  %5419 = vmatpush3.bf16.msra.mxu1 %v5681_v42 }
 0x234   : > { %5335 = vmatmul.mubr.bf16.gmra.mxu1 %v4661_v53  ;;  %5382 = vmatprep.subr.bf16.mxu0 %v5682_v43 }
 0x235   : > { %5338 = vmatprep.mubr.bf16.mxu1 %v4662_v19  ;;  %5412 = vmatprep.subr.bf16.mxu1 %v5682_v43 }
 0x237   : > { %5383 = vmatpush3.bf16.msra.mxu0 %v5682_v43  ;;  %5420 = vmatpush3.bf16.msra.mxu1 %v5682_v43 }
 0x238   : > { %5384 = vmatprep.subr.bf16.mxu0 %v5683_v13  ;;  %5413 = vmatprep.subr.bf16.mxu1 %v5683_v13 }
 0x23b   : > { %5385 = vmatpush3.bf16.msra.mxu0 %v5683_v13  ;;  %5421 = vmatpush3.bf16.msra.mxu1 %v5683_v13 }
 0x23c   : > { %5339 = vmatmul.mubr.bf16.gmra.mxu1 %v4663_v15  ;;  %5386 = vmatprep.subr.bf16.mxu0 %v5684_v6 }
 0x23d   : > { %5342 = vmatprep.mubr.bf16.mxu1 %v4664_v54  ;;  %5414 = vmatprep.subr.bf16.mxu1 %v5684_v6 }
 0x23f   : > { %5387 = vmatpush3.bf16.msra.mxu0 %v5684_v6  ;;  %5422 = vmatpush3.bf16.msra.mxu1 %v5684_v6 }
 0x240   : > { %5388 = vmatprep.subr.bf16.mxu0 %v5685_v1  ;;  %5415 = vmatprep.subr.bf16.mxu1 %v5685_v1 }
 0x243   : > { %v7061_v12 = vpop.f32.mrf.mxu0  ;;  %5389 = vmatpush3.bf16.msra.mxu0 %v5685_v1  ;;  %5423 = vmatpush3.bf16.msra.mxu1 %v5685_v1 }
 0x244   : > { %5343 = vmatmul.mubr.bf16.gmra.mxu1 %v4665_v60  ;;  %5390 = vmatprep.subr.bf16.mxu0 %v5686_v2 }
 0x245   : > { %v7063_v30 = vpop.f32.mrf.mxu0  ;;  %5416 = vmatprep.subr.bf16.mxu1 %v5686_v2 }
 0x247   : > { %v7065_v24 = vpop.f32.mrf.mxu0  ;;  %5391 = vmatpush3.bf16.msra.mxu0 %v5686_v2  ;;  %5424 = vmatpush3.bf16.msra.mxu1 %v5686_v2 }
 0x248   : > { %5392 = vmatprep.subr.bf16.mxu0 %v5687_v56  ;;  %5417 = vmatprep.subr.bf16.mxu1 %v5687_v56 }
 0x249   : > { %v7069_v36 = vpop.f32.mrf.mxu0 }
 0x24b   : > { %5393 = vmatpush3.bf16.msra.mxu0 %v5687_v56  ;;  %5425 = vmatpush3.bf16.msra.mxu1 %v5687_v56 }
 0x24f   : > { %v7067_v0 = vpop.f32.mrf.mxu1  ;;  %v7073_v55 = vpop.f32.mrf.mxu0 }
 0x251   : > { %v7071_v35 = vpop.f32.mrf.mxu1  ;;  %v7077_v61 = vpop.f32.mrf.mxu0 }
 0x253   : > { %v7075_v3 = vpop.f32.mrf.mxu1  ;;  %v7081_v22 = vpop.f32.mrf.mxu0 }
 0x255   : > { %v7079_v40 = vpop.f32.mrf.mxu1  ;;  %v7085_v14 = vpop.f32.mrf.mxu0 }
 0x25a   : > { %v7083_v18 = vpop.f32.mrf.mxu1 }
 0x25c   : > { %v7087_v41 = vpop.f32.mrf.mxu1 }
 0x25d   : > { %v7089_v28 = vpop.f32.mrf.mxu0 }
 0x25e   : > { %v5113_v4 = vpop.f32.mrf.mxu1 }
 0x25f   : > { %v7091_v27 = vpop.f32.mrf.mxu0 }
 0x260   : > { %v1509_v57 = vpop.f32.mrf.mxu1 }
 0x261   : > { %v7093_v11 = vpop.f32.mrf.mxu0 }
 0x263   : > { %v7095_v48 = vpop.f32.mrf.mxu0 }
 0x26e   : > { %v5116_v26 = vpop.f32.mrf.mxu1 }
 0x270   : > { %v1522_v23 = vpop.f32.mrf.mxu1 }
 0x272   : > { %v7097_v33 = vpop.f32.mrf.mxu0  ;;  %v5117_v47 = vpop.f32.mrf.mxu1 }
 0x274   : > { %v7099_v45 = vpop.f32.mrf.mxu0  ;;  %v1525_v50 = vpop.f32.mrf.mxu1 }
 0x276   : > { %v7101_v20 = vpop.f32.mrf.mxu0 }
 0x278   : > { %v7103_v46 = vpop.f32.mrf.mxu0 }
 0x283   : > { %v5120_v63 = vpop.f32.mrf.mxu1 }
 0x285   : > { %v1538_v53 = vpop.f32.mrf.mxu1 }
 0x287   : > { %v5121_v19 = vpop.f32.mrf.mxu1 }
 0x288   : > { %v7105_v38 = vpop.f32.mrf.mxu0 }
 0x289   : > { %v1541_v29 = vpop.f32.mrf.mxu1 }
 0x28a   : > { %v7107_v58 = vpop.f32.mrf.mxu0 }
 0x28b   : > { %v5140_v52 = vpop.f32.mrf.mxu1 }
 0x28c   : > { %v7109_v62 = vpop.f32.mrf.mxu0  ;;  %v7112_v10 = vadd.f32 %v5140_v52, %v7067_v0 }
 0x28d   : > { %v1683_v31 = vpop.f32.mrf.mxu1 }
 0x28e   : > { %v7114_v44 = vpop.f32.mrf.mxu0  ;;  %v7117_v5 = vadd.f32 %v1683_v31, %v7071_v35 }
 0x28f   : > { %v5141_v37 = vpop.f32.mrf.mxu1 }
 0x290   : > { %v7119_v9 = vpop.f32.mrf.mxu0  ;;  %v7122_v17 = vadd.f32 %v5141_v37, %v7075_v3 }
 0x291   : > { %v1686_v21 = vpop.f32.mrf.mxu1 }
 0x292   : > { %v7124_v7 = vpop.f32.mrf.mxu0  ;;  %v7127_v59 = vadd.f32 %v1686_v21, %v7079_v40 }
 0x293   : > { %v5144_v39 = vpop.f32.mrf.mxu1 }
 0x294   : > { %v7129_v25 = vpop.f32.mrf.mxu0  ;;  %v1708_v15 = vadd.f32 %v5144_v39, %v7083_v18 }
 0x295   : > { %v1699_v54 = vpop.f32.mrf.mxu1 }
 0x296   : > { %v7132_v8 = vpop.f32.mrf.mxu0  ;;  %v7135_v49 = vadd.f32 %v1699_v54, %v7087_v41 }
 0x297   : > { %v5145_v32 = vpop.f32.mrf.mxu1 }
 0x298   : > { %v7137_v34 = vadd.f32 %v5145_v32, %v5113_v4 }
 0x299   : > { %v1702_v60 = vpop.f32.mrf.mxu1 }
 0x29a   : > { %v5244_v51 = vpop.f32.mrf.mxu0  ;;  %v1703_v0 = vadd.f32 %v1702_v60, %v1509_v57 }
 0x29b   : > { %v5148_v3 = vpop.f32.mrf.mxu1 }
 0x29c   : > { %v7139_v35 = vpop.f32.mrf.mxu0  ;;  %v1724_v40 = vadd.f32 %v5148_v3, %v5116_v26  ;;  %v7142_v16 = vadd.f32 %v7085_v14, %v1703_v0 }
 0x29d   : > { %7545 = vst [vmem:[#allocation23_spill] sm:$0xff] %v7139_v35  ;;  %v1715_v42 = vpop.f32.mrf.mxu1 }
 0x29e   : > { %v7144_v18 = vpop.f32.mrf.mxu0  ;;  %v1716_v43 = vadd.f32 %v1715_v42, %v1522_v23  ;;  %v2033_v41 = vadd.f32 %v7089_v28, %v1724_v40 }
 0x29f   : > { %7546 = vst [vmem:[#allocation24_spill] sm:$0xff] %v7144_v18  ;;  %v5149_v4 = vpop.f32.mrf.mxu1  ;;  %v2026_v18 = vadd.f32 %v7065_v24, %v7122_v17 }
 0x2a0   : > { %v7147_v13 = vpop.f32.mrf.mxu0  ;;  %v1727_v6 = vadd.f32 %v5149_v4, %v5117_v47  ;;  %v7150_v1 = vadd.f32 %v7091_v27, %v1716_v43 }
 0x2a1   : > { %7547 = vst [vmem:[#allocation25_spill] sm:$0xff] %v7147_v13  ;;  %v1718_v2 = vpop.f32.mrf.mxu1 }
 0x2a2   : > { %v5248_v57 = vpop.f32.mrf.mxu0  ;;  %v1719_v56 = vadd.f32 %v1718_v2, %v1525_v50  ;;  %v7153_v26 = vadd.f32 %v7093_v11, %v1727_v6 }
 0x2a4   : > { %v7155_v14 = vpop.f32.mrf.mxu0  ;;  %v5152_v52 = vpop.f32.mrf.mxu1  ;;  %v7158_v23 = vadd.f32 %v7095_v48, %v1719_v56 }
 0x2a5   : > { %7548 = vst [vmem:[#allocation26_spill] sm:$0xff] %v7155_v14  ;;  %v1740_v31 = vadd.f32 %v5152_v52, %v5120_v63 }
 0x2a6   : > { %v7160_v28 = vpop.f32.mrf.mxu0  ;;  %v1731_v37 = vpop.f32.mrf.mxu1 }
 0x2a7   : > { %7549 = vst [vmem:[#allocation27_spill] sm:$0xff] %v7160_v28  ;;  %v1732_v47 = vadd.f32 %v1731_v37, %v1538_v53  ;;  %v2037_v27 = vadd.f32 %v7097_v33, %v1740_v31 }
 0x2a8   : > { %v7163_v21 = vpop.f32.mrf.mxu0  ;;  %v5153_v39 = vpop.f32.mrf.mxu1 }
 0x2a9   : > { %7550 = vst [vmem:[#allocation28_spill] sm:$0xff] %v7163_v21  ;;  %v1743_v50 = vadd.f32 %v5153_v39, %v5121_v19  ;;  %v7166_v11 = vadd.f32 %v7099_v45, %v1732_v47 }
 0x2aa   : > { %v7168_v54 = vpop.f32.mrf.mxu0  ;;  %v1734_v32 = vpop.f32.mrf.mxu1 }
 0x2ab   : > { %7551 = vst [vmem:[#allocation29_spill] sm:$0xff] %v7166_v11  ;;  %v1735_v63 = vadd.f32 %v1734_v32, %v1541_v29  ;;  %v7171_v48 = vadd.f32 %v7101_v20, %v1743_v50  ;;  %v2029_v29 = vadd.f32 %v7073_v55, %v1708_v15 }
 0x2ac   : > { %v7173_v60 = vpop.f32.mrf.mxu0  ;;  %v5204_v0 = vpop.f32.mrf.mxu1 }
 0x2ad   : > { %7552 = vst [vmem:[#allocation30_spill] sm:$0xff] %v7171_v48  ;;  %v7176_v53 = vadd.f32 %v7103_v46, %v1735_v63 }
 0x2ae   : > { %v7178_v33 = vpop.f32.mrf.mxu0  ;;  %v2203_v3 = vpop.f32.mrf.mxu1 }
 0x2af   : > { %7553 = vst [vmem:[#allocation31_spill] sm:$0xff] %v7176_v53 }
 0x2b0   : > { %v7180_v19 = vpop.f32.mrf.mxu0  ;;  %v5205_v45 = vpop.f32.mrf.mxu1 }
 0x2b2   : > { %v7182_v40 = vpop.f32.mrf.mxu0  ;;  %v2206_v42 = vpop.f32.mrf.mxu1 }
 0x2b4   : > { %v7185_v43 = vpop.f32.mrf.mxu0  ;;  %v5208_v20 = vpop.f32.mrf.mxu1 }
 0x2b5   : > { %v2272_v4 = vadd.f32 %v5208_v20, %v2029_v29 }
 0x2b6   : > { %v7187_v6 = vpop.f32.mrf.mxu0  ;;  %v2219_v2 = vpop.f32.mrf.mxu1 }
 0x2b7   : > { %7554 = vst [vmem:[#allocation32_spill] sm:$0xff] %v7187_v6  ;;  %v7190_v46 = vadd.f32 %v7119_v9, %v2272_v4  ;;  %v2023_v6 = vadd.f32 %v7063_v30, %v7117_v5 }
 0x2b8   : > { %v7192_v56 = vpop.f32.mrf.mxu0  ;;  %v7194_v52 = vpop.f32.mrf.mxu1 }
 0x2b9   : > { %7555 = vst [vmem:[#allocation33_spill] sm:$0xff] %v7192_v56  ;;  %v2266_v11 = vadd.f32 %v2203_v3, %v2023_v6  ;;  %v2027_v3 = vadd.f32 %v7077_v61, %v7135_v49 }
 0x2ba   : > { %v7196_v31 = vpop.f32.mrf.mxu0  ;;  %v7198_v37 = vpop.f32.mrf.mxu1 }
 0x2bb   : > { %7556 = vst [vmem:[#allocation34_spill] sm:$0xff] %v7196_v31  ;;  %v2692_v5 = vadd.f32 %v7107_v58, %v2266_v11  ;;  %v2030_v58 = vadd.f32 %v7081_v22, %v7137_v34 }
 0x2bc   : > { %v7200_v47 = vpop.f32.mrf.mxu0  ;;  %v5212_v55 = vpop.f32.mrf.mxu1 }
 0x2bd   : > { %7557 = vst [vmem:[#allocation35_spill] sm:$0xff] %v7200_v47  ;;  %v2276_v15 = vadd.f32 %v5212_v55, %v2033_v41 }
 0x2be   : > { %v7202_v39 = vpop.f32.mrf.mxu0  ;;  %v7204_v50 = vpop.f32.mrf.mxu1 }
 0x2bf   : > { %7558 = vst [vmem:[#allocation36_spill] sm:$0xff] %v7202_v39  ;;  %v7206_v32 = vadd.f32 %v5244_v51, %v2276_v15 }
 0x2c0   : > { %v7208_v9 = vpop.f32.mrf.mxu0  ;;  %v7210_v63 = vpop.f32.mrf.mxu1 }
 0x2c1   : > { %7559 = vst [vmem:[#allocation37_spill] sm:$0xff] %v7208_v9 }
 0x2c2   : > { %v7212_v29 = vpop.f32.mrf.mxu0  ;;  %v7214_v20 = vpop.f32.mrf.mxu1 }
 0x2c3   : > { %7560 = vst [vmem:[#allocation38_spill] sm:$0xff] %v7212_v29 }
 0x2c4   : > { %v7216_v4 = vpop.f32.mrf.mxu0  ;;  %v5216_v21 = vpop.f32.mrf.mxu1 }
 0x2c5   : > { %7561 = vst [vmem:[#allocation39_spill] sm:$0xff] %v7216_v4  ;;  %v2280_v28 = vadd.f32 %v5216_v21, %v2037_v27 }
 0x2c6   : > { %v7218_v53 = vpop.f32.mrf.mxu1  ;;  %v7222_v55 = vpop.f32.mrf.mxu0 }
 0x2c7   : > { %7562 = vst [vmem:[#allocation40_spill] sm:$0xff] %v7218_v53  ;;  %v7220_v41 = vadd.f32 %v5248_v57, %v2280_v28  ;;  %7564 = vst [vmem:[#allocation42_spill] sm:$0xff] %v7222_v55 }
 0x2c8   : > { %v7224_v51 = vpop.f32.mrf.mxu1  ;;  %v7228_v9 = vpop.f32.mrf.mxu0 }
 0x2c9   : > { %7563 = vst [vmem:[#allocation41_spill] sm:$0xff] %v7220_v41  ;;  %7565 = vst [vmem:[#allocation43_spill] sm:$0xff] %v7224_v51 }
 0x2ca   : > { %v7226_v15 = vpop.f32.mrf.mxu1  ;;  %7567 = vst [vmem:[#allocation45_spill] sm:$0xff] %v7228_v9  ;;  %v5364_v47 = vpop.f32.mrf.mxu0  ;;  %v2025_v9 = vadd.f32 %v7061_v12, %v7112_v10  ;;  %v2024_v12 = vadd.f32 %v7069_v36, %v7127_v59 }
 0x2cb   : > { %7566 = vst [vmem:[#allocation44_spill] sm:$0xff] %v7226_v15 }
 0x2cc   : > { %v5268_v39 = vpop.f32.mrf.mxu1  ;;  %v3894_v4 = vpop.f32.mrf.mxu0  ;;  %v2268_v56 = vadd.f32 %v5204_v0, %v2025_v9  ;;  %v2267_v9 = vadd.f32 %v2206_v42, %v2024_v12 }
 0x2ce   : > { %v2927_v29 = vpop.f32.mrf.mxu1  ;;  %v5365_v21 = vpop.f32.mrf.mxu0  ;;  %v2694_v10 = vadd.f32 %v7105_v38, %v2268_v56  ;;  %v2693_v59 = vadd.f32 %v7114_v44, %v2267_v9 }
 0x2cf   : > { %v2990_v6 = vadd.f32 %v2927_v29, %v2692_v5 }
 0x2d0   : > { %v5269_v14 = vpop.f32.mrf.mxu1  ;;  %v7230_v28 = vpop.f32.mrf.mxu0  ;;  %v2992_v30 = vadd.f32 %v5268_v39, %v2694_v10 }
 0x2d1   : > { %v3233_v39 = vadd.f32 %v7173_v60, %v2990_v6  ;;  %v7285_v60 = vld [vmem:[%s7473_s4] ss:$0 sm:$0xff] }
 0x2d2   : > { %v2930_v31 = vpop.f32.mrf.mxu1  ;;  %v7238_v15 = vpop.f32.mrf.mxu0  ;;  %v3235_v42 = vadd.f32 %v7168_v54, %v2992_v30  ;;  %v7572_v6 = vld [vmem:[#allocation24_spill] sm:$0xff] }
 0x2d3   : > { %v2991_v49 = vadd.f32 %v2930_v31, %v2693_v59 }
 0x2d4   : > { %v5272_v13 = vpop.f32.mrf.mxu1  ;;  %v7248_v35 = vpop.f32.mrf.mxu0 }
 0x2d5   : > { %v2996_v54 = vadd.f32 %v5272_v13, %v7190_v46  ;;  %v2274_v13 = vadd.f32 %v7204_v50, %v7150_v1  ;;  %v2277_v46 = vadd.f32 %v7210_v63, %v7153_v26  ;;  %v2275_v63 = vadd.f32 %v7214_v20, %v7158_v23  ;;  %v7575_v23 = vld [vmem:[#allocation32_spill] sm:$0xff] }
 0x2d6   : > { %v2943_v27 = vpop.f32.mrf.mxu1  ;;  %v7260_v24 = vpop.f32.mrf.mxu0 }
 0x2d8   : > { %v5273_v48 = vpop.f32.mrf.mxu1  ;;  %v7271_v11 = vpop.f32.mrf.mxu0 }
 0x2da   : > { %v2946_v57 = vpop.f32.mrf.mxu1  ;;  %v7280_v12 = vpop.f32.mrf.mxu0 }
 0x2dc   : > { %v7232_v55 = vpop.f32.mrf.mxu1 }
 0x2dd   : > { %7568 = vst [vmem:[#allocation46_spill] sm:$0xff] %v7232_v55  ;;  %v2269_v55 = vadd.f32 %v5205_v45, %v2026_v18  ;;  %v2270_v45 = vadd.f32 %v2219_v2, %v2027_v3  ;;  %v2271_v2 = vadd.f32 %v7198_v37, %v7142_v16 }
 0x2de   : > { %v7234_v41 = vpop.f32.mrf.mxu1 }
 0x2df   : > { %7569 = vst [vmem:[#allocation47_spill] sm:$0xff] %v7234_v41  ;;  %v2695_v18 = vadd.f32 %v7109_v62, %v2269_v55  ;;  %v2273_v62 = vadd.f32 %v7194_v52, %v2030_v58  ;;  %v2697_v37 = vadd.f32 %v7132_v8, %v2271_v2  ;;  %v7573_v58 = vld [vmem:[#allocation29_spill] sm:$0xff] }
 0x2e0   : > { %v7240_v51 = vpop.f32.mrf.mxu1 }
 0x2e1   : > { %v2993_v38 = vadd.f32 %v5269_v14, %v2695_v18  ;;  %v2696_v14 = vadd.f32 %v7124_v7, %v2270_v45  ;;  %v3234_v7 = vadd.f32 %v7180_v19, %v2991_v49  ;;  %v2995_v5 = vadd.f32 %v2946_v57, %v2697_v37  ;;  %v7296_v19 = vpop.f32.mrf.mxu0 }
 0x2e2   : > { %v7244_v53 = vpop.f32.mrf.mxu1  ;;  %v2703_v18 = vadd.f32 %v7572_v6, %v2277_v46 }
 0x2e3   : > { %v3236_v22 = vadd.f32 %v7178_v33, %v2993_v38  ;;  %v2994_v34 = vadd.f32 %v2943_v27, %v2696_v14  ;;  %v2699_v33 = vadd.f32 %v7129_v25, %v2273_v62  ;;  %v5373_v49 = vpop.f32.mrf.mxu0 }
 0x2e4   : > { %v7250_v41 = vpop.f32.mrf.mxu1 }
 0x2e5   : > { %v2997_v30 = vadd.f32 %v5273_v48, %v2699_v33  ;;  %v3237_v1 = vadd.f32 %v7185_v43, %v2994_v34  ;;  %v7571_v48 = vld [vmem:[#allocation23_spill] sm:$0xff]  ;;  %v7581_v33 = vld [vmem:[#allocation34_spill] sm:$0xff] }
 0x2e6   : > { %v7255_v0 = vpop.f32.mrf.mxu1  ;;  %v2700_v57 = vadd.f32 %v7571_v48, %v2274_v13  ;;  %v7577_v2 = vld [vmem:[#allocation47_spill] sm:$0xff] }
 0x2e7   : > { %v3240_v20 = vadd.f32 %v7575_v23, %v2997_v30  ;;  %v7589_v23 = vld [vmem:[#allocation37_spill] sm:$0xff] }
 0x2e8   : > { %v7262_v17 = vpop.f32.mrf.mxu1  ;;  %v2998_v14 = vadd.f32 %v7577_v2, %v2700_v57 }
 0x2ea   : > { %v7265_v36 = vpop.f32.mrf.mxu1 }
 0x2ec   : > { %v5332_v61 = vpop.f32.mrf.mxu1 }
 0x2ed   : > { %v3661_v56 = vadd.f32 %v5332_v61, %v3235_v42  ;;  %v7574_v61 = vld [vmem:[#allocation40_spill] sm:$0xff] }
 0x2ee   : > { %v3596_v44 = vpop.f32.mrf.mxu1 }
 0x2ef   : > { %v3959_v29 = vadd.f32 %v5364_v47, %v3661_v56  ;;  %v3659_v55 = vadd.f32 %v3596_v44, %v3233_v39 }
 0x2f0   : > { %v5333_v52 = vpop.f32.mrf.mxu1 }
 0x2f1   : > { %v3957_v31 = vadd.f32 %v3894_v4, %v3659_v55  ;;  %v3662_v16 = vadd.f32 %v5333_v52, %v3236_v22  ;;  %v3982_v27 = vadd.f32 %v7285_v60, %v3959_v29  ;;  %v3239_v4 = vadd.f32 %v7182_v40, %v2996_v54  ;;  %v7578_v55 = vld [vmem:[#allocation30_spill] sm:$0xff]  ;;  %v7579_v22 = vld [vmem:[#allocation43_spill] sm:$0xff]  ;;  %v7580_v52 = vld [vmem:[#allocation25_spill] sm:$0xff] }
 0x2f2   : > { %v3599_v47 = vpop.f32.mrf.mxu1  ;;  %v2281_v34 = vadd.f32 %v7579_v22, %v7578_v55 }
 0x2f3   : > { %v3960_v10 = vadd.f32 %v5365_v21, %v3662_v16  ;;  %v3660_v9 = vadd.f32 %v3599_v47, %v3234_v7  ;;  %v3980_v26 = vadd.f32 %v7285_v60, %v3957_v31  ;;  %v7570_v21 = vld [vmem:[#allocation46_spill] sm:$0xff]  ;;  %v3998_v38 = vmax.f32 %v3982_v27, 0.0  ;;  %v3929_v27 = vpop.f32.mrf.mxu0 }
 0x2f4   : > { %v5336_v3 = vpop.f32.mrf.mxu1  ;;  %v3000_v40 = vadd.f32 %v7570_v21, %v7206_v32  ;;  %v7576_v32 = vld [vmem:[#allocation33_spill] sm:$0xff]  ;;  %v2701_v31 = vadd.f32 %v7580_v52, %v2275_v63  ;;  %v7586_v63 = vld [vmem:[#allocation27_spill] sm:$0xff] }
 0x2f5   : > { %v3983_v25 = vadd.f32 %v7285_v60, %v3960_v10  ;;  %v3958_v8 = vadd.f32 %v7230_v28, %v3660_v9  ;;  %v3665_v50 = vadd.f32 %v5336_v3, %v3239_v4  ;;  %v2278_v28 = vadd.f32 %v7574_v61, %v7573_v58  ;;  %v7582_v10 = vld [vmem:[#allocation26_spill] sm:$0xff] }
 0x2f6   : > { %v3612_v45 = vpop.f32.mrf.mxu1  ;;  %v3238_v62 = vadd.f32 %v7576_v32, %v2995_v5  ;;  %v3996_v44 = vmax.f32 %v3980_v26, 0.0  ;;  %v3243_v37 = vadd.f32 %v7581_v33, %v3000_v40  ;;  %v2999_v3 = vadd.f32 %v7244_v53, %v2701_v31  ;;  %v7583_v26 = vld [vmem:[#allocation35_spill] sm:$0xff] }
 0x2f7   : > { %v3999_v43 = vmax.f32 %v3983_v25, 0.0  ;;  %v3981_v59 = vadd.f32 %v7285_v60, %v3958_v8  ;;  %v3663_v42 = vadd.f32 %v3612_v45, %v3237_v1  ;;  %v3963_v56 = vadd.f32 %v7238_v15, %v3665_v50  ;;  %v7584_v25 = vld [vmem:[#allocation31_spill] sm:$0xff]  ;;  %v7585_v8 = vld [vmem:[#allocation44_spill] sm:$0xff] }
 0x2f8   : > { %v5337_v39 = vpop.f32.mrf.mxu1  ;;  %v3001_v15 = vadd.f32 %v7240_v51, %v2703_v18  ;;  %v2704_v9 = vadd.f32 %v7582_v10, %v2278_v28  ;;  %v3241_v51 = vadd.f32 %v7583_v26, %v2998_v14  ;;  %v2279_v50 = vadd.f32 %v7585_v8, %v7584_v25  ;;  %v7588_v18 = vld [vmem:[#allocation36_spill] sm:$0xff]  ;;  %v7592_v31 = vld [vmem:[#allocation39_spill] sm:$0xff] }
 0x2f9   : > { %v4013_v54 = vpack.c.bf16 %v3999_v43, %v3998_v38  ;;  %v3997_v29 = vmax.f32 %v3981_v59, 0.0  ;;  %v3961_v16 = vadd.f32 %v7248_v35, %v3663_v42  ;;  %v3666_v7 = vadd.f32 %v5337_v39, %v3240_v20  ;;  %v5376_v38 = vpop.f32.mrf.mxu0  ;;  %v7590_v14 = vld [vmem:[#allocation28_spill] sm:$0xff] }
 0x2fa   : > { %v3615_v13 = vpop.f32.mrf.mxu1  ;;  %v3986_v4 = vadd.f32 %v7285_v60, %v3963_v56  ;;  %v2707_v21 = vadd.f32 %v7586_v63, %v2281_v34  ;;  %v3244_v45 = vadd.f32 %v7588_v18, %v3001_v15  ;;  %v3002_v43 = vadd.f32 %v7255_v0, %v2704_v9 }
 0x2fb   : > { %v3664_v46 = vadd.f32 %v3615_v13, %v3238_v62  ;;  %v4012_v47 = vpack.c.bf16 %v3997_v29, %v3996_v44  ;;  %v3964_v30 = vadd.f32 %v7260_v24, %v3666_v7  ;;  %v3984_v40 = vadd.f32 %v7285_v60, %v3961_v16  ;;  %v7587_v24 = vld [vmem:[#allocation41_spill] sm:$0xff]  ;;  %v7591_v29 = vld [vmem:[#allocation38_spill] sm:$0xff]  ;;  %v3942_v22 = vpop.f32.mrf.mxu0 }
 0x2fc   : > { %v5340_v5 = vpop.f32.mrf.mxu1  ;;  %v3004_v53 = vadd.f32 %v7250_v41, %v7587_v24  ;;  %v4002_v59 = vmax.f32 %v3986_v4, 0.0  ;;  %v3242_v20 = vadd.f32 %v7589_v23, %v2999_v3  ;;  %v3005_v39 = vadd.f32 %v7262_v17, %v2707_v21 }
 0x2fd   : > { %v3962_v35 = vadd.f32 %v7271_v11, %v3664_v46  ;;  %v3669_v1 = vadd.f32 %v5340_v5, %v3243_v37  ;;  %5394 = vmatprep.mubr.bf16.mxu0 %v4012_v47  ;;  %v3987_v48 = vadd.f32 %v7285_v60, %v3964_v30  ;;  %v4000_v41 = vmax.f32 %v3984_v40, 0.0  ;;  %v7593_v46 = vld [vmem:[#allocation42_spill] sm:$0xff]  ;;  %v5377_v4 = vpop.f32.mrf.mxu0 }
 0x2fe   : > { %v3628_v57 = vpop.f32.mrf.mxu1  ;;  %5395 = vmatmul.mubr.bf16.vlgmr.msra.gmra.mxu0 %v4013_v54  ;;  %v2705_v44 = vadd.f32 %v7590_v14, %v2279_v50  ;;  %v3247_v55 = vadd.f32 %v7591_v29, %v3004_v53  ;;  %v3245_v16 = vadd.f32 %v7592_v31, %v3002_v43  ;;  %v3248_v33 = vadd.f32 %v7593_v46, %v3005_v39  ;;  %v4864_v29 = vld [vmem:[%s6166_s9 + $0x20] sm:$0xff]  }
 0x2ff   : > { %v3985_v11 = vadd.f32 %v7285_v60, %v3962_v35  ;;  %v3667_v6 = vadd.f32 %v3628_v57, %v3241_v51  ;;  %v4003_v42 = vmax.f32 %v3987_v48, 0.0  ;;  %v3967_v58 = vadd.f32 %v7280_v12, %v3669_v1  ;;  %v3945_v21 = vpop.f32.mrf.mxu0 }
 0x300   : > { %v5341_v61 = vpop.f32.mrf.mxu1  ;;  %v3003_v17 = vadd.f32 %v7265_v36, %v2705_v44  ;;  %v4804_v46 = vunpack.c.h.bf16 %v4864_v29 }
 0x301   : > { %v4001_v28 = vmax.f32 %v3985_v11, 0.0  ;;  %v3670_v56 = vadd.f32 %v5341_v61, %v3244_v45  ;;  %v4015_v32 = vpack.c.bf16 %v4003_v42, %v4002_v59  ;;  %v3965_v62 = vadd.f32 %v7296_v19, %v3667_v6  ;;  %v7358_v59 = vld [vmem:[%s7475_s6] ss:$0 sm:$0xff]  ;;  %v4862_v42 = vld [vmem:[%s6166_s9 + $0x10] sm:$0xff]   ;;  %v4861_v61 = vld [vmem:[%s6166_s9 + $0x8] sm:$0xff]  }
 0x302   : > { %v3631_v2 = vpop.f32.mrf.mxu1  ;;  %v3990_v12 = vadd.f32 %v7285_v60, %v3967_v58  ;;  %v4796_v39 = vunpack.c.h.bf16 %v4862_v42 }
 0x303   : > { %v3968_v54 = vadd.f32 %v5373_v49, %v3670_v56  ;;  %v3668_v0 = vadd.f32 %v3631_v2, %v3242_v20  ;;  %v4014_v52 = vpack.c.bf16 %v4001_v28, %v4000_v41  ;;  %v3988_v15 = vadd.f32 %v7285_v60, %v3965_v62 }
 0x304   : > { %v5344_v34 = vpop.f32.mrf.mxu1  ;;  %v4006_v30 = vmax.f32 %v3990_v12, 0.0  ;;  %v4791_v20 = vunpack.c.l.bf16 %v4861_v61  ;;  %v4792_v2 = vunpack.c.h.bf16 %v4861_v61 }
 0x305   : > { %v3991_v7 = vadd.f32 %v7285_v60, %v3968_v54  ;;  %v3966_v13 = vadd.f32 %v3929_v27, %v3668_v0  ;;  %v3673_v19 = vadd.f32 %v5344_v34, %v3247_v55  ;;  %5398 = vmatprep.mubr.bf16.mxu1 %v4014_v52  ;;  %v7594_v27 = vld [vmem:[#allocation45_spill] sm:$0xff]  ;;  %v4004_v26 = vmax.f32 %v3988_v15, 0.0  ;;  %v4863_v52 = vld [vmem:[%s6166_s9 + $0x18] sm:$0xff]  }
 0x306   : > { %v3644_v49 = vpop.f32.mrf.mxu1  ;;  %5399 = vmatmul.mubr.bf16.vlgmr.msra.gmra.mxu1 %v4015_v32  ;;  %v3246_v1 = vadd.f32 %v7594_v27, %v3003_v17 }
 0x307   : > { %v4007_v37 = vmax.f32 %v3991_v7, 0.0  ;;  %v3989_v47 = vadd.f32 %v7285_v60, %v3966_v13  ;;  %v3971_v10 = vadd.f32 %v5376_v38, %v3673_v19  ;;  %v3671_v9 = vadd.f32 %v3644_v49, %v3245_v16 }
 0x308   : > { %v5345_v5 = vpop.f32.mrf.mxu1  ;;  %v4803_v16 = vunpack.c.l.bf16 %v4864_v29  ;;  %v4799_v49 = vunpack.c.l.bf16 %v4863_v52 }
 0x309   : > { %v4005_v36 = vmax.f32 %v3989_v47, 0.0  ;;  %v3969_v3 = vadd.f32 %v3942_v22, %v3671_v9  ;;  %v3674_v35 = vadd.f32 %v5345_v5, %v3248_v33  ;;  %v4017_v25 = vpack.c.bf16 %v4007_v37, %v4006_v30 }
 0x30a   : > { %v3647_v51 = vpop.f32.mrf.mxu1  ;;  %v3994_v8 = vadd.f32 %v7285_v60, %v3971_v10  ;;  %v4800_v9 = vunpack.c.h.bf16 %v4863_v52 }
 0x30b   : > { %v3972_v50 = vadd.f32 %v5377_v4, %v3674_v35  ;;  %v3672_v63 = vadd.f32 %v3647_v51, %v3246_v1  ;;  %v4016_v40 = vpack.c.bf16 %v4005_v36, %v4004_v26  ;;  %v3992_v48 = vadd.f32 %v7285_v60, %v3969_v3  ;;  %v4866_v4 = vld [vmem:[%s6166_s9 + $0x30] sm:$0xff]   ;;  %v4865_v35 = vld [vmem:[%s6166_s9 + $0x28] sm:$0xff]  }
 0x30c   : > { %v4010_v53 = vmax.f32 %v3994_v8, 0.0  ;;  %v4811_v1 = vunpack.c.l.bf16 %v4866_v4 }
 0x30d   : > { %v3995_v57 = vadd.f32 %v7285_v60, %v3972_v50  ;;  %v3970_v24 = vadd.f32 %v3945_v21, %v3672_v63  ;;  %5402 = vmatprep.mubr.bf16.mxu1 %v4016_v40  ;;  %v4008_v18 = vmax.f32 %v3992_v48, 0.0  ;;  %v4807_v63 = vunpack.c.l.bf16 %v4865_v35 }
 0x30e   : > { %5403 = vmatmul.mubr.bf16.gmra.mxu1 %v4017_v25  ;;  %v4812_v21 = vunpack.c.h.bf16 %v4866_v4 }
 0x30f   : > { %v4011_v11 = vmax.f32 %v3995_v57, 0.0  ;;  %v3993_v6 = vadd.f32 %v7285_v60, %v3970_v24  ;;  %v4795_v60 = vunpack.c.l.bf16 %v4862_v42 }
 0x311   : > { %v4009_v45 = vmax.f32 %v3993_v6, 0.0  ;;  %v4019_v38 = vpack.c.bf16 %v4011_v11, %v4010_v53 }
 0x313   : > { %v4018_v43 = vpack.c.bf16 %v4009_v45, %v4008_v18  ;;  %v4808_v45 = vunpack.c.h.bf16 %v4865_v35 }
 0x315   : > { %5406 = vmatprep.mubr.bf16.mxu1 %v4018_v43 }
 0x316   : > { %5407 = vmatmul.mubr.bf16.gmra.mxu1 %v4019_v38  ;;  %v4868_v38 = vld [vmem:[%s6166_s9 + $0x40] sm:$0xff]  }
 0x3be   : > { %v5396_v58 = vpop.f32.mrf.mxu0 }
 0x3bf   : > { %v4134_v28 = vadd.f32 %v5396_v58, %v7358_v59 }
 0x3c0   : > { %v4125_v56 = vpop.f32.mrf.mxu0 }
 0x3c1   : > { %v4126_v23 = vadd.f32 %v7358_v59, %v4125_v56  ;;  %v4226_v32 = vadd.f32 %v4795_v60, %v4134_v28  ;;  %v4867_v28 = vld [vmem:[%s6166_s9 + $0x38] sm:$0xff]   ;;  %v4819_v56 = vunpack.c.l.bf16 %v4868_v38  ;;  %s4353_s9 = sshll.u32 %s7373_s12, 4  ;;  %s7403_s9 = int_to_ptr.vmem [resolvable:$true] %s4353_s9 }
 0x3c2   : > { %v5397_v41 = vpop.f32.mrf.mxu0  ;;  %s5795_s20 = scalar_lea.vmem %s7403_s9, 1024  ;;  %p5802_p4 = scmp.lt.s32.totalorder %s7403_s9, %s5800_s1 }
 0x3c3   : > { %v4137_v62 = vadd.f32 %v5397_v41, %v7358_v59  ;;  %v4224_v44 = vadd.f32 %v4791_v20, %v4126_v23  ;;  %v4242_v55 = vmax.f32 %v4226_v32, 0.0  ;;  %p5796_p1 = scmp.ne.s32.totalorder %s7403_s9, %s5795_s20  ;;  %p5803_p13 = scmp.lt.s32.totalorder %s5801_s5, %s5795_s20 }
 0x3c4   : > { %v4128_v14 = vpop.f32.mrf.mxu0 }
 0x3c5   : > { %v4227_v54 = vadd.f32 %v4796_v39, %v4137_v62  ;;  %v4129_v0 = vadd.f32 %v7358_v59, %v4128_v14  ;;  %v4240_v17 = vmax.f32 %v4224_v44, 0.0  ;;  %v4815_v62 = vunpack.c.l.bf16 %v4867_v28  ;;  %p5797_p7 = pnand %p5796_p1, %p7598_p3  ;;  %p5804_p8 = por %p5803_p13, %p5802_p4 }
 0x3c6   : > { %v5400_v34 = vpop.f32.mrf.mxu1 }
 0x3c7   : > { %v4243_v22 = vmax.f32 %v4227_v54, 0.0  ;;  %v4225_v12 = vadd.f32 %v4792_v2, %v4129_v0  ;;  %v4150_v31 = vadd.f32 %v5400_v34, %v7358_v59  ;;  %v4820_v2 = vunpack.c.h.bf16 %v4868_v38  ;;  %p5798_p11 = pneg %p5797_p7 }
 0x3c8   : > { %v4141_v19 = vpop.f32.mrf.mxu1  ;;  %v4816_v34 = vunpack.c.h.bf16 %v4867_v28 }
 0x3c9   : > { %v4829_v7 = vpack.c.bf16 %v4243_v22, %v4242_v55  ;;  %v4241_v13 = vmax.f32 %v4225_v12, 0.0  ;;  %v4142_v15 = vadd.f32 %v7358_v59, %v4141_v19  ;;  %v4230_v47 = vadd.f32 %v4803_v16, %v4150_v31  ;;  %p5805_p10 = pnand %p5804_p8, %p5798_p11 }
 0x3ca   : > { %v5401_v37 = vpop.f32.mrf.mxu1 }
 0x3cb   : > { %4869 = vst [vmem:[%s7373_s12 + $0x8] sm:$0xff] %v4829_v7   ;;  %v4824_v33 = vpack.c.bf16 %v4241_v13, %v4240_v17  ;;  %v4153_v10 = vadd.f32 %v5401_v37, %v7358_v59  ;;  %v4228_v5 = vadd.f32 %v4799_v49, %v4142_v15  ;;  %v4246_v26 = vmax.f32 %v4230_v47, 0.0 }
 0x3cc   : > { %v4144_v30 = vpop.f32.mrf.mxu1 }
 0x3cd   : > { %4825 = vst [vmem:[%s7373_s12] sm:$0xff] %v4824_v33   ;;  %v4231_v36 = vadd.f32 %v4804_v46, %v4153_v10  ;;  %v4145_v3 = vadd.f32 %v7358_v59, %v4144_v30  ;;  %v4244_v40 = vmax.f32 %v4228_v5, 0.0 }
 0x3ce   : > { %v5404_v27 = vpop.f32.mrf.mxu1 }
 0x3cf   : > { %v4247_v51 = vmax.f32 %v4231_v36, 0.0  ;;  %v4229_v25 = vadd.f32 %v4800_v9, %v4145_v3  ;;  %v4166_v8 = vadd.f32 %v5404_v27, %v7358_v59 }
 0x3d0   : > { %v4157_v50 = vpop.f32.mrf.mxu1 }
 0x3d1   : > { %v4839_v48 = vpack.c.bf16 %v4247_v51, %v4246_v26  ;;  %v4245_v57 = vmax.f32 %v4229_v25, 0.0  ;;  %v4158_v24 = vadd.f32 %v7358_v59, %v4157_v50  ;;  %v4234_v6 = vadd.f32 %v4811_v1, %v4166_v8 }
 0x3d2   : > { %v5405_v53 = vpop.f32.mrf.mxu1 }
 0x3d3   : > { %4871 = vst [vmem:[%s7373_s12 + $0x18] sm:$0xff] %v4839_v48   ;;  %v4834_v11 = vpack.c.bf16 %v4245_v57, %v4244_v40  ;;  %v4169_v18 = vadd.f32 %v5405_v53, %v7358_v59  ;;  %v4232_v42 = vadd.f32 %v4807_v63, %v4158_v24  ;;  %v4250_v23 = vmax.f32 %v4234_v6, 0.0 }
 0x3d4   : > { %v4160_v43 = vpop.f32.mrf.mxu1 }
 0x3d5   : > { %4870 = vst [vmem:[%s7373_s12 + $0x10] sm:$0xff] %v4834_v11   ;;  %v4235_v58 = vadd.f32 %v4812_v21, %v4169_v18  ;;  %v4161_v61 = vadd.f32 %v7358_v59, %v4160_v43  ;;  %v4248_v14 = vmax.f32 %v4232_v42, 0.0 }
 0x3d6   : > { %v5408_v60 = vpop.f32.mrf.mxu1 }
 0x3d7   : > { %v4251_v20 = vmax.f32 %v4235_v58, 0.0  ;;  %v4233_v39 = vadd.f32 %v4808_v45, %v4161_v61  ;;  %v4182_v41 = vadd.f32 %v5408_v60, %v7358_v59 }
 0x3d8   : > { %v4173_v32 = vpop.f32.mrf.mxu1 }
 0x3d9   : > { %v4849_v44 = vpack.c.bf16 %v4251_v20, %v4250_v23  ;;  %v4249_v54 = vmax.f32 %v4233_v39, 0.0  ;;  %v4174_v0 = vadd.f32 %v7358_v59, %v4173_v32  ;;  %v4238_v22 = vadd.f32 %v4819_v56, %v4182_v41 }
 0x3da   : > { %v5409_v29 = vpop.f32.mrf.mxu1 }
 0x3db   : > { %4873 = vst [vmem:[%s7373_s12 + $0x28] sm:$0xff] %v4849_v44   ;;  %v4844_v55 = vpack.c.bf16 %v4249_v54, %v4248_v14  ;;  %v4185_v12 = vadd.f32 %v5409_v29, %v7358_v59  ;;  %v4236_v31 = vadd.f32 %v4815_v62, %v4174_v0  ;;  %v4254_v7 = vmax.f32 %v4238_v22, 0.0 }
 0x3dc   : > { %v4176_v52 = vpop.f32.mrf.mxu1 }
 0x3dd   : > { %4872 = vst [vmem:[%s7373_s12 + $0x20] sm:$0xff] %v4844_v55   ;;  %v4239_v16 = vadd.f32 %v4820_v2, %v4185_v12  ;;  %v4177_v17 = vadd.f32 %v7358_v59, %v4176_v52  ;;  %v4252_v15 = vmax.f32 %v4236_v31, 0.0 }
 0x3df   : > { %v4255_v13 = vmax.f32 %v4239_v16, 0.0  ;;  %v4237_v19 = vadd.f32 %v4816_v34, %v4177_v17 }
 0x3e1   : > { %v4859_v49 = vpack.c.bf16 %v4255_v13, %v4254_v7  ;;  %v4253_v46 = vmax.f32 %v4237_v19, 0.0 }
 0x3e3   : > { %4875 = vst [vmem:[%s7373_s12 + $0x38] sm:$0xff] %v4859_v49   ;;  %v4854_v59 = vpack.c.bf16 %v4253_v46, %v4252_v15 }
 0x3e5   : > { %4874 = vst [vmem:[%s7373_s12 + $0x30] sm:$0xff] %v4854_v59  }
 0x3e6   : > { %5808 = shalt.err (!%p5805_p10)
}
 0x3e7   : > { %s5809_s21 = scalar_lea.hbm %s7401_s22, 1024  ;;  %s5813_s13 = scalar_lea.hbm %s7597_s19, 4096 }
 0x3e8   : > { %p5810_p9 = scmp.ne.s32.totalorder %s7401_s22, %s5809_s21  ;;  %p5814_p2 = scmp.lt.s32.totalorder %s7401_s22, %s7597_s19 }
 0x3e9   : > { %p5815_p5 = scmp.lt.s32.totalorder %s5813_s13, %s5809_s21 }
 0x3ea   : > { %p5811_p0 = pnand %p5810_p9, %p7598_p3 }
 0x3eb   : > { %p5816_p6 = por %p5815_p5, %p5814_p2 }
 0x3ec   : > { %p5812_p12 = pneg %p5811_p0 }
 0x3ee   : > { %p5817_p1 = pnand %p5816_p6, %p5812_p12 }
 0x3f0   : > { %5820 = shalt.err (!%p5817_p1)
}
 0x3f1   : > { %s5932_s7 = smov 64   ;;  %s5933_s8 = smov 4  }
 0x3f2   : > { %5443 = dma.vmem_to_hbm [thread:$0]  (%p7598_p3), %s7403_s9, 1024, %s7401_s22, %s7409_s24, %s5932_s7, %s5932_s7, %s5933_s8  }
 0x3f3 PF: > { %s7599_s14 = sld [smem:[#allocation16_spill]]  ;;  %p5470_p7 = scmp.ge.s32.totalorder %s5923_s11, 2 }
 0x3f4   : > { %s7600_s16 = sld [smem:[#allocation20_spill]] }
 0x3f9   : > { %s4368_s20 = sand.u32 1, %s7599_s14  }
 0x3fa   : > { %p7601_p11 = scmp.ne.s32.totalorder %s7600_s16, 0  ;;  %s4369_s27 = scalar_lea.sflag [#allocation5], %s4368_s20 }
 0x3fc   : > { %p5460_p4 = pnand %p5470_p7, %p7601_p11 }
 0x3fe   : > { %p5461_p13 = pneg %p5460_p4 }
 0x400   : > { %5878 = dma.done.wait (%p5461_p13), %s4369_s27, 1024  }
 0x401   : > { %5880 = vsyncadd (%p5461_p13), %s4369_s27, 4294966272  ;;  %s25_s11 = sadd.s32 1, %s5923_s11   ;;  %s7602_s30 = sld [smem:[#allocation18_spill]] }
 0x402   : > { %p22_p8 = scmp.ge.s32.totalorder %s25_s11, 6   ;;  %s7603_s9 = sld [smem:[#allocation21_spill]] }
 0x403   : > { %s7604_s22 = sld [smem:[#allocation22_spill]]  ;;  %s7605_s24 = smov %s5887_s25 }
 0x404   : > { %s7606_s25 = smov %s5891_s26  ;;  %s7607_s26 = smov %s6130_s3 }
 0x405   : > { %s7608_s27 = smov %s5899_s28  ;;  %s7609_s28 = smov %s5903_s29 }
 0x406   : > { %s7610_s29 = smov %s6125_s23  ;;  %s7611_s8 = smov %s5919_s10 }
 0x407   :  { %24 = sbr.rel (!%p22_p8) target bundleno = 16 (0x10), region = 117 }
 0x409   : > { %s7612_s10 = smov %s7604_s22 }
 0x40c   :  { %4374 = vsyncpa [#allocation4], 1 }
 0x40d   :  { %4376 = vsyncpa [#allocation4 + $0x1], 1 }
 0x40e   :  { %4377 = vsyncpa [#allocation7], 1 }
 0x40f   :  { %4378 = vsyncpa [#allocation10], 1 }
 0x410   :  { %4379 = vsyncpa [#allocation5], 1 }
 0x411   :  { %4381 = vsyncpa [#allocation5 + $0x1], 1 }

</bundles_post_ra>
